<compile_context>
chip_gen: v6e
topology: v6e:2x2x1
jax: 0.10.0
libtpu: 0.0.40
codegen_flags: <defaults>
</compile_context>

<pallas_src>
import jax
import jax.numpy as jnp
from jax.experimental import pallas as pl
from jax.experimental.pallas import tpu as pltpu

_LANES = 128


def _round_up(v, m):
    return (v + m - 1) // m * m


# ----------------------------------------------------------------------------
# Pallas kernels
# ----------------------------------------------------------------------------
def _make_conv_kernel(ksize, stride, TH, M, K):
    """Conv + folded-BN + ReLU over one (TH output rows, TN cout) tile.

      x_ref : (1, G_in, M, K)   bf16  halo-grouped, width-unfolded input rows
      w_ref : (KH, K, TN)       bf16  (resident across the grid)
      s_ref, b_ref : (1, TN)    f32   folded-BN scale / shift
      o_ref : (TH, M, TN)       f32 or bf16
    The kh taps are folded in-kernel: for each kh we take a contiguous slice
    of the group's row axis (rows were pre-ordered so stride-2 taps are
    contiguous too) and issue one (TH*M, K) x (K, TN) MXU matmul.
    """
    def kernel(x_ref, w_ref, s_ref, b_ref, o_ref):
        x = x_ref[0]                              # (G_in, M, K)
        acc = None
        for kh in range(ksize):
            if ksize == 1:
                rows = x                          # G_in == TH
            elif stride == 1:
                rows = x[kh:kh + TH]
            elif kh == 0:                         # stride 2: [evens | odds]
                rows = x[0:TH]
            elif kh == 1:
                rows = x[TH + 1:2 * TH + 1]
            else:
                rows = x[1:TH + 1]
            p = jnp.dot(rows.reshape(TH * M, K), w_ref[kh],
                        preferred_element_type=jnp.float32)
            acc = p if acc is None else acc + p
        y = jnp.maximum(acc * s_ref[...] + b_ref[...], 0.0)
        o_ref[...] = y.reshape(o_ref.shape).astype(o_ref.dtype)
    return kernel


def _pool_kernel(a_ref, b_ref, c_ref, o_ref):
    """MaxPool kh-direction max of three already-width-reduced rows."""
    o_ref[...] = jnp.maximum(jnp.maximum(a_ref[...], b_ref[...]), c_ref[...])


# ----------------------------------------------------------------------------
# Conv / pool wrappers (layout plumbing in plain JAX, hot path in Pallas)
# ----------------------------------------------------------------------------
def conv_bn_relu(x_hnwc, w3, scale2, shift2, *, ksize, stride, pad,
                 out_dtype=jnp.float32):
    """Conv(ksize, stride, pad) + folded BN + ReLU.

    x_hnwc : (H, N, W, Cin), Cin a multiple of 128.
    w3     : (KH, KW*Cin, Cout_pad) bf16;  scale2/shift2 : (1, Cout_pad) f32.
    Returns (Ho, N, Wo, Cout_pad) in `out_dtype`.
    """
    H, N, W, Cin = x_hnwc.shape
    Cout_pad = w3.shape[-1]
    assert Cin % _LANES == 0 and Cout_pad % _LANES == 0
    assert w3.shape == (ksize, ksize * Cin, Cout_pad)
    assert (ksize, stride) in ((1, 1), (3, 1), (3, 2))
    Ho = (H + 2 * pad - ksize) // stride + 1
    Wo = (W + 2 * pad - ksize) // stride + 1
    M = N * Wo
    K = ksize * Cin
    out_isz = jnp.finfo(out_dtype).bits // 8

    # --- tile selection: TH output rows x TN output channels per grid step ---
    def blk_bytes(th, tn):
        g_in = th * stride + (ksize - stride)
        return 2 * (g_in * M * K * 2 + ksize * K * tn * 2
                    + th * M * tn * out_isz + 2 * tn * 4)

    BUDGET = 40 * 2 ** 20                       # double-buffered blocks; fits v7x
    TN = Cout_pad                               # full cout width -> nco = 1
    TH = min(Ho, max(1, (512 + M - 1) // M))    # target ~512 MXU rows per matmul
    while blk_bytes(TH, TN) > BUDGET and TH > 1:
        TH = (TH + 1) // 2
    if blk_bytes(TH, TN) > BUDGET:
        TN = _LANES
        for tn in range(Cout_pad - _LANES, _LANES - 1, -_LANES):
            if Cout_pad % tn == 0 and blk_bytes(TH, tn) <= BUDGET:
                TN = tn
                break
    n_h = (Ho + TH - 1) // TH
    Ho_pad = n_h * TH
    nco = Cout_pad // TN
    G_in = TH * stride + (ksize - stride)
    Hp_need = (Ho_pad - 1) * stride + ksize

    # --- width unfold (kw taps folded into lanes), bf16 for the MXU ---
    Hp_nat = H + 2 * pad
    extra = max(0, Hp_need - Hp_nat)
    xp = jnp.pad(x_hnwc, ((pad, pad + extra), (0, 0), (pad, pad), (0, 0)))
    xp = xp.astype(jnp.bfloat16)
    taps = [
        jax.lax.slice(xp, (0, 0, kw, 0),
                      (Hp_need, N, kw + stride * (Wo - 1) + 1, Cin),
                      (1, 1, stride, 1))
        for kw in range(ksize)
    ]
    xw = jnp.stack(taps, axis=3).reshape(Hp_need, M, K)

    # --- group TH output rows + halo per grid step (halo rows duplicated) ---
    if ksize == 1:
        xg = xw.reshape(n_h, G_in, M, K)
    else:
        if stride == 1:
            offs = jnp.arange(G_in)                       # rows kh..kh+TH contiguous
        else:  # stride 2: store [evens | odds] so every kh slice is contiguous
            offs = jnp.concatenate(
                [jnp.arange(0, 2 * TH + 1, 2), jnp.arange(1, 2 * TH, 2)])
        idx = (jnp.arange(n_h)[:, None] * (TH * stride) + offs[None, :]).reshape(-1)
        xg = jnp.take(xw, idx, axis=0).reshape(n_h, G_in, M, K)

    est = blk_bytes(TH, TN)
    vmem_limit = int(min(60 * 2 ** 20, max(32 * 2 ** 20, 2 * est)))

    out = pl.pallas_call(
        _make_conv_kernel(ksize, stride, TH, M, K),
        out_shape=jax.ShapeDtypeStruct((Ho_pad, M, Cout_pad), out_dtype),
        grid=(n_h, nco),
        in_specs=[
            # activation block: constant across the inner cout axis -> one fetch per h
            pl.BlockSpec((1, G_in, M, K), lambda h, j: (h, 0, 0, 0)),
            # full-KH weight block: index ignores h -> resident across grid
            pl.BlockSpec((ksize, K, TN), lambda h, j: (0, 0, j)),
            pl.BlockSpec((1, TN), lambda h, j: (0, j)),
            pl.BlockSpec((1, TN), lambda h, j: (0, j)),
        ],
        out_specs=pl.BlockSpec((TH, M, TN), lambda h, j: (h, 0, j)),
        compiler_params=pltpu.CompilerParams(
            dimension_semantics=("parallel", "parallel"),
            vmem_limit_bytes=vmem_limit),
        cost_estimate=pl.CostEstimate(
            flops=2 * Ho_pad * M * K * Cout_pad,
            transcendentals=0,
            bytes_accessed=(xg.size * 2 + w3.size * 2
                            + Ho_pad * M * Cout_pad * out_isz)),
    )(xg, w3, scale2, shift2)
    return out[:Ho].reshape(Ho, N, Wo, Cout_pad)


def maxpool3x3_s2(x_hnwc):
    """MaxPool2d(3, stride=2, padding=1) on an (H, N, W, C) f32 tensor.

    The kw-direction max is a fused plain-JAX max over three strided taps
    (nothing extra materializes beyond the (Hp, N, Wo, C) result); the Pallas
    kernel does the kh-direction 3-row max.  C is the REAL channel count
    (no lane padding is pooled).
    """
    H, N, W, C = x_hnwc.shape
    ksize, stride, pad = 3, 2, 1
    Ho = (H + 2 * pad - ksize) // stride + 1
    Wo = (W + 2 * pad - ksize) // stride + 1
    Hp = H + 2 * pad

    xp = jnp.pad(x_hnwc, ((pad, pad), (0, 0), (pad, pad), (0, 0)),
                 constant_values=-jnp.inf)
    taps = [
        jax.lax.slice(xp, (0, 0, kw, 0),
                      (Hp, N, kw + stride * (Wo - 1) + 1, C),
                      (1, 1, stride, 1))
        for kw in range(ksize)
    ]
    wm = jnp.maximum(jnp.maximum(taps[0], taps[1]), taps[2])   # (Hp, N, Wo, C)

    def row_spec(k):
        return pl.BlockSpec((1, N, Wo, C),
                            lambda ho, _k=k: (stride * ho + _k, 0, 0, 0))

    out = pl.pallas_call(
        _pool_kernel,
        out_shape=jax.ShapeDtypeStruct((Ho, N, Wo, C), jnp.float32),
        grid=(Ho,),
        in_specs=[row_spec(0), row_spec(1), row_spec(2)],
        out_specs=pl.BlockSpec((1, N, Wo, C), lambda ho: (ho, 0, 0, 0)),
        compiler_params=pltpu.CompilerParams(
            dimension_semantics=("parallel",),
            vmem_limit_bytes=32 * 1024 * 1024),
    )(wm, wm, wm)
    return out


# ----------------------------------------------------------------------------
# Parameter construction / preparation
# ----------------------------------------------------------------------------
def make_conv_bn_params(key, ksize, cin, cout, eps=1e-5):
    kw_, kb_, kg, kbeta, km, kv = jax.random.split(key, 6)
    w = jax.random.normal(kw_, (ksize, ksize, cin, cout), jnp.float32) * 0.1
    conv_b = jax.random.normal(kb_, (cout,), jnp.float32) * 0.1
    gamma = 1.0 + 0.1 * jax.random.normal(kg, (cout,), jnp.float32)
    beta = 0.1 * jax.random.normal(kbeta, (cout,), jnp.float32)
    r_mean = 0.1 * jax.random.normal(km, (cout,), jnp.float32)
    r_var = jnp.abs(jax.random.normal(kv, (cout,), jnp.float32)) + 0.5
    scale = gamma / jnp.sqrt(r_var + eps)               # folded (eval-mode) BN
    shift = beta + scale * (conv_b - r_mean)
    return (w, scale, shift)


def init_params(key, in_planes, n3x3red, n3x3, n3x3red_double, n3x3_double):
    ks = jax.random.split(key, 5)
    return {
        "b2_0": make_conv_bn_params(ks[0], 1, in_planes, n3x3red),
        "b2_1": make_conv_bn_params(ks[1], 3, n3x3red, n3x3),
        "b3_0": make_conv_bn_params(ks[2], 1, in_planes, n3x3red_double),
        "b3_1": make_conv_bn_params(ks[3], 3, n3x3red_double, n3x3_double),
        "b3_2": make_conv_bn_params(ks[4], 3, n3x3_double, n3x3_double),
    }


def _prep_conv(w_hwio, scale, shift, cin_offset, cin_total, cout_pad):
    """Embed a conv's weights + folded-BN affine for the Pallas kernel.

    The conv only consumes the 128-aligned activation-channel block
    [lo, hi) that contains its real channels (which sit at `cin_offset`
    inside the `cin_total`-wide activation); Cout is zero-padded to
    `cout_pad`.  Returns (w3, scale2, shift2, lo, hi).
    """
    KH, KW, Cin, Cout = w_hwio.shape
    lo = (cin_offset // _LANES) * _LANES
    hi = _round_up(cin_offset + Cin, _LANES)
    assert hi <= cin_total
    width = hi - lo
    wf = jnp.zeros((KH, KW, width, cout_pad), jnp.float32)
    wf = wf.at[:, :, cin_offset - lo:cin_offset - lo + Cin, :Cout].set(w_hwio)
    w3 = wf.reshape(KH, KW * width, cout_pad).astype(jnp.bfloat16)
    s2 = jnp.zeros((1, cout_pad), jnp.float32).at[0, :Cout].set(scale)
    b2 = jnp.zeros((1, cout_pad), jnp.float32).at[0, :Cout].set(shift)
    return w3, s2, b2, lo, hi


# ----------------------------------------------------------------------------
# Module forward
# ----------------------------------------------------------------------------
def inception_through(x_nchw, params):
    w20, s20, b20 = params["b2_0"]
    w21, s21, b21 = params["b2_1"]
    w30, s30, b30 = params["b3_0"]
    w31, s31, b31 = params["b3_1"]
    w32, s32, b32 = params["b3_2"]
    in_planes, r2 = w20.shape[2], w20.shape[3]
    r3 = w30.shape[3]
    n3 = w21.shape[3]
    n3d = w31.shape[3]

    # Internal layout (H, N, W, C): each conv row-slab is one contiguous DMA.
    x_t = jnp.transpose(x_nchw, (2, 0, 3, 1)).astype(jnp.float32)
    cin_pad = _round_up(in_planes, _LANES)
    x = jnp.pad(x_t, ((0, 0), (0, 0), (0, 0), (0, cin_pad - in_planes)))

    # Fused 1x1 "reduce" conv for branches b2 and b3 (they share the input);
    # output channels [0:r2] = b2 reduce, [r2:r2+r3] = b3 reduce, rest zero.
    # Intermediates are emitted in bf16 (f32 accumulation / epilogue).
    red_pad = _round_up(r2 + r3, _LANES)
    w_red = jnp.concatenate([w20, w30], axis=3)
    s_red = jnp.concatenate([s20, s30])
    t_red = jnp.concatenate([b20, b30])
    wr, sr, br, lo, hi = _prep_conv(w_red, s_red, t_red, 0, cin_pad, red_pad)
    red = conv_bn_relu(x[..., lo:hi], wr, sr, br, ksize=1, stride=1, pad=0,
                       out_dtype=jnp.bfloat16)

    # TODO(synk): the reduce->3x3 pairs still round-trip `red` through HBM once;
    # a halo-aware fused 1x1+3x3 kernel would remove that traffic.
    n3_pad = _round_up(n3, _LANES)
    wa, sa, ba, lo, hi = _prep_conv(w21, s21, b21, 0, red_pad, n3_pad)
    y2 = conv_bn_relu(red[..., lo:hi], wa, sa, ba, ksize=3, stride=2, pad=1,
                      out_dtype=jnp.float32)

    n3d_pad = _round_up(n3d, _LANES)
    wb, sb, bb, lo, hi = _prep_conv(w31, s31, b31, r2, red_pad, n3d_pad)
    y3 = conv_bn_relu(red[..., lo:hi], wb, sb, bb, ksize=3, stride=1, pad=1,
                      out_dtype=jnp.bfloat16)
    wc, sc, bc, lo, hi = _prep_conv(w32, s32, b32, 0, n3d_pad, n3d_pad)
    y3 = conv_bn_relu(y3[..., lo:hi], wc, sc, bc, ksize=3, stride=2, pad=1,
                      out_dtype=jnp.float32)

    y4 = maxpool3x3_s2(x_t)                               # un-padded channels

    y = jnp.concatenate([y2[..., :n3].astype(jnp.float32),
                         y3[..., :n3d].astype(jnp.float32),
                         y4], axis=-1)
    return jnp.transpose(y, (1, 3, 0, 2))                 # (Ho,N,Wo,C) -> NCHW


# ----------------------------------------------------------------------------
# Pure-JAX reference (bf16-rounded conv inputs to match the MXU path numerics)
# ----------------------------------------------------------------------------
def _bf16(a):
    return a.astype(jnp.bfloat16).astype(jnp.float32)


def _ref_conv_bn_relu(x_nhwc, w_hwio, scale, shift, stride, pad):
    y = jax.lax.conv_general_dilated(
        _bf16(x_nhwc), _bf16(w_hwio), window_strides=(stride, stride),
        padding=((pad, pad), (pad, pad)),
        dimension_numbers=("NHWC", "HWIO", "NHWC"),
        precision=jax.lax.Precision.HIGHEST)
    return jnp.maximum(y * scale + shift, 0.0)


def _ref_forward(x_nchw, params):
    x = jnp.transpose(x_nchw, (0, 2, 3, 1)).astype(jnp.float32)
    y2 = _ref_conv_bn_relu(x, *params["b2_0"], 1, 0)
    y2 = _ref_conv_bn_relu(y2, *params["b2_1"], 2, 1)
    y3 = _ref_conv_bn_relu(x, *params["b3_0"], 1, 0)
    y3 = _ref_conv_bn_relu(y3, *params["b3_1"], 1, 1)
    y3 = _ref_conv_bn_relu(y3, *params["b3_2"], 2, 1)
    y4 = jax.lax.reduce_window(
        x, -jnp.inf, jax.lax.max,
        window_dimensions=(1, 3, 3, 1), window_strides=(1, 2, 2, 1),
        padding=((0, 0), (1, 1), (1, 1), (0, 0)))
    y = jnp.concatenate([y2, y3, y4], axis=-1)
    return jnp.transpose(y, (0, 3, 1, 2))


if __name__ == "__main__":
    key = jax.random.PRNGKey(0)
    k_params, k_x = jax.random.split(key)

    in_planes, n3x3red, n3x3, n3x3red_double, n3x3_double = 8, 4, 8, 4, 8
    params = init_params(k_params, in_planes, n3x3red, n3x3,
                         n3x3red_double, n3x3_double)

    x = jax.random.normal(k_x, (2, in_planes, 16, 16), jnp.float32)  # NCHW

    out = jax.jit(inception_through)(x, params)
    out = jax.block_until_ready(out)

    expected_shape = (2, n3x3 + n3x3_double + in_planes, 8, 8)
    assert out.shape == expected_shape, (out.shape, expected_shape)

    ref = jax.block_until_ready(_ref_forward(x, params))
    max_err = float(jnp.max(jnp.abs(out - ref)))
    # bf16 MXU inputs & bf16 intermediates (matched in the reference, which
    # also rounds every conv input to bf16) => small accumulation-order /
    # re-rounding differences only.
    assert jnp.allclose(out, ref, rtol=1e-2, atol=1e-2), max_err

    print("KERNEL_OK")
</pallas_src>

<mosaic_0001>
module attributes {stable_mosaic.version = 11 : i64} {
  func.func @_pool_kernel(%arg0: i32, %arg1: memref<1x2x8x8xf32, #tpu.memory_space<vmem>>, %arg2: memref<1x2x8x8xf32, #tpu.memory_space<vmem>>, %arg3: memref<1x2x8x8xf32, #tpu.memory_space<vmem>>, %arg4: memref<1x2x8x8xf32, #tpu.memory_space<vmem>>) attributes {dimension_semantics = [#tpu.dimension_semantics<parallel>], iteration_bounds = array<i64: 8>, scalar_prefetch = 0 : i64, scratch_operands = 0 : i64, tpu.core_type = #tpu.core_type<tc>, window_params = [{transform_indices = @transform_0, window_bounds = array<i64: 1, 2, 8, 8>}, {transform_indices = @transform_1, window_bounds = array<i64: 1, 2, 8, 8>}, {transform_indices = @transform_2, window_bounds = array<i64: 1, 2, 8, 8>}, {transform_indices = @transform_3, window_bounds = array<i64: 1, 2, 8, 8>}]} {
    %c0 = arith.constant 0 : index
    %c0_0 = arith.constant 0 : index
    %c0_1 = arith.constant 0 : index
    %c0_2 = arith.constant 0 : index
    %0 = vector.load %arg1[%c0, %c0_0, %c0_1, %c0_2] : memref<1x2x8x8xf32, #tpu.memory_space<vmem>>, vector<1x2x8x8xf32>
    %c0_3 = arith.constant 0 : index
    %c0_4 = arith.constant 0 : index
    %c0_5 = arith.constant 0 : index
    %c0_6 = arith.constant 0 : index
    %1 = vector.load %arg2[%c0_3, %c0_4, %c0_5, %c0_6] : memref<1x2x8x8xf32, #tpu.memory_space<vmem>>, vector<1x2x8x8xf32>
    %2 = arith.maximumf %0, %1 : vector<1x2x8x8xf32>
    %c0_7 = arith.constant 0 : index
    %c0_8 = arith.constant 0 : index
    %c0_9 = arith.constant 0 : index
    %c0_10 = arith.constant 0 : index
    %3 = vector.load %arg3[%c0_7, %c0_8, %c0_9, %c0_10] : memref<1x2x8x8xf32, #tpu.memory_space<vmem>>, vector<1x2x8x8xf32>
    %4 = arith.maximumf %2, %3 : vector<1x2x8x8xf32>
    %c0_11 = arith.constant 0 : index
    %c0_12 = arith.constant 0 : index
    %c0_13 = arith.constant 0 : index
    %c0_14 = arith.constant 0 : index
    %5 = vector.load %arg4[%c0_11, %c0_12, %c0_13, %c0_14] : memref<1x2x8x8xf32, #tpu.memory_space<vmem>>, vector<1x2x8x8xf32>
    tpu.vector_store %arg4[%c0_11, %c0_12, %c0_13, %c0_14], %4 {strides = array<i32>} : memref<1x2x8x8xf32, #tpu.memory_space<vmem>>, vector<1x2x8x8xf32>,
    return
  }
  func.func @transform_0(%arg0: i32) -> (i32, i32, i32, i32) {
    %c2_i32 = arith.constant 2 : i32
    %0 = arith.muli %c2_i32, %arg0 : i32
    %c0_i32 = arith.constant 0 : i32
    %1 = arith.addi %0, %c0_i32 : i32
    %c0_i32_0 = arith.constant 0 : i32
    %c0_i32_1 = arith.constant 0 : i32
    %c0_i32_2 = arith.constant 0 : i32
    %c0_i32_3 = arith.constant 0 : i32
    return %1, %c0_i32_0, %c0_i32_1, %c0_i32_2 : i32, i32, i32, i32
  }
  func.func @transform_1(%arg0: i32) -> (i32, i32, i32, i32) {
    %c2_i32 = arith.constant 2 : i32
    %0 = arith.muli %c2_i32, %arg0 : i32
    %c1_i32 = arith.constant 1 : i32
    %1 = arith.addi %0, %c1_i32 : i32
    %c0_i32 = arith.constant 0 : i32
    %c0_i32_0 = arith.constant 0 : i32
    %c0_i32_1 = arith.constant 0 : i32
    %c0_i32_2 = arith.constant 0 : i32
    return %1, %c0_i32, %c0_i32_0, %c0_i32_1 : i32, i32, i32, i32
  }
  func.func @transform_2(%arg0: i32) -> (i32, i32, i32, i32) {
    %c2_i32 = arith.constant 2 : i32
    %0 = arith.muli %c2_i32, %arg0 : i32
    %c2_i32_0 = arith.constant 2 : i32
    %1 = arith.addi %0, %c2_i32_0 : i32
    %c0_i32 = arith.constant 0 : i32
    %c0_i32_1 = arith.constant 0 : i32
    %c0_i32_2 = arith.constant 0 : i32
    %c0_i32_3 = arith.constant 0 : i32
    return %1, %c0_i32, %c0_i32_1, %c0_i32_2 : i32, i32, i32, i32
  }
  func.func @transform_3(%arg0: i32) -> (i32, i32, i32, i32) {
    %c0_i32 = arith.constant 0 : i32
    %c0_i32_0 = arith.constant 0 : i32
    %c0_i32_1 = arith.constant 0 : i32
    %c0_i32_2 = arith.constant 0 : i32
    return %arg0, %c0_i32, %c0_i32_0, %c0_i32_1 : i32, i32, i32, i32
  }
}

module attributes {stable_mosaic.version = 11 : i64} {
  func.func @kernel(%arg0: i32, %arg1: i32, %arg2: memref<1x16x32x128xbf16, #tpu.memory_space<vmem>>, %arg3: memref<1x128x128xbf16, #tpu.memory_space<vmem>>, %arg4: memref<1x128xf32, #tpu.memory_space<vmem>>, %arg5: memref<1x128xf32, #tpu.memory_space<vmem>>, %arg6: memref<16x32x128xbf16, #tpu.memory_space<vmem>>) attributes {dimension_semantics = [#tpu.dimension_semantics<parallel>, #tpu.dimension_semantics<parallel>], iteration_bounds = array<i64: 1, 1>, scalar_prefetch = 0 : i64, scratch_operands = 0 : i64, tpu.core_type = #tpu.core_type<tc>, window_params = [{transform_indices = @transform_0, window_bounds = array<i64: 1, 16, 32, 128>}, {transform_indices = @transform_1, window_bounds = array<i64: 1, 128, 128>}, {transform_indices = @transform_2, window_bounds = array<i64: 1, 128>}, {transform_indices = @transform_3, window_bounds = array<i64: 1, 128>}, {transform_indices = @transform_4, window_bounds = array<i64: 16, 32, 128>}]} {
    %c0 = arith.constant 0 : index
    %c0_0 = arith.constant 0 : index
    %c0_1 = arith.constant 0 : index
    %c0_2 = arith.constant 0 : index
    %0 = vector.load %arg2[%c0, %c0_0, %c0_1, %c0_2] : memref<1x16x32x128xbf16, #tpu.memory_space<vmem>>, vector<1x16x32x128xbf16>
    %1 = vector.shape_cast %0 : vector<1x16x32x128xbf16> to vector<16x32x128xbf16>
    %2 = vector.shape_cast %1 : vector<16x32x128xbf16> to vector<512x128xbf16>
    %c0_3 = arith.constant 0 : index
    %c0_4 = arith.constant 0 : index
    %c0_5 = arith.constant 0 : index
    %3 = vector.load %arg3[%c0_3, %c0_4, %c0_5] : memref<1x128x128xbf16, #tpu.memory_space<vmem>>, vector<1x128x128xbf16>
    %4 = vector.shape_cast %3 : vector<1x128x128xbf16> to vector<128x128xbf16>
    %cst = arith.constant dense<0.000000e+00> : vector<512x128xf32>
    %5 = tpu.matmul %2, %4, %cst {dimension_numbers = #tpu.dot_dimension_numbers<[1], [0], [0], [1], [0, 0, 1, 1], [], []>} : vector<512x128xbf16>, vector<128x128xbf16>, vector<512x128xf32> -> vector<512x128xf32>
    %c0_6 = arith.constant 0 : index
    %c0_7 = arith.constant 0 : index
    %6 = vector.load %arg4[%c0_6, %c0_7] : memref<1x128xf32, #tpu.memory_space<vmem>>, vector<1x128xf32>
    %7 = vector.broadcast %6 : vector<1x128xf32> to vector<512x128xf32>
    %8 = arith.mulf %5, %7 : vector<512x128xf32>
    %c0_8 = arith.constant 0 : index
    %c0_9 = arith.constant 0 : index
    %9 = vector.load %arg5[%c0_8, %c0_9] : memref<1x128xf32, #tpu.memory_space<vmem>>, vector<1x128xf32>
    %10 = vector.broadcast %9 : vector<1x128xf32> to vector<512x128xf32>
    %11 = arith.addf %8, %10 : vector<512x128xf32>
    %cst_10 = arith.constant 0.000000e+00 : f32
    %12 = vector.broadcast %cst_10 : f32 to vector<512x128xf32>
    %13 = arith.maximumf %11, %12 : vector<512x128xf32>
    %14 = vector.shape_cast %13 : vector<512x128xf32> to vector<16x32x128xf32>
    %15 = arith.truncf %14 : vector<16x32x128xf32> to vector<16x32x128xbf16>
    %c0_11 = arith.constant 0 : index
    %c0_12 = arith.constant 0 : index
    %c0_13 = arith.constant 0 : index
    %16 = vector.load %arg6[%c0_11, %c0_12, %c0_13] : memref<16x32x128xbf16, #tpu.memory_space<vmem>>, vector<16x32x128xbf16>
    tpu.vector_store %arg6[%c0_11, %c0_12, %c0_13], %15 {strides = array<i32>} : memref<16x32x128xbf16, #tpu.memory_space<vmem>>, vector<16x32x128xbf16>,
    return
  }
  func.func @transform_0(%arg0: i32, %arg1: i32) -> (i32, i32, i32, i32) {
    %c0_i32 = arith.constant 0 : i32
    %c0_i32_0 = arith.constant 0 : i32
    %c0_i32_1 = arith.constant 0 : i32
    %c0_i32_2 = arith.constant 0 : i32
    return %arg0, %c0_i32, %c0_i32_0, %c0_i32_1 : i32, i32, i32, i32
  }
  func.func @transform_1(%arg0: i32, %arg1: i32) -> (i32, i32, i32) {
    %c0_i32 = arith.constant 0 : i32
    %c0_i32_0 = arith.constant 0 : i32
    %c0_i32_1 = arith.constant 0 : i32
    return %c0_i32, %c0_i32_0, %arg1 : i32, i32, i32
  }
  func.func @transform_2(%arg0: i32, %arg1: i32) -> (i32, i32) {
    %c0_i32 = arith.constant 0 : i32
    %c0_i32_0 = arith.constant 0 : i32
    return %c0_i32, %arg1 : i32, i32
  }
  func.func @transform_3(%arg0: i32, %arg1: i32) -> (i32, i32) {
    %c0_i32 = arith.constant 0 : i32
    %c0_i32_0 = arith.constant 0 : i32
    return %c0_i32, %arg1 : i32, i32
  }
  func.func @transform_4(%arg0: i32, %arg1: i32) -> (i32, i32, i32) {
    %c0_i32 = arith.constant 0 : i32
    %c0_i32_0 = arith.constant 0 : i32
    return %arg0, %c0_i32, %arg1 : i32, i32, i32
  }
}

module attributes {stable_mosaic.version = 11 : i64} {
  func.func @kernel(%arg0: i32, %arg1: i32, %arg2: memref<1x18x32x384xbf16, #tpu.memory_space<vmem>>, %arg3: memref<3x384x128xbf16, #tpu.memory_space<vmem>>, %arg4: memref<1x128xf32, #tpu.memory_space<vmem>>, %arg5: memref<1x128xf32, #tpu.memory_space<vmem>>, %arg6: memref<16x32x128xbf16, #tpu.memory_space<vmem>>) attributes {dimension_semantics = [#tpu.dimension_semantics<parallel>, #tpu.dimension_semantics<parallel>], iteration_bounds = array<i64: 1, 1>, scalar_prefetch = 0 : i64, scratch_operands = 0 : i64, tpu.core_type = #tpu.core_type<tc>, window_params = [{transform_indices = @transform_0, window_bounds = array<i64: 1, 18, 32, 384>}, {transform_indices = @transform_1, window_bounds = array<i64: 3, 384, 128>}, {transform_indices = @transform_2, window_bounds = array<i64: 1, 128>}, {transform_indices = @transform_3, window_bounds = array<i64: 1, 128>}, {transform_indices = @transform_4, window_bounds = array<i64: 16, 32, 128>}]} {
    %c0 = arith.constant 0 : index
    %c0_0 = arith.constant 0 : index
    %c0_1 = arith.constant 0 : index
    %c0_2 = arith.constant 0 : index
    %0 = vector.load %arg2[%c0, %c0_0, %c0_1, %c0_2] : memref<1x18x32x384xbf16, #tpu.memory_space<vmem>>, vector<1x18x32x384xbf16>
    %1 = vector.shape_cast %0 : vector<1x18x32x384xbf16> to vector<18x32x384xbf16>
    %2 = vector.extract_strided_slice %1 {offsets = [0, 0, 0], sizes = [16, 32, 384], strides = [1, 1, 1]} : vector<18x32x384xbf16> to vector<16x32x384xbf16>
    %3 = vector.shape_cast %2 : vector<16x32x384xbf16> to vector<512x384xbf16>
    %c0_3 = arith.constant 0 : index
    %c0_4 = arith.constant 0 : index
    %c0_5 = arith.constant 0 : index
    %4 = vector.load %arg3[%c0_3, %c0_4, %c0_5] : memref<3x384x128xbf16, #tpu.memory_space<vmem>>, vector<1x384x128xbf16>
    %5 = vector.shape_cast %4 : vector<1x384x128xbf16> to vector<384x128xbf16>
    %cst = arith.constant dense<0.000000e+00> : vector<512x128xf32>
    %6 = tpu.matmul %3, %5, %cst {dimension_numbers = #tpu.dot_dimension_numbers<[1], [0], [0], [1], [0, 0, 1, 1], [], []>} : vector<512x384xbf16>, vector<384x128xbf16>, vector<512x128xf32> -> vector<512x128xf32>
    %7 = vector.extract_strided_slice %1 {offsets = [1, 0, 0], sizes = [16, 32, 384], strides = [1, 1, 1]} : vector<18x32x384xbf16> to vector<16x32x384xbf16>
    %8 = vector.shape_cast %7 : vector<16x32x384xbf16> to vector<512x384xbf16>
    %c1 = arith.constant 1 : index
    %c0_6 = arith.constant 0 : index
    %c0_7 = arith.constant 0 : index
    %9 = vector.load %arg3[%c1, %c0_6, %c0_7] : memref<3x384x128xbf16, #tpu.memory_space<vmem>>, vector<1x384x128xbf16>
    %10 = vector.shape_cast %9 : vector<1x384x128xbf16> to vector<384x128xbf16>
    %cst_8 = arith.constant dense<0.000000e+00> : vector<512x128xf32>
    %11 = tpu.matmul %8, %10, %cst_8 {dimension_numbers = #tpu.dot_dimension_numbers<[1], [0], [0], [1], [0, 0, 1, 1], [], []>} : vector<512x384xbf16>, vector<384x128xbf16>, vector<512x128xf32> -> vector<512x128xf32>
    %12 = arith.addf %6, %11 : vector<512x128xf32>
    %13 = vector.extract_strided_slice %1 {offsets = [2, 0, 0], sizes = [16, 32, 384], strides = [1, 1, 1]} : vector<18x32x384xbf16> to vector<16x32x384xbf16>
    %14 = vector.shape_cast %13 : vector<16x32x384xbf16> to vector<512x384xbf16>
    %c2 = arith.constant 2 : index
    %c0_9 = arith.constant 0 : index
    %c0_10 = arith.constant 0 : index
    %15 = vector.load %arg3[%c2, %c0_9, %c0_10] : memref<3x384x128xbf16, #tpu.memory_space<vmem>>, vector<1x384x128xbf16>
    %16 = vector.shape_cast %15 : vector<1x384x128xbf16> to vector<384x128xbf16>
    %cst_11 = arith.constant dense<0.000000e+00> : vector<512x128xf32>
    %17 = tpu.matmul %14, %16, %cst_11 {dimension_numbers = #tpu.dot_dimension_numbers<[1], [0], [0], [1], [0, 0, 1, 1], [], []>} : vector<512x384xbf16>, vector<384x128xbf16>, vector<512x128xf32> -> vector<512x128xf32>
    %18 = arith.addf %12, %17 : vector<512x128xf32>
    %c0_12 = arith.constant 0 : index
    %c0_13 = arith.constant 0 : index
    %19 = vector.load %arg4[%c0_12, %c0_13] : memref<1x128xf32, #tpu.memory_space<vmem>>, vector<1x128xf32>
    %20 = vector.broadcast %19 : vector<1x128xf32> to vector<512x128xf32>
    %21 = arith.mulf %18, %20 : vector<512x128xf32>
    %c0_14 = arith.constant 0 : index
    %c0_15 = arith.constant 0 : index
    %22 = vector.load %arg5[%c0_14, %c0_15] : memref<1x128xf32, #tpu.memory_space<vmem>>, vector<1x128xf32>
    %23 = vector.broadcast %22 : vector<1x128xf32> to vector<512x128xf32>
    %24 = arith.addf %21, %23 : vector<512x128xf32>
    %cst_16 = arith.constant 0.000000e+00 : f32
    %25 = vector.broadcast %cst_16 : f32 to vector<512x128xf32>
    %26 = arith.maximumf %24, %25 : vector<512x128xf32>
    %27 = vector.shape_cast %26 : vector<512x128xf32> to vector<16x32x128xf32>
    %28 = arith.truncf %27 : vector<16x32x128xf32> to vector<16x32x128xbf16>
    %c0_17 = arith.constant 0 : index
    %c0_18 = arith.constant 0 : index
    %c0_19 = arith.constant 0 : index
    %29 = vector.load %arg6[%c0_17, %c0_18, %c0_19] : memref<16x32x128xbf16, #tpu.memory_space<vmem>>, vector<16x32x128xbf16>
    tpu.vector_store %arg6[%c0_17, %c0_18, %c0_19], %28 {strides = array<i32>} : memref<16x32x128xbf16, #tpu.memory_space<vmem>>, vector<16x32x128xbf16>,
    return
  }
  func.func @transform_0(%arg0: i32, %arg1: i32) -> (i32, i32, i32, i32) {
    %c0_i32 = arith.constant 0 : i32
    %c0_i32_0 = arith.constant 0 : i32
    %c0_i32_1 = arith.constant 0 : i32
    %c0_i32_2 = arith.constant 0 : i32
    return %arg0, %c0_i32, %c0_i32_0, %c0_i32_1 : i32, i32, i32, i32
  }
  func.func @transform_1(%arg0: i32, %arg1: i32) -> (i32, i32, i32) {
    %c0_i32 = arith.constant 0 : i32
    %c0_i32_0 = arith.constant 0 : i32
    %c0_i32_1 = arith.constant 0 : i32
    return %c0_i32, %c0_i32_0, %arg1 : i32, i32, i32
  }
  func.func @transform_2(%arg0: i32, %arg1: i32) -> (i32, i32) {
    %c0_i32 = arith.constant 0 : i32
    %c0_i32_0 = arith.constant 0 : i32
    return %c0_i32, %arg1 : i32, i32
  }
  func.func @transform_3(%arg0: i32, %arg1: i32) -> (i32, i32) {
    %c0_i32 = arith.constant 0 : i32
    %c0_i32_0 = arith.constant 0 : i32
    return %c0_i32, %arg1 : i32, i32
  }
  func.func @transform_4(%arg0: i32, %arg1: i32) -> (i32, i32, i32) {
    %c0_i32 = arith.constant 0 : i32
    %c0_i32_0 = arith.constant 0 : i32
    return %arg0, %c0_i32, %arg1 : i32, i32, i32
  }
}

module attributes {stable_mosaic.version = 11 : i64} {
  func.func @kernel(%arg0: i32, %arg1: i32, %arg2: memref<1x17x16x384xbf16, #tpu.memory_space<vmem>>, %arg3: memref<3x384x128xbf16, #tpu.memory_space<vmem>>, %arg4: memref<1x128xf32, #tpu.memory_space<vmem>>, %arg5: memref<1x128xf32, #tpu.memory_space<vmem>>, %arg6: memref<8x16x128xf32, #tpu.memory_space<vmem>>) attributes {dimension_semantics = [#tpu.dimension_semantics<parallel>, #tpu.dimension_semantics<parallel>], iteration_bounds = array<i64: 1, 1>, scalar_prefetch = 0 : i64, scratch_operands = 0 : i64, tpu.core_type = #tpu.core_type<tc>, window_params = [{transform_indices = @transform_0, window_bounds = array<i64: 1, 17, 16, 384>}, {transform_indices = @transform_1, window_bounds = array<i64: 3, 384, 128>}, {transform_indices = @transform_2, window_bounds = array<i64: 1, 128>}, {transform_indices = @transform_3, window_bounds = array<i64: 1, 128>}, {transform_indices = @transform_4, window_bounds = array<i64: 8, 16, 128>}]} {
    %c0 = arith.constant 0 : index
    %c0_0 = arith.constant 0 : index
    %c0_1 = arith.constant 0 : index
    %c0_2 = arith.constant 0 : index
    %0 = vector.load %arg2[%c0, %c0_0, %c0_1, %c0_2] : memref<1x17x16x384xbf16, #tpu.memory_space<vmem>>, vector<1x17x16x384xbf16>
    %1 = vector.shape_cast %0 : vector<1x17x16x384xbf16> to vector<17x16x384xbf16>
    %2 = vector.extract_strided_slice %1 {offsets = [0, 0, 0], sizes = [8, 16, 384], strides = [1, 1, 1]} : vector<17x16x384xbf16> to vector<8x16x384xbf16>
    %3 = vector.shape_cast %2 : vector<8x16x384xbf16> to vector<128x384xbf16>
    %c0_3 = arith.constant 0 : index
    %c0_4 = arith.constant 0 : index
    %c0_5 = arith.constant 0 : index
    %4 = vector.load %arg3[%c0_3, %c0_4, %c0_5] : memref<3x384x128xbf16, #tpu.memory_space<vmem>>, vector<1x384x128xbf16>
    %5 = vector.shape_cast %4 : vector<1x384x128xbf16> to vector<384x128xbf16>
    %cst = arith.constant dense<0.000000e+00> : vector<128x128xf32>
    %6 = tpu.matmul %3, %5, %cst {dimension_numbers = #tpu.dot_dimension_numbers<[1], [0], [0], [1], [0, 0, 1, 1], [], []>} : vector<128x384xbf16>, vector<384x128xbf16>, vector<128x128xf32> -> vector<128x128xf32>
    %7 = vector.extract_strided_slice %1 {offsets = [9, 0, 0], sizes = [8, 16, 384], strides = [1, 1, 1]} : vector<17x16x384xbf16> to vector<8x16x384xbf16>
    %8 = vector.shape_cast %7 : vector<8x16x384xbf16> to vector<128x384xbf16>
    %c1 = arith.constant 1 : index
    %c0_6 = arith.constant 0 : index
    %c0_7 = arith.constant 0 : index
    %9 = vector.load %arg3[%c1, %c0_6, %c0_7] : memref<3x384x128xbf16, #tpu.memory_space<vmem>>, vector<1x384x128xbf16>
    %10 = vector.shape_cast %9 : vector<1x384x128xbf16> to vector<384x128xbf16>
    %cst_8 = arith.constant dense<0.000000e+00> : vector<128x128xf32>
    %11 = tpu.matmul %8, %10, %cst_8 {dimension_numbers = #tpu.dot_dimension_numbers<[1], [0], [0], [1], [0, 0, 1, 1], [], []>} : vector<128x384xbf16>, vector<384x128xbf16>, vector<128x128xf32> -> vector<128x128xf32>
    %12 = arith.addf %6, %11 : vector<128x128xf32>
    %13 = vector.extract_strided_slice %1 {offsets = [1, 0, 0], sizes = [8, 16, 384], strides = [1, 1, 1]} : vector<17x16x384xbf16> to vector<8x16x384xbf16>
    %14 = vector.shape_cast %13 : vector<8x16x384xbf16> to vector<128x384xbf16>
    %c2 = arith.constant 2 : index
    %c0_9 = arith.constant 0 : index
    %c0_10 = arith.constant 0 : index
    %15 = vector.load %arg3[%c2, %c0_9, %c0_10] : memref<3x384x128xbf16, #tpu.memory_space<vmem>>, vector<1x384x128xbf16>
    %16 = vector.shape_cast %15 : vector<1x384x128xbf16> to vector<384x128xbf16>
    %cst_11 = arith.constant dense<0.000000e+00> : vector<128x128xf32>
    %17 = tpu.matmul %14, %16, %cst_11 {dimension_numbers = #tpu.dot_dimension_numbers<[1], [0], [0], [1], [0, 0, 1, 1], [], []>} : vector<128x384xbf16>, vector<384x128xbf16>, vector<128x128xf32> -> vector<128x128xf32>
    %18 = arith.addf %12, %17 : vector<128x128xf32>
    %c0_12 = arith.constant 0 : index
    %c0_13 = arith.constant 0 : index
    %19 = vector.load %arg4[%c0_12, %c0_13] : memref<1x128xf32, #tpu.memory_space<vmem>>, vector<1x128xf32>
    %20 = vector.broadcast %19 : vector<1x128xf32> to vector<128x128xf32>
    %21 = arith.mulf %18, %20 : vector<128x128xf32>
    %c0_14 = arith.constant 0 : index
    %c0_15 = arith.constant 0 : index
    %22 = vector.load %arg5[%c0_14, %c0_15] : memref<1x128xf32, #tpu.memory_space<vmem>>, vector<1x128xf32>
    %23 = vector.broadcast %22 : vector<1x128xf32> to vector<128x128xf32>
    %24 = arith.addf %21, %23 : vector<128x128xf32>
    %cst_16 = arith.constant 0.000000e+00 : f32
    %25 = vector.broadcast %cst_16 : f32 to vector<128x128xf32>
    %26 = arith.maximumf %24, %25 : vector<128x128xf32>
    %27 = vector.shape_cast %26 : vector<128x128xf32> to vector<8x16x128xf32>
    %c0_17 = arith.constant 0 : index
    %c0_18 = arith.constant 0 : index
    %c0_19 = arith.constant 0 : index
    %28 = vector.load %arg6[%c0_17, %c0_18, %c0_19] : memref<8x16x128xf32, #tpu.memory_space<vmem>>, vector<8x16x128xf32>
    tpu.vector_store %arg6[%c0_17, %c0_18, %c0_19], %27 {strides = array<i32>} : memref<8x16x128xf32, #tpu.memory_space<vmem>>, vector<8x16x128xf32>,
    return
  }
  func.func @transform_0(%arg0: i32, %arg1: i32) -> (i32, i32, i32, i32) {
    %c0_i32 = arith.constant 0 : i32
    %c0_i32_0 = arith.constant 0 : i32
    %c0_i32_1 = arith.constant 0 : i32
    %c0_i32_2 = arith.constant 0 : i32
    return %arg0, %c0_i32, %c0_i32_0, %c0_i32_1 : i32, i32, i32, i32
  }
  func.func @transform_1(%arg0: i32, %arg1: i32) -> (i32, i32, i32) {
    %c0_i32 = arith.constant 0 : i32
    %c0_i32_0 = arith.constant 0 : i32
    %c0_i32_1 = arith.constant 0 : i32
    return %c0_i32, %c0_i32_0, %arg1 : i32, i32, i32
  }
  func.func @transform_2(%arg0: i32, %arg1: i32) -> (i32, i32) {
    %c0_i32 = arith.constant 0 : i32
    %c0_i32_0 = arith.constant 0 : i32
    return %c0_i32, %arg1 : i32, i32
  }
  func.func @transform_3(%arg0: i32, %arg1: i32) -> (i32, i32) {
    %c0_i32 = arith.constant 0 : i32
    %c0_i32_0 = arith.constant 0 : i32
    return %c0_i32, %arg1 : i32, i32
  }
  func.func @transform_4(%arg0: i32, %arg1: i32) -> (i32, i32, i32) {
    %c0_i32 = arith.constant 0 : i32
    %c0_i32_0 = arith.constant 0 : i32
    return %arg0, %c0_i32, %arg1 : i32, i32, i32
  }
}

</mosaic_0001>

<bundles_post_ra>
// kernel: inception_through.9
= control target key start
LH: loop header
LB: loop body
LE: loop exit
PB: predicated region body
PF: predicated region fallthrough
CT: control target
= control target key end

     0   :  { %s408_s12 = smov 0   ;;  %s432_s0 = inlined_call_operand.vmem [shape: f32[18,2,8,8], index: 0, kind: input, shape index: {}, may-alias: {0,1,2}]   ;;  %s433_s1 = inlined_call_operand.vmem [shape: f32[18,2,8,8], index: 1, kind: input, shape index: {}, may-alias: {0,1,2}]   ;;  %s434_s2 = inlined_call_operand.vmem [shape: f32[18,2,8,8], index: 2, kind: input, shape index: {}, may-alias: {0,1,2}]   ;;  %s435_s3 = inlined_call_operand.vmem [shape: f32[8,2,8,8], index: 3, kind: output, shape index: {}]  }
   0x1 LB: > { %s338_s13 = sadd.s32 4294967295, %s386_s12   ;;  %p348_p0 = scmp.ge.s32.totalorder %s386_s12, 1  ;;  %s386_s12 = sphi %s408_s12, %s13_s12  }
   0x2   : > { %p177_p1 = scmp.lt.s32.totalorder %s386_s12, 9 }
   0x4   : > { %p178_p2 = pnand %p348_p0, %p177_p1 }
   0x5   : > { %s349_s14 = sshll.u32 (!%p178_p2), %s338_s13, 1  ;;  %p241_p3 = scmp.lt.s32.totalorder (!%p178_p2), %s338_s13, 7 }
   0x6   : > { %181 = sbr.rel (%p178_p2) target bundleno = 21 (0x15), region = 32  ;;  %p217_p4 = scmp.lt.s32.totalorder (!%p178_p2), %s349_s14, 17 }
   0x7   : > { %s224_s15 = sadd.s32 (!%p178_p2), 1, %s349_s14  ;;  %s233_s16 = sadd.s32 (!%p178_p2), 2, %s349_s14 }
   0x8   : > { %p225_p5 = scmp.lt.s32.totalorder (!%p178_p2), %s224_s15, 17  ;;  %p234_p6 = scmp.lt.s32.totalorder (!%p178_p2), %s233_s16, 17 }
   0xb   : > { %s437_s14 = smov (!%p217_p4, %s349_s14), 17  ;;  %s439_s15 = smov (!%p225_p5, %s224_s15), 17  ;;  %vm256_vm0 = vcmask 64512  }
   0xc   : > { %s368_s17 = sshll.u32 %s437_s14, 4  ;;  %s369_s21 = sshll.u32 %s439_s15, 4 }
   0xd   : > { %s221_s20 = scalar_lea.vmem %s432_s0, %s368_s17  ;;  %s229_s24 = scalar_lea.vmem %s433_s1, %s369_s21 }
   0xe   : > { %v246_v0 = vld [vmem:[%s221_s20] sm:$0xff]  ;;  %v247_v1 = vld [vmem:[%s221_s20 + $0x8] sm:$0xff]  ;;  %s441_s16 = smov (!%p234_p6, %s233_s16), 17  ;;  %s443_s13 = smov (!%p241_p3, %s338_s13), 7 }
   0xf   : > { %v248_v2 = vld [vmem:[%s229_s24] sm:$0xff]  ;;  %v249_v3 = vld [vmem:[%s229_s24 + $0x8] sm:$0xff]  ;;  %s370_s25 = sshll.u32 %s441_s16, 4  ;;  %s371_s29 = sshll.u32 %s443_s13, 4 }
  0x10   : > { %v250_v4 = vmax.f32 %v246_v0, %v248_v2  ;;  %v251_v5 = vmax.f32 %v247_v1, %v249_v3  ;;  %s238_s28 = scalar_lea.vmem %s434_s2, %s370_s25  ;;  %s245_s5 = scalar_lea.vmem %s435_s3, %s371_s29 }
  0x11   : > { %v252_v6 = vld [vmem:[%s238_s28] sm:$0xff]  ;;  %v253_v7 = vld [vmem:[%s238_s28 + $0x8] sm:$0xff] }
  0x12   : > { %v254_v8 = vmax.f32 %v250_v4, %v252_v6  ;;  %v255_v9 = vmax.f32 %v251_v5, %v253_v7 }
  0x14   : > { %257 = vst.msk [vmem:[%s245_s5] sm:$0xff] %vm256_vm0, %v254_v8  ;;  %258 = vst.msk [vmem:[%s245_s5 + $0x8] sm:$0xff] %vm256_vm0, %v255_v9 }
  0x15 PF: > { %s13_s12 = sadd.s32 1, %s386_s12  }
  0x16   : > { %p10_p7 = scmp.ge.s32.totalorder %s13_s12, 10  }
  0x18   :  { %12 = sbr.rel (!%p10_p7) target bundleno = 1 (0x1), region = 68 }

// kernel: inception_through.5
= control target key start
LH: loop header
LB: loop body
LE: loop exit
PB: predicated region body
PF: predicated region fallthrough
CT: control target
= control target key end

     0   :  { %s2073_s1 = inlined_call_operand.vmem [shape: bf16[1,128,128], index: 1, kind: input, shape index: {}]   ;;  %s2074_s0 = inlined_call_operand.vmem [shape: bf16[1,16,32,128], index: 0, kind: input, shape index: {}]   ;;  %s2075_s2 = inlined_call_operand.vmem [shape: f32[1,128], index: 2, kind: input, shape index: {}]   ;;  %s2076_s3 = inlined_call_operand.vmem [shape: f32[1,128], index: 3, kind: input, shape index: {}]   ;;  %s2077_s4 = inlined_call_operand.vmem [shape: bf16[16,32,128], index: 4, kind: output, shape index: {}]  }
   0x1   :  { %v1654_v0 = vld [vmem:[%s2073_s1 + $0x38] sm:$0xff]   ;;  %v1655_v1 = vld [vmem:[%s2073_s1 + $0x30] sm:$0xff]   ;;  %v1656_v2 = vld [vmem:[%s2073_s1 + $0x28] sm:$0xff]  }
   0x2   :  { %1558 = vmatprep.subr.bf16.mxu0 %v1654_v0  ;;  %1638 = vmatprep.subr.bf16.mxu1 %v1654_v0  ;;  %v1657_v3 = vld [vmem:[%s2073_s1 + $0x20] sm:$0xff]   ;;  %v1658_v6 = vld [vmem:[%s2073_s1 + $0x18] sm:$0xff]   ;;  %v1659_v7 = vld [vmem:[%s2073_s1 + $0x10] sm:$0xff]  }
   0x3   :  { %1559 = vmatpush3.bf16.msra.mxu0 %v1654_v0  ;;  %1646 = vmatpush3.bf16.msra.mxu1 %v1654_v0  ;;  %v1662_v4 = vld [vmem:[%s2074_s0] sm:$0xff]   ;;  %v1660_v8 = vld [vmem:[%s2073_s1 + $0x8] sm:$0xff]   ;;  %v1666_v12 = vld [vmem:[%s2074_s0 + $0x10] sm:$0xff]  }
   0x4   :  { %1560 = vmatprep.subr.bf16.mxu0 %v1655_v1  ;;  %1639 = vmatprep.subr.bf16.mxu1 %v1655_v1  ;;  %v1663_v5 = vld [vmem:[%s2074_s0 + $0x80] sm:$0xff]   ;;  %v1664_v10 = vld [vmem:[%s2074_s0 + $0x8] sm:$0xff]   ;;  %v1667_v13 = vld [vmem:[%s2074_s0 + $0x90] sm:$0xff]  }
   0x5   :  { %1574 = vmatprep.mubr.bf16.mxu0 %v1662_v4  ;;  %1606 = vmatprep.mubr.bf16.mxu1 %v1663_v5  ;;  %v1661_v9 = vld [vmem:[%s2073_s1] sm:$0xff]   ;;  %v1665_v11 = vld [vmem:[%s2074_s0 + $0x88] sm:$0xff]   ;;  %v1668_v14 = vld [vmem:[%s2074_s0 + $0x18] sm:$0xff]  }
   0x6   :  { %v1669_v15 = vld [vmem:[%s2074_s0 + $0x98] sm:$0xff]   ;;  %v1670_v16 = vld [vmem:[%s2074_s0 + $0x20] sm:$0xff]   ;;  %v1672_v18 = vld [vmem:[%s2074_s0 + $0x28] sm:$0xff]  }
   0x7   :  { %1561 = vmatpush3.bf16.msra.mxu0 %v1655_v1  ;;  %1647 = vmatpush3.bf16.msra.mxu1 %v1655_v1  ;;  %v1671_v17 = vld [vmem:[%s2074_s0 + $0xa0] sm:$0xff]   ;;  %v1673_v19 = vld [vmem:[%s2074_s0 + $0xa8] sm:$0xff]   ;;  %v1674_v20 = vld [vmem:[%s2074_s0 + $0x30] sm:$0xff]  }
   0x8   :  { %1562 = vmatprep.subr.bf16.mxu0 %v1656_v2  ;;  %1640 = vmatprep.subr.bf16.mxu1 %v1656_v2  ;;  %v1675_v21 = vld [vmem:[%s2074_s0 + $0xb0] sm:$0xff]   ;;  %v1676_v22 = vld [vmem:[%s2074_s0 + $0x38] sm:$0xff]   ;;  %v1678_v24 = vld [vmem:[%s2074_s0 + $0x40] sm:$0xff]  }
   0x9   :  { %v1677_v23 = vld [vmem:[%s2074_s0 + $0xb8] sm:$0xff]   ;;  %v1679_v25 = vld [vmem:[%s2074_s0 + $0xc0] sm:$0xff]   ;;  %v1680_v26 = vld [vmem:[%s2074_s0 + $0x48] sm:$0xff]  }
   0xa   :  { %v1681_v27 = vld [vmem:[%s2074_s0 + $0xc8] sm:$0xff]   ;;  %v1682_v28 = vld [vmem:[%s2074_s0 + $0x50] sm:$0xff]   ;;  %v1684_v30 = vld [vmem:[%s2074_s0 + $0x58] sm:$0xff]  }
   0xb   :  { %1563 = vmatpush3.bf16.msra.mxu0 %v1656_v2  ;;  %1648 = vmatpush3.bf16.msra.mxu1 %v1656_v2  ;;  %v1683_v29 = vld [vmem:[%s2074_s0 + $0xd0] sm:$0xff]   ;;  %v1685_v31 = vld [vmem:[%s2074_s0 + $0xd8] sm:$0xff]   ;;  %v1686_v32 = vld [vmem:[%s2074_s0 + $0x60] sm:$0xff]  }
   0xc   :  { %1564 = vmatprep.subr.bf16.mxu0 %v1657_v3  ;;  %1641 = vmatprep.subr.bf16.mxu1 %v1657_v3  ;;  %v1687_v33 = vld [vmem:[%s2074_s0 + $0xe0] sm:$0xff]   ;;  %v1688_v34 = vld [vmem:[%s2074_s0 + $0x68] sm:$0xff]   ;;  %v1690_v36 = vld [vmem:[%s2074_s0 + $0x70] sm:$0xff]  }
   0xd   :  { %v1689_v35 = vld [vmem:[%s2074_s0 + $0xe8] sm:$0xff]   ;;  %v1691_v37 = vld [vmem:[%s2074_s0 + $0xf0] sm:$0xff]   ;;  %v1692_v38 = vld [vmem:[%s2074_s0 + $0x78] sm:$0xff]  }
   0xe   :  { %v1693_v39 = vld [vmem:[%s2074_s0 + $0xf8] sm:$0xff]   ;;  %v1842_v40 = vld [vmem:[%s2075_s2] ss:$0 sm:$0xff] }
   0xf   :  { %1565 = vmatpush3.bf16.msra.mxu0 %v1657_v3  ;;  %1649 = vmatpush3.bf16.msra.mxu1 %v1657_v3  ;;  %v1849_v45 = vld [vmem:[%s2076_s3] ss:$0 sm:$0xff] }
  0x10   :  { %1566 = vmatprep.subr.bf16.mxu0 %v1658_v6  ;;  %1642 = vmatprep.subr.bf16.mxu1 %v1658_v6 }
  0x13   :  { %1567 = vmatpush3.bf16.msra.mxu0 %v1658_v6  ;;  %1650 = vmatpush3.bf16.msra.mxu1 %v1658_v6 }
  0x14   :  { %1568 = vmatprep.subr.bf16.mxu0 %v1659_v7  ;;  %1643 = vmatprep.subr.bf16.mxu1 %v1659_v7 }
  0x17   :  { %1569 = vmatpush3.bf16.msra.mxu0 %v1659_v7  ;;  %1651 = vmatpush3.bf16.msra.mxu1 %v1659_v7 }
  0x18   :  { %1570 = vmatprep.subr.bf16.mxu0 %v1660_v8  ;;  %1644 = vmatprep.subr.bf16.mxu1 %v1660_v8 }
  0x1b   :  { %1571 = vmatpush3.bf16.msra.mxu0 %v1660_v8  ;;  %1652 = vmatpush3.bf16.msra.mxu1 %v1660_v8 }
  0x1c   :  { %1572 = vmatprep.subr.bf16.mxu0 %v1661_v9  ;;  %1645 = vmatprep.subr.bf16.mxu1 %v1661_v9 }
  0x1f   :  { %1573 = vmatpush3.bf16.msra.mxu0 %v1661_v9  ;;  %1653 = vmatpush3.bf16.msra.mxu1 %v1661_v9 }
  0x22   :  { %1575 = vmatmul.mubr.bf16.vlgmr.msra.gmra.mxu0 %v1664_v10  ;;  %1607 = vmatmul.mubr.bf16.vlgmr.msra.gmra.mxu1 %v1665_v11 }
  0x23   :  { %1578 = vmatprep.mubr.bf16.mxu0 %v1666_v12  ;;  %1610 = vmatprep.mubr.bf16.mxu1 %v1667_v13 }
  0x2a   :  { %1579 = vmatmul.mubr.bf16.gmra.mxu0 %v1668_v14  ;;  %1611 = vmatmul.mubr.bf16.gmra.mxu1 %v1669_v15 }
  0x2b   :  { %1582 = vmatprep.mubr.bf16.mxu0 %v1670_v16  ;;  %1614 = vmatprep.mubr.bf16.mxu1 %v1671_v17 }
  0x32   :  { %1583 = vmatmul.mubr.bf16.gmra.mxu0 %v1672_v18  ;;  %1615 = vmatmul.mubr.bf16.gmra.mxu1 %v1673_v19 }
  0x33   :  { %1586 = vmatprep.mubr.bf16.mxu0 %v1674_v20  ;;  %1618 = vmatprep.mubr.bf16.mxu1 %v1675_v21 }
  0x3a   :  { %1587 = vmatmul.mubr.bf16.gmra.mxu0 %v1676_v22  ;;  %1619 = vmatmul.mubr.bf16.gmra.mxu1 %v1677_v23 }
  0x3b   :  { %1590 = vmatprep.mubr.bf16.mxu0 %v1678_v24  ;;  %1622 = vmatprep.mubr.bf16.mxu1 %v1679_v25 }
  0x42   :  { %1591 = vmatmul.mubr.bf16.gmra.mxu0 %v1680_v26  ;;  %1623 = vmatmul.mubr.bf16.gmra.mxu1 %v1681_v27 }
  0x43   :  { %1594 = vmatprep.mubr.bf16.mxu0 %v1682_v28  ;;  %1626 = vmatprep.mubr.bf16.mxu1 %v1683_v29 }
  0x4a   :  { %1595 = vmatmul.mubr.bf16.gmra.mxu0 %v1684_v30  ;;  %1627 = vmatmul.mubr.bf16.gmra.mxu1 %v1685_v31 }
  0x4b   :  { %1598 = vmatprep.mubr.bf16.mxu0 %v1686_v32  ;;  %1630 = vmatprep.mubr.bf16.mxu1 %v1687_v33 }
  0x52   :  { %1599 = vmatmul.mubr.bf16.gmra.mxu0 %v1688_v34  ;;  %1631 = vmatmul.mubr.bf16.gmra.mxu1 %v1689_v35 }
  0x53   :  { %1602 = vmatprep.mubr.bf16.mxu0 %v1690_v36  ;;  %1634 = vmatprep.mubr.bf16.mxu1 %v1691_v37 }
  0x5a   :  { %1603 = vmatmul.mubr.bf16.gmra.mxu0 %v1692_v38  ;;  %1635 = vmatmul.mubr.bf16.gmra.mxu1 %v1693_v39 }
  0xe2   :  { %v1576_v41 = vpop.f32.mrf.mxu0  ;;  %v1608_v42 = vpop.f32.mrf.mxu1 }
  0xe3   :  { %v636_v43 = vmul.f32 %v1576_v41, %v1842_v40  ;;  %v668_v44 = vmul.f32 %v1608_v42, %v1842_v40 }
  0xe4   :  { %v372_v46 = vpop.f32.mrf.mxu0  ;;  %v500_v47 = vpop.f32.mrf.mxu1 }
  0xe5   :  { %v634_v48 = vmul.f32 %v1842_v40, %v372_v46  ;;  %v666_v49 = vmul.f32 %v1842_v40, %v500_v47  ;;  %v707_v52 = vadd.f32 %v1849_v45, %v636_v43  ;;  %v739_v53 = vadd.f32 %v1849_v45, %v668_v44 }
  0xe6   :  { %v1577_v50 = vpop.f32.mrf.mxu0  ;;  %v1609_v51 = vpop.f32.mrf.mxu1 }
  0xe7   :  { %v637_v54 = vmul.f32 %v1577_v50, %v1842_v40  ;;  %v669_v55 = vmul.f32 %v1609_v51, %v1842_v40  ;;  %v705_v58 = vadd.f32 %v1849_v45, %v634_v48  ;;  %v737_v59 = vadd.f32 %v1849_v45, %v666_v49 }
  0xe8   :  { %v375_v56 = vpop.f32.mrf.mxu0  ;;  %v503_v57 = vpop.f32.mrf.mxu1  ;;  %v771_v2 = vmax.f32 %v707_v52, 0.0  ;;  %v803_v3 = vmax.f32 %v739_v53, 0.0 }
  0xe9   :  { %v635_v60 = vmul.f32 %v1842_v40, %v375_v56  ;;  %v667_v61 = vmul.f32 %v1842_v40, %v503_v57  ;;  %v708_v62 = vadd.f32 %v1849_v45, %v637_v54  ;;  %v740_v63 = vadd.f32 %v1849_v45, %v669_v55 }
  0xea   :  { %v1580_v0 = vpop.f32.mrf.mxu0  ;;  %v1612_v1 = vpop.f32.mrf.mxu1  ;;  %v769_v12 = vmax.f32 %v705_v58, 0.0  ;;  %v801_v13 = vmax.f32 %v737_v59, 0.0 }
  0xeb   :  { %v706_v4 = vadd.f32 %v1849_v45, %v635_v60  ;;  %v738_v5 = vadd.f32 %v1849_v45, %v667_v61  ;;  %v772_v6 = vmax.f32 %v708_v62, 0.0  ;;  %v804_v7 = vmax.f32 %v740_v63, 0.0 }
  0xec   :  { %v640_v8 = vmul.f32 %v1580_v0, %v1842_v40  ;;  %v672_v9 = vmul.f32 %v1612_v1, %v1842_v40  ;;  %v388_v10 = vpop.f32.mrf.mxu0  ;;  %v516_v11 = vpop.f32.mrf.mxu1 }
  0xed   :  { %v770_v14 = vmax.f32 %v706_v4, 0.0  ;;  %v802_v15 = vmax.f32 %v738_v5, 0.0  ;;  %v1335_v16 = vpack.c.bf16 %v772_v6, %v771_v2  ;;  %v1415_v17 = vpack.c.bf16 %v804_v7, %v803_v3 }
  0xee   :  { %v638_v18 = vmul.f32 %v1842_v40, %v388_v10  ;;  %v670_v19 = vmul.f32 %v1842_v40, %v516_v11  ;;  %v1581_v20 = vpop.f32.mrf.mxu0  ;;  %v1613_v21 = vpop.f32.mrf.mxu1  ;;  %v711_v24 = vadd.f32 %v1849_v45, %v640_v8  ;;  %v743_v25 = vadd.f32 %v1849_v45, %v672_v9 }
  0xef   :  { %v1330_v22 = vpack.c.bf16 %v770_v14, %v769_v12  ;;  %v1410_v23 = vpack.c.bf16 %v802_v15, %v801_v13  ;;  %1487 = vst [vmem:[%s2077_s4 + $0x8] sm:$0xff] %v1335_v16   ;;  %1503 = vst [vmem:[%s2077_s4 + $0x88] sm:$0xff] %v1415_v17   ;;  %v641_v26 = vmul.f32 %v1581_v20, %v1842_v40 }
  0xf0   :  { %v673_v27 = vmul.f32 %v1613_v21, %v1842_v40  ;;  %v391_v28 = vpop.f32.mrf.mxu0  ;;  %v519_v29 = vpop.f32.mrf.mxu1  ;;  %v709_v30 = vadd.f32 %v1849_v45, %v638_v18  ;;  %v741_v31 = vadd.f32 %v1849_v45, %v670_v19  ;;  %v775_v43 = vmax.f32 %v711_v24, 0.0 }
  0xf1   :  { %1331 = vst [vmem:[%s2077_s4] sm:$0xff] %v1330_v22   ;;  %1502 = vst [vmem:[%s2077_s4 + $0x80] sm:$0xff] %v1410_v23   ;;  %v639_v32 = vmul.f32 %v1842_v40, %v391_v28  ;;  %v671_v33 = vmul.f32 %v1842_v40, %v519_v29  ;;  %v712_v34 = vadd.f32 %v1849_v45, %v641_v26  ;;  %v807_v44 = vmax.f32 %v743_v25, 0.0 }
  0xf2   :  { %v744_v35 = vadd.f32 %v1849_v45, %v673_v27  ;;  %v1584_v36 = vpop.f32.mrf.mxu0  ;;  %v1616_v37 = vpop.f32.mrf.mxu1  ;;  %v773_v50 = vmax.f32 %v709_v30, 0.0  ;;  %v805_v51 = vmax.f32 %v741_v31, 0.0 }
  0xf3   :  { %v710_v38 = vadd.f32 %v1849_v45, %v639_v32  ;;  %v742_v39 = vadd.f32 %v1849_v45, %v671_v33  ;;  %v644_v41 = vmul.f32 %v1584_v36, %v1842_v40  ;;  %v676_v42 = vmul.f32 %v1616_v37, %v1842_v40 }
  0xf4   :  { %v776_v46 = vmax.f32 %v712_v34, 0.0  ;;  %v808_v47 = vmax.f32 %v744_v35, 0.0  ;;  %v404_v48 = vpop.f32.mrf.mxu0  ;;  %v532_v49 = vpop.f32.mrf.mxu1 }
  0xf5   :  { %v774_v52 = vmax.f32 %v710_v38, 0.0  ;;  %v806_v53 = vmax.f32 %v742_v39, 0.0  ;;  %v642_v56 = vmul.f32 %v1842_v40, %v404_v48  ;;  %v674_v57 = vmul.f32 %v1842_v40, %v532_v49 }
  0xf6   :  { %v1345_v54 = vpack.c.bf16 %v776_v46, %v775_v43  ;;  %v1425_v55 = vpack.c.bf16 %v808_v47, %v807_v44  ;;  %v1585_v58 = vpop.f32.mrf.mxu0  ;;  %v1617_v59 = vpop.f32.mrf.mxu1  ;;  %v715_v62 = vadd.f32 %v1849_v45, %v644_v41  ;;  %v747_v63 = vadd.f32 %v1849_v45, %v676_v42 }
  0xf7   :  { %v1340_v60 = vpack.c.bf16 %v774_v52, %v773_v50  ;;  %v1420_v61 = vpack.c.bf16 %v806_v53, %v805_v51  ;;  %v645_v0 = vmul.f32 %v1585_v58, %v1842_v40  ;;  %v677_v1 = vmul.f32 %v1617_v59, %v1842_v40 }
  0xf8   :  { %1489 = vst [vmem:[%s2077_s4 + $0x18] sm:$0xff] %v1345_v54   ;;  %1505 = vst [vmem:[%s2077_s4 + $0x98] sm:$0xff] %v1425_v55   ;;  %v407_v2 = vpop.f32.mrf.mxu0  ;;  %v535_v3 = vpop.f32.mrf.mxu1  ;;  %v713_v4 = vadd.f32 %v1849_v45, %v642_v56  ;;  %v745_v5 = vadd.f32 %v1849_v45, %v674_v57  ;;  %v779_v12 = vmax.f32 %v715_v62, 0.0  ;;  %v811_v13 = vmax.f32 %v747_v63, 0.0 }
  0xf9   :  { %1488 = vst [vmem:[%s2077_s4 + $0x10] sm:$0xff] %v1340_v60   ;;  %1504 = vst [vmem:[%s2077_s4 + $0x90] sm:$0xff] %v1420_v61   ;;  %v643_v6 = vmul.f32 %v1842_v40, %v407_v2  ;;  %v675_v7 = vmul.f32 %v1842_v40, %v535_v3  ;;  %v716_v8 = vadd.f32 %v1849_v45, %v645_v0 }
  0xfa   :  { %v748_v9 = vadd.f32 %v1849_v45, %v677_v1  ;;  %v1588_v10 = vpop.f32.mrf.mxu0  ;;  %v1620_v11 = vpop.f32.mrf.mxu1  ;;  %v777_v22 = vmax.f32 %v713_v4, 0.0  ;;  %v809_v23 = vmax.f32 %v745_v5, 0.0 }
  0xfb   :  { %v714_v14 = vadd.f32 %v1849_v45, %v643_v6  ;;  %v746_v15 = vadd.f32 %v1849_v45, %v675_v7  ;;  %v780_v16 = vmax.f32 %v716_v8, 0.0  ;;  %v648_v18 = vmul.f32 %v1588_v10, %v1842_v40 }
  0xfc   :  { %v812_v17 = vmax.f32 %v748_v9, 0.0  ;;  %v680_v19 = vmul.f32 %v1620_v11, %v1842_v40  ;;  %v420_v20 = vpop.f32.mrf.mxu0  ;;  %v548_v21 = vpop.f32.mrf.mxu1 }
  0xfd   :  { %v778_v24 = vmax.f32 %v714_v14, 0.0  ;;  %v810_v25 = vmax.f32 %v746_v15, 0.0  ;;  %v1355_v26 = vpack.c.bf16 %v780_v16, %v779_v12  ;;  %v646_v28 = vmul.f32 %v1842_v40, %v420_v20 }
  0xfe   :  { %v1435_v27 = vpack.c.bf16 %v812_v17, %v811_v13  ;;  %v678_v29 = vmul.f32 %v1842_v40, %v548_v21  ;;  %v1589_v30 = vpop.f32.mrf.mxu0  ;;  %v1621_v31 = vpop.f32.mrf.mxu1  ;;  %v719_v34 = vadd.f32 %v1849_v45, %v648_v18  ;;  %v751_v35 = vadd.f32 %v1849_v45, %v680_v19 }
  0xff   :  { %v1350_v32 = vpack.c.bf16 %v778_v24, %v777_v22  ;;  %v1430_v33 = vpack.c.bf16 %v810_v25, %v809_v23  ;;  %1491 = vst [vmem:[%s2077_s4 + $0x28] sm:$0xff] %v1355_v26   ;;  %v649_v36 = vmul.f32 %v1589_v30, %v1842_v40  ;;  %v681_v37 = vmul.f32 %v1621_v31, %v1842_v40 }
 0x100   :  { %1507 = vst [vmem:[%s2077_s4 + $0xa8] sm:$0xff] %v1435_v27   ;;  %v423_v38 = vpop.f32.mrf.mxu0  ;;  %v551_v39 = vpop.f32.mrf.mxu1  ;;  %v717_v41 = vadd.f32 %v1849_v45, %v646_v28  ;;  %v749_v42 = vadd.f32 %v1849_v45, %v678_v29  ;;  %v783_v54 = vmax.f32 %v719_v34, 0.0  ;;  %v815_v55 = vmax.f32 %v751_v35, 0.0 }
 0x101   :  { %1490 = vst [vmem:[%s2077_s4 + $0x20] sm:$0xff] %v1350_v32   ;;  %1506 = vst [vmem:[%s2077_s4 + $0xa0] sm:$0xff] %v1430_v33   ;;  %v647_v43 = vmul.f32 %v1842_v40, %v423_v38  ;;  %v679_v44 = vmul.f32 %v1842_v40, %v551_v39  ;;  %v720_v46 = vadd.f32 %v1849_v45, %v649_v36 }
 0x102   :  { %v752_v47 = vadd.f32 %v1849_v45, %v681_v37  ;;  %v1592_v48 = vpop.f32.mrf.mxu0  ;;  %v1624_v49 = vpop.f32.mrf.mxu1  ;;  %v781_v60 = vmax.f32 %v717_v41, 0.0  ;;  %v813_v61 = vmax.f32 %v749_v42, 0.0 }
 0x103   :  { %v718_v50 = vadd.f32 %v1849_v45, %v647_v43  ;;  %v750_v51 = vadd.f32 %v1849_v45, %v679_v44  ;;  %v652_v52 = vmul.f32 %v1592_v48, %v1842_v40  ;;  %v684_v53 = vmul.f32 %v1624_v49, %v1842_v40 }
 0x104   :  { %v784_v56 = vmax.f32 %v720_v46, 0.0  ;;  %v816_v57 = vmax.f32 %v752_v47, 0.0  ;;  %v436_v58 = vpop.f32.mrf.mxu0  ;;  %v564_v59 = vpop.f32.mrf.mxu1 }
 0x105   :  { %v782_v62 = vmax.f32 %v718_v50, 0.0  ;;  %v814_v63 = vmax.f32 %v750_v51, 0.0  ;;  %v650_v2 = vmul.f32 %v1842_v40, %v436_v58  ;;  %v682_v3 = vmul.f32 %v1842_v40, %v564_v59 }
 0x106   :  { %v1365_v0 = vpack.c.bf16 %v784_v56, %v783_v54  ;;  %v1445_v1 = vpack.c.bf16 %v816_v57, %v815_v55  ;;  %v1593_v4 = vpop.f32.mrf.mxu0  ;;  %v1625_v5 = vpop.f32.mrf.mxu1  ;;  %v723_v8 = vadd.f32 %v1849_v45, %v652_v52  ;;  %v755_v9 = vadd.f32 %v1849_v45, %v684_v53 }
 0x107   :  { %v1360_v6 = vpack.c.bf16 %v782_v62, %v781_v60  ;;  %v1440_v7 = vpack.c.bf16 %v814_v63, %v813_v61  ;;  %v653_v10 = vmul.f32 %v1593_v4, %v1842_v40  ;;  %v685_v11 = vmul.f32 %v1625_v5, %v1842_v40 }
 0x108   :  { %1493 = vst [vmem:[%s2077_s4 + $0x38] sm:$0xff] %v1365_v0   ;;  %1509 = vst [vmem:[%s2077_s4 + $0xb8] sm:$0xff] %v1445_v1   ;;  %v439_v12 = vpop.f32.mrf.mxu0  ;;  %v567_v13 = vpop.f32.mrf.mxu1  ;;  %v721_v14 = vadd.f32 %v1849_v45, %v650_v2  ;;  %v753_v15 = vadd.f32 %v1849_v45, %v682_v3  ;;  %v787_v22 = vmax.f32 %v723_v8, 0.0  ;;  %v819_v23 = vmax.f32 %v755_v9, 0.0 }
 0x109   :  { %1492 = vst [vmem:[%s2077_s4 + $0x30] sm:$0xff] %v1360_v6   ;;  %1508 = vst [vmem:[%s2077_s4 + $0xb0] sm:$0xff] %v1440_v7   ;;  %v651_v16 = vmul.f32 %v1842_v40, %v439_v12  ;;  %v683_v17 = vmul.f32 %v1842_v40, %v567_v13  ;;  %v724_v18 = vadd.f32 %v1849_v45, %v653_v10 }
 0x10a   :  { %v756_v19 = vadd.f32 %v1849_v45, %v685_v11  ;;  %v1596_v20 = vpop.f32.mrf.mxu0  ;;  %v1628_v21 = vpop.f32.mrf.mxu1  ;;  %v785_v32 = vmax.f32 %v721_v14, 0.0  ;;  %v817_v33 = vmax.f32 %v753_v15, 0.0 }
 0x10b   :  { %v722_v24 = vadd.f32 %v1849_v45, %v651_v16  ;;  %v754_v25 = vadd.f32 %v1849_v45, %v683_v17  ;;  %v788_v26 = vmax.f32 %v724_v18, 0.0  ;;  %v656_v28 = vmul.f32 %v1596_v20, %v1842_v40 }
 0x10c   :  { %v820_v27 = vmax.f32 %v756_v19, 0.0  ;;  %v688_v29 = vmul.f32 %v1628_v21, %v1842_v40  ;;  %v452_v30 = vpop.f32.mrf.mxu0  ;;  %v580_v31 = vpop.f32.mrf.mxu1 }
 0x10d   :  { %v786_v34 = vmax.f32 %v722_v24, 0.0  ;;  %v818_v35 = vmax.f32 %v754_v25, 0.0  ;;  %v1375_v36 = vpack.c.bf16 %v788_v26, %v787_v22  ;;  %v654_v38 = vmul.f32 %v1842_v40, %v452_v30 }
 0x10e   :  { %v1455_v37 = vpack.c.bf16 %v820_v27, %v819_v23  ;;  %v686_v39 = vmul.f32 %v1842_v40, %v580_v31  ;;  %v1597_v41 = vpop.f32.mrf.mxu0  ;;  %v1629_v42 = vpop.f32.mrf.mxu1  ;;  %v727_v46 = vadd.f32 %v1849_v45, %v656_v28  ;;  %v759_v47 = vadd.f32 %v1849_v45, %v688_v29 }
 0x10f   :  { %v1370_v43 = vpack.c.bf16 %v786_v34, %v785_v32  ;;  %v1450_v44 = vpack.c.bf16 %v818_v35, %v817_v33  ;;  %1495 = vst [vmem:[%s2077_s4 + $0x48] sm:$0xff] %v1375_v36   ;;  %v657_v48 = vmul.f32 %v1597_v41, %v1842_v40  ;;  %v689_v49 = vmul.f32 %v1629_v42, %v1842_v40 }
 0x110   :  { %1511 = vst [vmem:[%s2077_s4 + $0xc8] sm:$0xff] %v1455_v37   ;;  %v455_v50 = vpop.f32.mrf.mxu0  ;;  %v583_v51 = vpop.f32.mrf.mxu1  ;;  %v725_v52 = vadd.f32 %v1849_v45, %v654_v38  ;;  %v757_v53 = vadd.f32 %v1849_v45, %v686_v39  ;;  %v791_v0 = vmax.f32 %v727_v46, 0.0  ;;  %v823_v1 = vmax.f32 %v759_v47, 0.0 }
 0x111   :  { %1494 = vst [vmem:[%s2077_s4 + $0x40] sm:$0xff] %v1370_v43   ;;  %1510 = vst [vmem:[%s2077_s4 + $0xc0] sm:$0xff] %v1450_v44   ;;  %v655_v54 = vmul.f32 %v1842_v40, %v455_v50  ;;  %v687_v55 = vmul.f32 %v1842_v40, %v583_v51  ;;  %v728_v56 = vadd.f32 %v1849_v45, %v657_v48 }
 0x112   :  { %v760_v57 = vadd.f32 %v1849_v45, %v689_v49  ;;  %v1600_v58 = vpop.f32.mrf.mxu0  ;;  %v1632_v59 = vpop.f32.mrf.mxu1  ;;  %v789_v6 = vmax.f32 %v725_v52, 0.0  ;;  %v821_v7 = vmax.f32 %v757_v53, 0.0 }
 0x113   :  { %v726_v60 = vadd.f32 %v1849_v45, %v655_v54  ;;  %v758_v61 = vadd.f32 %v1849_v45, %v687_v55  ;;  %v660_v62 = vmul.f32 %v1600_v58, %v1842_v40  ;;  %v692_v63 = vmul.f32 %v1632_v59, %v1842_v40 }
 0x114   :  { %v792_v2 = vmax.f32 %v728_v56, 0.0  ;;  %v824_v3 = vmax.f32 %v760_v57, 0.0  ;;  %v468_v4 = vpop.f32.mrf.mxu0  ;;  %v596_v5 = vpop.f32.mrf.mxu1 }
 0x115   :  { %v790_v8 = vmax.f32 %v726_v60, 0.0  ;;  %v822_v9 = vmax.f32 %v758_v61, 0.0  ;;  %v658_v12 = vmul.f32 %v1842_v40, %v468_v4  ;;  %v690_v13 = vmul.f32 %v1842_v40, %v596_v5 }
 0x116   :  { %v1385_v10 = vpack.c.bf16 %v792_v2, %v791_v0  ;;  %v1465_v11 = vpack.c.bf16 %v824_v3, %v823_v1  ;;  %v1601_v14 = vpop.f32.mrf.mxu0  ;;  %v1633_v15 = vpop.f32.mrf.mxu1  ;;  %v731_v18 = vadd.f32 %v1849_v45, %v660_v62  ;;  %v763_v19 = vadd.f32 %v1849_v45, %v692_v63 }
 0x117   :  { %v1380_v16 = vpack.c.bf16 %v790_v8, %v789_v6  ;;  %v1460_v17 = vpack.c.bf16 %v822_v9, %v821_v7  ;;  %v661_v20 = vmul.f32 %v1601_v14, %v1842_v40  ;;  %v693_v21 = vmul.f32 %v1633_v15, %v1842_v40 }
 0x118   :  { %1497 = vst [vmem:[%s2077_s4 + $0x58] sm:$0xff] %v1385_v10   ;;  %1513 = vst [vmem:[%s2077_s4 + $0xd8] sm:$0xff] %v1465_v11   ;;  %v471_v22 = vpop.f32.mrf.mxu0  ;;  %v599_v23 = vpop.f32.mrf.mxu1  ;;  %v729_v24 = vadd.f32 %v1849_v45, %v658_v12  ;;  %v761_v25 = vadd.f32 %v1849_v45, %v690_v13  ;;  %v795_v32 = vmax.f32 %v731_v18, 0.0  ;;  %v827_v33 = vmax.f32 %v763_v19, 0.0 }
 0x119   :  { %1496 = vst [vmem:[%s2077_s4 + $0x50] sm:$0xff] %v1380_v16   ;;  %1512 = vst [vmem:[%s2077_s4 + $0xd0] sm:$0xff] %v1460_v17   ;;  %v659_v26 = vmul.f32 %v1842_v40, %v471_v22  ;;  %v691_v27 = vmul.f32 %v1842_v40, %v599_v23  ;;  %v732_v28 = vadd.f32 %v1849_v45, %v661_v20 }
 0x11a   :  { %v764_v29 = vadd.f32 %v1849_v45, %v693_v21  ;;  %v1604_v30 = vpop.f32.mrf.mxu0  ;;  %v1636_v31 = vpop.f32.mrf.mxu1  ;;  %v793_v43 = vmax.f32 %v729_v24, 0.0  ;;  %v825_v44 = vmax.f32 %v761_v25, 0.0 }
 0x11b   :  { %v730_v34 = vadd.f32 %v1849_v45, %v659_v26  ;;  %v762_v35 = vadd.f32 %v1849_v45, %v691_v27  ;;  %v796_v36 = vmax.f32 %v732_v28, 0.0  ;;  %v664_v38 = vmul.f32 %v1604_v30, %v1842_v40 }
 0x11c   :  { %v828_v37 = vmax.f32 %v764_v29, 0.0  ;;  %v696_v39 = vmul.f32 %v1636_v31, %v1842_v40  ;;  %v484_v41 = vpop.f32.mrf.mxu0  ;;  %v612_v42 = vpop.f32.mrf.mxu1 }
 0x11d   :  { %v794_v46 = vmax.f32 %v730_v34, 0.0  ;;  %v826_v47 = vmax.f32 %v762_v35, 0.0  ;;  %v1395_v48 = vpack.c.bf16 %v796_v36, %v795_v32  ;;  %v662_v50 = vmul.f32 %v1842_v40, %v484_v41 }
 0x11e   :  { %v1475_v49 = vpack.c.bf16 %v828_v37, %v827_v33  ;;  %v694_v51 = vmul.f32 %v1842_v40, %v612_v42  ;;  %v1605_v52 = vpop.f32.mrf.mxu0  ;;  %v1637_v53 = vpop.f32.mrf.mxu1  ;;  %v735_v56 = vadd.f32 %v1849_v45, %v664_v38  ;;  %v767_v57 = vadd.f32 %v1849_v45, %v696_v39 }
 0x11f   :  { %v1390_v54 = vpack.c.bf16 %v794_v46, %v793_v43  ;;  %v1470_v55 = vpack.c.bf16 %v826_v47, %v825_v44  ;;  %1499 = vst [vmem:[%s2077_s4 + $0x68] sm:$0xff] %v1395_v48   ;;  %v665_v58 = vmul.f32 %v1605_v52, %v1842_v40  ;;  %v697_v59 = vmul.f32 %v1637_v53, %v1842_v40 }
 0x120   :  { %1515 = vst [vmem:[%s2077_s4 + $0xe8] sm:$0xff] %v1475_v49   ;;  %v487_v60 = vpop.f32.mrf.mxu0  ;;  %v615_v61 = vpop.f32.mrf.mxu1  ;;  %v733_v62 = vadd.f32 %v1849_v45, %v662_v50  ;;  %v765_v63 = vadd.f32 %v1849_v45, %v694_v51  ;;  %v799_v6 = vmax.f32 %v735_v56, 0.0  ;;  %v831_v7 = vmax.f32 %v767_v57, 0.0 }
 0x121   :  { %1498 = vst [vmem:[%s2077_s4 + $0x60] sm:$0xff] %v1390_v54   ;;  %1514 = vst [vmem:[%s2077_s4 + $0xe0] sm:$0xff] %v1470_v55   ;;  %v663_v0 = vmul.f32 %v1842_v40, %v487_v60  ;;  %v695_v1 = vmul.f32 %v1842_v40, %v615_v61  ;;  %v736_v2 = vadd.f32 %v1849_v45, %v665_v58 }
 0x122   :  { %v768_v3 = vadd.f32 %v1849_v45, %v697_v59  ;;  %v797_v10 = vmax.f32 %v733_v62, 0.0  ;;  %v829_v11 = vmax.f32 %v765_v63, 0.0 }
 0x123   :  { %v734_v4 = vadd.f32 %v1849_v45, %v663_v0  ;;  %v766_v5 = vadd.f32 %v1849_v45, %v695_v1  ;;  %v800_v8 = vmax.f32 %v736_v2, 0.0 }
 0x124   :  { %v832_v9 = vmax.f32 %v768_v3, 0.0 }
 0x125   :  { %v798_v12 = vmax.f32 %v734_v4, 0.0  ;;  %v830_v13 = vmax.f32 %v766_v5, 0.0  ;;  %v1405_v14 = vpack.c.bf16 %v800_v8, %v799_v6 }
 0x126   :  { %v1485_v15 = vpack.c.bf16 %v832_v9, %v831_v7 }
 0x127   :  { %v1400_v16 = vpack.c.bf16 %v798_v12, %v797_v10  ;;  %v1480_v40 = vpack.c.bf16 %v830_v13, %v829_v11  ;;  %1501 = vst [vmem:[%s2077_s4 + $0x78] sm:$0xff] %v1405_v14  }
 0x128   :  { %1517 = vst [vmem:[%s2077_s4 + $0xf8] sm:$0xff] %v1485_v15  }
 0x129   :  { %1500 = vst [vmem:[%s2077_s4 + $0x70] sm:$0xff] %v1400_v16   ;;  %1516 = vst [vmem:[%s2077_s4 + $0xf0] sm:$0xff] %v1480_v40  }

// kernel: inception_through.7
= control target key start
LH: loop header
LB: loop body
LE: loop exit
PB: predicated region body
PF: predicated region fallthrough
CT: control target
= control target key end

     0   :  { %v4904_v0 = vmov 0   ;;  %s7330_s1 = inlined_call_operand.vmem [shape: bf16[3,384,128], index: 1, kind: input, shape index: {}]   ;;  %s7331_s0 = inlined_call_operand.vmem [shape: bf16[1,18,32,384], index: 0, kind: input, shape index: {}]   ;;  %s7332_s2 = inlined_call_operand.vmem [shape: f32[1,128], index: 2, kind: input, shape index: {}]   ;;  %s7333_s3 = inlined_call_operand.vmem [shape: f32[1,128], index: 3, kind: input, shape index: {}]   ;;  %s7334_s4 = inlined_call_operand.vmem [shape: bf16[16,32,128], index: 4, kind: output, shape index: {}]  }
   0x1   :  { %915 = vmatprep.subr.bf16.mxu0 %v4904_v0  ;;  %v4618_v1 = vld [vmem:[%s7330_s1 + $0xf8] sm:$0xff]   ;;  %v4620_v3 = vld [vmem:[%s7330_s1 + $0xf0] sm:$0xff]   ;;  %v4954_v5 = vld [vmem:[%s7330_s1 + $0x168] sm:$0xff]  }
   0x2   :  { %v4937_v2 = vld [vmem:[%s7330_s1 + $0x178] sm:$0xff]   ;;  %916 = vmatpush1.bf16.msra.mxu0 %v4618_v1  ;;  %v4947_v4 = vld [vmem:[%s7330_s1 + $0x170] sm:$0xff]   ;;  %v4622_v6 = vld [vmem:[%s7330_s1 + $0xe8] sm:$0xff]  }
   0x3   :  { %4601 = vmatprep.subr.bf16.mxu1 %v4937_v2  ;;  %917 = vmatprep.subr.bf16.mxu0 %v4904_v0  ;;  %v4965_v7 = vld [vmem:[%s7330_s1 + $0x160] sm:$0xff]   ;;  %v4976_v9 = vld [vmem:[%s7330_s1 + $0x158] sm:$0xff]   ;;  %v4990_v12 = vld [vmem:[%s7330_s1 + $0x150] sm:$0xff]  }
   0x4   :  { %4609 = vmatpush3.bf16.msra.mxu1 %v4937_v2  ;;  %v4624_v8 = vld [vmem:[%s7330_s1 + $0xe0] sm:$0xff]   ;;  %v4626_v10 = vld [vmem:[%s7330_s1 + $0xd8] sm:$0xff]   ;;  %v4628_v13 = vld [vmem:[%s7330_s1 + $0xd0] sm:$0xff]  }
   0x5   :  { %4602 = vmatprep.subr.bf16.mxu1 %v4947_v4  ;;  %v4634_v11 = vld [vmem:[%s7331_s0 + $0x158] ss:$12 sps:$4 sm:$0xff]   ;;  %v5001_v14 = vld [vmem:[%s7330_s1 + $0x148] sm:$0xff]   ;;  %v4636_v19 = vld [vmem:[%s7331_s0 + $0x170] ss:$12 sps:$4 sm:$0xff]  }
   0x6   :  { %918 = vmatpush1.bf16.msra.mxu0 %v4620_v3  ;;  %4401 = vmatprep.mubr.bf16.mxu1 %v4634_v11  ;;  %v4630_v15 = vld [vmem:[%s7330_s1 + $0xc8] sm:$0xff]   ;;  %v5012_v16 = vld [vmem:[%s7330_s1 + $0x140] sm:$0xff]   ;;  %v4635_v18 = vld [vmem:[%s7330_s1 + $0x138] sm:$0xff]  }
   0x7   :  { %919 = vmatprep.subr.bf16.mxu0 %v4904_v0  ;;  %v4632_v17 = vld [vmem:[%s7330_s1 + $0xc0] sm:$0xff]   ;;  %v4637_v20 = vld [vmem:[%s7330_s1 + $0x38] sm:$0xff]   ;;  %v4639_v21 = vld [vmem:[%s7331_s0 + $0x188] ss:$12 sps:$4 sm:$0xff]  }
   0x8   :  { %4610 = vmatpush3.bf16.msra.mxu1 %v4947_v4  ;;  %v4638_v22 = vld [vmem:[%s7330_s1 + $0x130] sm:$0xff]   ;;  %v4641_v24 = vld [vmem:[%s7330_s1 + $0x128] sm:$0xff]   ;;  %v4645_v28 = vld [vmem:[%s7331_s0 + $0x1b8] ss:$12 sps:$4 sm:$0xff]  }
   0x9   :  { %4603 = vmatprep.subr.bf16.mxu1 %v4954_v5  ;;  %v4640_v23 = vld [vmem:[%s7330_s1 + $0x30] sm:$0xff]   ;;  %v4642_v25 = vld [vmem:[%s7331_s0 + $0x1a0] ss:$12 sps:$4 sm:$0xff]   ;;  %v4646_v31 = vld [vmem:[%s7330_s1 + $0x118] sm:$0xff]  }
   0xa   :  { %920 = vmatpush1.bf16.msra.mxu0 %v4622_v6  ;;  %v4644_v26 = vld [vmem:[%s7330_s1 + $0x28] sm:$0xff]   ;;  %v5056_v27 = vld [vmem:[%s7331_s0 + $0x34] ss:$12 sps:$4 sm:$0xff]   ;;  %v4647_v32 = vld [vmem:[%s7331_s0 + $0x1d0] ss:$12 sps:$4 sm:$0xff]  }
   0xb   :  { %921 = vmatprep.subr.bf16.mxu0 %v4904_v0  ;;  %947 = vmatprep.mubr.bf16.mxu0 %v5056_v27  ;;  %v4643_v29 = vld [vmem:[%s7330_s1 + $0x120] sm:$0xff]   ;;  %v4650_v33 = vld [vmem:[%s7330_s1 + $0x18] sm:$0xff]   ;;  %v4651_v34 = vld [vmem:[%s7331_s0 + $0x1e8] ss:$12 sps:$4 sm:$0xff]  }
   0xc   :  { %4611 = vmatpush3.bf16.msra.mxu1 %v4954_v5  ;;  %v4648_v30 = vld [vmem:[%s7330_s1 + $0x20] sm:$0xff]   ;;  %v4649_v35 = vld [vmem:[%s7330_s1 + $0x110] sm:$0xff]   ;;  %v4652_v37 = vld [vmem:[%s7330_s1 + $0x108] sm:$0xff]  }
   0xd   :  { %4604 = vmatprep.subr.bf16.mxu1 %v4965_v7  ;;  %v4654_v36 = vld [vmem:[%s7330_s1 + $0x10] sm:$0xff]   ;;  %v4653_v38 = vld [vmem:[%s7331_s0 + $0x200] ss:$12 sps:$4 sm:$0xff]   ;;  %v4659_v39 = vld [vmem:[%s7331_s0 + $0x218] ss:$12 sps:$4 sm:$0xff]  }
   0xe   :  { %922 = vmatpush1.bf16.msra.mxu0 %v4624_v8  ;;  %v4661_v40 = vld [vmem:[%s7330_s1 + $0x8] sm:$0xff]   ;;  %v4655_v41 = vld [vmem:[%s7330_s1 + $0x100] sm:$0xff]   ;;  %v5117_v43 = vld [vmem:[%s7331_s0 + $0x30] ss:$12 sps:$4 sm:$0xff]  }
   0xf   :  { %923 = vmatprep.subr.bf16.mxu0 %v4904_v0  ;;  %v4662_v42 = vld [vmem:[%s7330_s1] sm:$0xff]   ;;  %v5123_v44 = vld [vmem:[%s7331_s0 + $0x4c] ss:$12 sps:$4 sm:$0xff]   ;;  %v4660_v45 = vld [vmem:[%s7331_s0 + $0x230] ss:$12 sps:$4 sm:$0xff]  }
  0x10   :  { %4612 = vmatpush3.bf16.msra.mxu1 %v4965_v7  ;;  %v4666_v46 = vld [vmem:[%s7331_s0 + $0x248] ss:$12 sps:$4 sm:$0xff]   ;;  %v4668_v47 = vld [vmem:[%s7330_s1 + $0x78] sm:$0xff]   ;;  %v5152_v50 = vld [vmem:[%s7331_s0 + $0x64] ss:$12 sps:$4 sm:$0xff]  }
  0x11   :  { %4605 = vmatprep.subr.bf16.mxu1 %v4976_v9  ;;  %v4673_v48 = vld [vmem:[%s7330_s1 + $0x70] sm:$0xff]   ;;  %v4667_v51 = vld [vmem:[%s7331_s0 + $0x260] ss:$12 sps:$4 sm:$0xff]   ;;  %v4672_v52 = vld [vmem:[%s7331_s0 + $0x278] ss:$12 sps:$4 sm:$0xff]  }
  0x12   :  { %924 = vmatpush1.bf16.msra.mxu0 %v4626_v10  ;;  %v5146_v49 = vld [vmem:[%s7331_s0 + $0x48] ss:$12 sps:$4 sm:$0xff]   ;;  %v4681_v54 = vld [vmem:[%s7330_s1 + $0x60] sm:$0xff]   ;;  %v4674_v56 = vld [vmem:[%s7331_s0 + $0x290] ss:$12 sps:$4 sm:$0xff]  }
  0x13   :  { %925 = vmatprep.subr.bf16.mxu0 %v4904_v0  ;;  %v4675_v53 = vld [vmem:[%s7330_s1 + $0x68] sm:$0xff]   ;;  %v4684_v59 = vld [vmem:[%s7330_s1 + $0x58] sm:$0xff]   ;;  %v4688_v60 = vld [vmem:[%s7330_s1 + $0x50] sm:$0xff]  }
  0x14   :  { %4613 = vmatpush3.bf16.msra.mxu1 %v4976_v9  ;;  %v5176_v55 = vld [vmem:[%s7331_s0 + $0x60] ss:$12 sps:$4 sm:$0xff]   ;;  %v5185_v57 = vld [vmem:[%s7331_s0 + $0x7c] ss:$12 sps:$4 sm:$0xff]   ;;  %v5206_v61 = vld [vmem:[%s7331_s0 + $0x78] ss:$12 sps:$4 sm:$0xff]  }
  0x15   :  { %4606 = vmatprep.subr.bf16.mxu1 %v4990_v12  ;;  %v4679_v58 = vld [vmem:[%s7331_s0 + $0x2a8] ss:$12 sps:$4 sm:$0xff]   ;;  %v4680_v63 = vld [vmem:[%s7331_s0 + $0x2c0] ss:$12 sps:$4 sm:$0xff]   ;;  %v4686_v1 = vld [vmem:[%s7331_s0 + $0x2d8] ss:$12 sps:$4 sm:$0xff]  }
  0x16   :  { %926 = vmatpush1.bf16.msra.mxu0 %v4628_v13  ;;  %v5212_v62 = vld [vmem:[%s7331_s0 + $0x94] ss:$12 sps:$4 sm:$0xff]   ;;  %v4687_v6 = vld [vmem:[%s7331_s0 + $0x2f0] ss:$12 sps:$4 sm:$0xff]  }
  0x17   :  { %927 = vmatprep.subr.bf16.mxu0 %v4904_v0  ;;  %v4695_v3 = vld [vmem:[%s7330_s1 + $0x40] sm:$0xff]   ;;  %v5257_v8 = vld [vmem:[%s7331_s0 + $0xa8] ss:$12 sps:$4 sm:$0xff]  }
  0x18   :  { %4614 = vmatpush3.bf16.msra.mxu1 %v4990_v12  ;;  %v4693_v10 = vld [vmem:[%s7331_s0 + $0x320] ss:$12 sps:$4 sm:$0xff]   ;;  %v4701_v11 = vld [vmem:[%s7331_s0 + $0x4] ss:$12 sps:$4 sm:$0xff]   ;;  %v5280_v13 = vld [vmem:[%s7331_s0 + $0xdc] ss:$12 sps:$4 sm:$0xff]  }
  0x19   :  { %4607 = vmatprep.subr.bf16.mxu1 %v5001_v14 }
  0x1a   :  { %928 = vmatpush1.bf16.msra.mxu0 %v4630_v15  ;;  %v4702_v15 = vld [vmem:[%s7330_s1 + $0x1b8] sm:$0xff]  }
  0x1b   :  { %929 = vmatprep.subr.bf16.mxu0 %v4904_v0 }
  0x1c   :  { %4615 = vmatpush3.bf16.msra.mxu1 %v5001_v14 }
  0x1d   :  { %4608 = vmatprep.subr.bf16.mxu1 %v5012_v16 }
  0x1e   :  { %930 = vmatpush1.bf16.msra.mxu0 %v4632_v17  ;;  %v4712_v17 = vld [vmem:[%s7330_s1 + $0x1b0] sm:$0xff]  }
  0x1f   :  { %931 = vmatprep.subr.bf16.mxu0 %v4904_v0 }
  0x20   :  { %4616 = vmatpush3.bf16.msra.mxu1 %v5012_v16 }
  0x21   :  { %1669 = vmatprep.subr.bf16.mxu1 %v4904_v0 }
  0x22   :  { %932 = vmatpush2.bf16.msra.mxu0 %v4635_v18  ;;  %v5299_v18 = vld [vmem:[%s7331_s0 + $0xd8] ss:$12 sps:$4 sm:$0xff]  }
  0x23   :  { %4402 = vmatmul.mubr.bf16.vlgmr.msra.gmra.mxu1 %v4636_v19  ;;  %933 = vmatprep.subr.bf16.mxu0 %v4904_v0  ;;  %v5304_v19 = vld [vmem:[%s7331_s0 + $0xf4] ss:$12 sps:$4 sm:$0xff]  }
  0x24   :  { %1670 = vmatpush1.bf16.msra.mxu1 %v4637_v20  ;;  %4405 = vmatprep.mubr.bf16.mxu1 %v4639_v21  ;;  %v4708_v20 = vld [vmem:[%s7331_s0 + $0x18] ss:$12 sps:$4 sm:$0xff]   ;;  %v4719_v21 = vld [vmem:[%s7330_s1 + $0x1a8] sm:$0xff]  }
  0x25   :  { %1671 = vmatprep.subr.bf16.mxu1 %v4904_v0 }
  0x26   :  { %934 = vmatpush2.bf16.msra.mxu0 %v4638_v22  ;;  %v4726_v22 = vld [vmem:[%s7330_s1 + $0x1a0] sm:$0xff]  }
  0x27   :  { %935 = vmatprep.subr.bf16.mxu0 %v4904_v0 }
  0x28   :  { %1672 = vmatpush1.bf16.msra.mxu1 %v4640_v23  ;;  %v5322_v23 = vld [vmem:[%s7331_s0 + $0xf0] ss:$12 sps:$4 sm:$0xff]  }
  0x29   :  { %1673 = vmatprep.subr.bf16.mxu1 %v4904_v0 }
  0x2a   :  { %936 = vmatpush2.bf16.msra.mxu0 %v4641_v24  ;;  %v5328_v24 = vld [vmem:[%s7331_s0 + $0x10c] ss:$12 sps:$4 sm:$0xff]  }
  0x2b   :  { %4406 = vmatmul.mubr.bf16.gmra.mxu1 %v4642_v25  ;;  %937 = vmatprep.subr.bf16.mxu0 %v4904_v0  ;;  %v4733_v25 = vld [vmem:[%s7330_s1 + $0x198] sm:$0xff]  }
  0x2c   :  { %1674 = vmatpush1.bf16.msra.mxu1 %v4644_v26  ;;  %4409 = vmatprep.mubr.bf16.mxu1 %v4645_v28  ;;  %v4740_v26 = vld [vmem:[%s7330_s1 + $0x190] sm:$0xff]  }
  0x2d   :  { %1675 = vmatprep.subr.bf16.mxu1 %v4904_v0  ;;  %v5350_v28 = vld [vmem:[%s7331_s0 + $0x124] ss:$12 sps:$4 sm:$0xff]  }
  0x2e   :  { %938 = vmatpush2.bf16.msra.mxu0 %v4643_v29  ;;  %v4747_v29 = vld [vmem:[%s7330_s1 + $0x188] sm:$0xff]  }
  0x2f   :  { %939 = vmatprep.subr.bf16.mxu0 %v4904_v0 }
  0x30   :  { %1676 = vmatpush1.bf16.msra.mxu1 %v4648_v30  ;;  %v4754_v30 = vld [vmem:[%s7330_s1 + $0x180] sm:$0xff]  }
  0x31   :  { %1677 = vmatprep.subr.bf16.mxu1 %v4904_v0 }
  0x32   :  { %940 = vmatpush2.bf16.msra.mxu0 %v4646_v31  ;;  %v5367_v31 = vld [vmem:[%s7331_s0 + $0x120] ss:$12 sps:$4 sm:$0xff]  }
  0x33   :  { %4410 = vmatmul.mubr.bf16.gmra.mxu1 %v4647_v32  ;;  %941 = vmatprep.subr.bf16.mxu0 %v4904_v0  ;;  %v5373_v32 = vld [vmem:[%s7331_s0 + $0x13c] ss:$12 sps:$4 sm:$0xff]  }
  0x34   :  { %1678 = vmatpush1.bf16.msra.mxu1 %v4650_v33  ;;  %4413 = vmatprep.mubr.bf16.mxu1 %v4651_v34  ;;  %v4761_v33 = vld [vmem:[%s7330_s1 + $0x1f8] sm:$0xff]   ;;  %v4768_v34 = vld [vmem:[%s7330_s1 + $0x1f0] sm:$0xff]  }
  0x35   :  { %1679 = vmatprep.subr.bf16.mxu1 %v4904_v0 }
  0x36   :  { %942 = vmatpush2.bf16.msra.mxu0 %v4649_v35  ;;  %v5389_v35 = vld [vmem:[%s7331_s0 + $0x138] ss:$12 sps:$4 sm:$0xff]  }
  0x37   :  { %943 = vmatprep.subr.bf16.mxu0 %v4904_v0 }
  0x38   :  { %1680 = vmatpush1.bf16.msra.mxu1 %v4654_v36  ;;  %v5395_v36 = vld [vmem:[%s7331_s0 + $0x154] ss:$12 sps:$4 sm:$0xff]  }
  0x39   :  { %1681 = vmatprep.subr.bf16.mxu1 %v4904_v0 }
  0x3a   :  { %944 = vmatpush2.bf16.msra.mxu0 %v4652_v37  ;;  %v4775_v37 = vld [vmem:[%s7330_s1 + $0x1e8] sm:$0xff]  }
  0x3b   :  { %4414 = vmatmul.mubr.bf16.gmra.mxu1 %v4653_v38  ;;  %945 = vmatprep.subr.bf16.mxu0 %v4904_v0  ;;  %v5408_v38 = vld [vmem:[%s7331_s0 + $0x150] ss:$12 sps:$4 sm:$0xff]  }
  0x3c   :  { %4417 = vmatprep.mubr.bf16.mxu1 %v4659_v39  ;;  %1682 = vmatpush1.bf16.msra.mxu1 %v4661_v40  ;;  %v5414_v39 = vld [vmem:[%s7331_s0 + $0x16c] ss:$12 sps:$4 sm:$0xff]   ;;  %v5423_v40 = vld [vmem:[%s7331_s0 + $0x168] ss:$12 sps:$4 sm:$0xff]  }
  0x3d   :  { %1683 = vmatprep.subr.bf16.mxu1 %v4904_v0 }
  0x3e   :  { %946 = vmatpush2.bf16.msra.mxu0 %v4655_v41  ;;  %v4782_v41 = vld [vmem:[%s7330_s1 + $0x1e0] sm:$0xff]  }
  0x3f   :  { %4361 = vmatprep.subr.bf16.mxu0 %v4937_v2 }
  0x40   :  { %1684 = vmatpush1.bf16.msra.mxu1 %v4662_v42  ;;  %v5431_v42 = vld [vmem:[%s7331_s0 + $0x184] ss:$12 sps:$4 sm:$0xff]  }
  0x41   :  { %948 = vmatmul.mubr.bf16.vlgmr.msra.gmra.mxu0 %v5117_v43  ;;  %1685 = vmatprep.subr.bf16.mxu1 %v4904_v0 }
  0x42   :  { %4362 = vmatpush3.bf16.msra.mxu0 %v4937_v2  ;;  %955 = vmatprep.mubr.bf16.mxu0 %v5123_v44  ;;  %v4694_v2 = vld [vmem:[%s7330_s1 + $0x48] sm:$0xff]  }
  0x43   :  { %4418 = vmatmul.mubr.bf16.gmra.mxu1 %v4660_v45  ;;  %4363 = vmatprep.subr.bf16.mxu0 %v4947_v4  ;;  %v5455_v45 = vld [vmem:[%s7331_s0 + $0x198] ss:$12 sps:$4 sm:$0xff]  }
  0x44   :  { %4421 = vmatprep.mubr.bf16.mxu1 %v4666_v46  ;;  %1686 = vmatpush2.bf16.msra.mxu1 %v4668_v47  ;;  %v4789_v46 = vld [vmem:[%s7330_s1 + $0x1d8] sm:$0xff]   ;;  %v5463_v47 = vld [vmem:[%s7331_s0 + $0x1b4] ss:$12 sps:$4 sm:$0xff]  }
  0x45   :  { %1687 = vmatprep.subr.bf16.mxu1 %v4904_v0 }
  0x46   :  { %4364 = vmatpush3.bf16.msra.mxu0 %v4947_v4  ;;  %v5236_v4 = vld [vmem:[%s7331_s0 + $0x90] ss:$12 sps:$4 sm:$0xff]  }
  0x47   :  { %4365 = vmatprep.subr.bf16.mxu0 %v4954_v5 }
  0x48   :  { %1688 = vmatpush2.bf16.msra.mxu1 %v4673_v48  ;;  %v5473_v48 = vld [vmem:[%s7331_s0 + $0x1b0] ss:$12 sps:$4 sm:$0xff]  }
  0x49   :  { %956 = vmatmul.mubr.bf16.gmra.mxu0 %v5146_v49  ;;  %1689 = vmatprep.subr.bf16.mxu1 %v4904_v0 }
  0x4a   :  { %963 = vmatprep.mubr.bf16.mxu0 %v5152_v50  ;;  %4366 = vmatpush3.bf16.msra.mxu0 %v4954_v5  ;;  %v5242_v5 = vld [vmem:[%s7331_s0 + $0xac] ss:$12 sps:$4 sm:$0xff]  }
  0x4b   :  { %4422 = vmatmul.mubr.bf16.gmra.mxu1 %v4667_v51  ;;  %4367 = vmatprep.subr.bf16.mxu0 %v4965_v7  ;;  %v5493_v51 = vld [vmem:[%s7331_s0 + $0x1c8] ss:$12 sps:$4 sm:$0xff]  }
  0x4c   :  { %4425 = vmatprep.mubr.bf16.mxu1 %v4672_v52  ;;  %1690 = vmatpush2.bf16.msra.mxu1 %v4675_v53  ;;  %v4796_v52 = vld [vmem:[%s7330_s1 + $0x1d0] sm:$0xff]  }
  0x4d   :  { %1691 = vmatprep.subr.bf16.mxu1 %v4904_v0  ;;  %v5501_v53 = vld [vmem:[%s7331_s0 + $0x1e4] ss:$12 sps:$4 sm:$0xff]  }
  0x4e   :  { %4368 = vmatpush3.bf16.msra.mxu0 %v4965_v7  ;;  %v4692_v7 = vld [vmem:[%s7331_s0 + $0x308] ss:$12 sps:$4 sm:$0xff]  }
  0x4f   :  { %4369 = vmatprep.subr.bf16.mxu0 %v4976_v9 }
  0x50   :  { %1692 = vmatpush2.bf16.msra.mxu1 %v4681_v54  ;;  %v5511_v54 = vld [vmem:[%s7331_s0 + $0x1e0] ss:$12 sps:$4 sm:$0xff]  }
  0x51   :  { %964 = vmatmul.mubr.bf16.gmra.mxu0 %v5176_v55  ;;  %1693 = vmatprep.subr.bf16.mxu1 %v4904_v0 }
  0x52   :  { %971 = vmatprep.mubr.bf16.mxu0 %v5185_v57  ;;  %4370 = vmatpush3.bf16.msra.mxu0 %v4976_v9  ;;  %v5262_v9 = vld [vmem:[%s7331_s0 + $0xc4] ss:$12 sps:$4 sm:$0xff]  }
  0x53   :  { %4426 = vmatmul.mubr.bf16.gmra.mxu1 %v4674_v56  ;;  %4371 = vmatprep.subr.bf16.mxu0 %v4990_v12  ;;  %v5525_v56 = vld [vmem:[%s7331_s0 + $0x1f8] ss:$12 sps:$4 sm:$0xff]  }
  0x54   :  { %4429 = vmatprep.mubr.bf16.mxu1 %v4679_v58  ;;  %1694 = vmatpush2.bf16.msra.mxu1 %v4684_v59  ;;  %v5533_v58 = vld [vmem:[%s7331_s0 + $0x214] ss:$12 sps:$4 sm:$0xff]   ;;  %v5543_v59 = vld [vmem:[%s7331_s0 + $0x210] ss:$12 sps:$4 sm:$0xff]  }
  0x55   :  { %1695 = vmatprep.subr.bf16.mxu1 %v4904_v0 }
  0x56   :  { %4372 = vmatpush3.bf16.msra.mxu0 %v4990_v12  ;;  %v5275_v12 = vld [vmem:[%s7331_s0 + $0xc0] ss:$12 sps:$4 sm:$0xff]  }
  0x57   :  { %4373 = vmatprep.subr.bf16.mxu0 %v5001_v14 }
  0x58   :  { %1696 = vmatpush2.bf16.msra.mxu1 %v4688_v60  ;;  %v5548_v60 = vld [vmem:[%s7331_s0 + $0x22c] ss:$12 sps:$4 sm:$0xff]  }
  0x59   :  { %972 = vmatmul.mubr.bf16.gmra.mxu0 %v5206_v61  ;;  %1697 = vmatprep.subr.bf16.mxu1 %v4904_v0 }
  0x5a   :  { %979 = vmatprep.mubr.bf16.mxu0 %v5212_v62  ;;  %4374 = vmatpush3.bf16.msra.mxu0 %v5001_v14  ;;  %v4699_v14 = vld [vmem:[%s7331_s0] ss:$12 sps:$4 sm:$0xff]  }
  0x5b   :  { %4430 = vmatmul.mubr.bf16.gmra.mxu1 %v4680_v63  ;;  %4375 = vmatprep.subr.bf16.mxu0 %v5012_v16  ;;  %v4811_v63 = vld [vmem:[%s7330_s1 + $0x1c0] sm:$0xff]  }
  0x5c   :  { %4433 = vmatprep.mubr.bf16.mxu1 %v4686_v1  ;;  %1698 = vmatpush2.bf16.msra.mxu1 %v4694_v2  ;;  %v5569_v1 = vld [vmem:[%s7331_s0 + $0x244] ss:$12 sps:$4 sm:$0xff]  }
  0x5d   :  { %1699 = vmatprep.subr.bf16.mxu1 %v4904_v0 }
  0x5e   :  { %4376 = vmatpush3.bf16.msra.mxu0 %v5012_v16  ;;  %v4706_v16 = vld [vmem:[%s7331_s0 + $0x1c] ss:$12 sps:$4 sm:$0xff]  }
  0x60   :  { %1700 = vmatpush2.bf16.msra.mxu1 %v4695_v3 }
  0x61   :  { %980 = vmatmul.mubr.bf16.gmra.mxu0 %v5236_v4  ;;  %2472 = vmatprep.subr.bf16.mxu1 %v4904_v0 }
  0x62   :  { %987 = vmatprep.mubr.bf16.mxu0 %v5242_v5 }
  0x63   :  { %4434 = vmatmul.mubr.bf16.gmra.mxu1 %v4687_v6  ;;  %v5586_v6 = vld [vmem:[%s7331_s0 + $0x240] ss:$12 sps:$4 sm:$0xff]  }
  0x64   :  { %4437 = vmatprep.mubr.bf16.mxu1 %v4692_v7  ;;  %v5591_v7 = vld [vmem:[%s7331_s0 + $0x25c] ss:$12 sps:$4 sm:$0xff]  }
  0x69   :  { %988 = vmatmul.mubr.bf16.gmra.mxu0 %v5257_v8 }
  0x6a   :  { %995 = vmatprep.mubr.bf16.mxu0 %v5262_v9 }
  0x6b   :  { %4438 = vmatmul.mubr.bf16.gmra.mxu1 %v4693_v10 }
  0x6c   :  { %1701 = vmatprep.mubr.bf16.mxu1 %v4701_v11 }
  0x71   :  { %996 = vmatmul.mubr.bf16.gmra.mxu0 %v5275_v12 }
  0x72   :  { %1003 = vmatprep.mubr.bf16.mxu0 %v5280_v13 }
  0x73   :  { %1702 = vmatmul.mubr.bf16.vlgmr.msra.gmra.mxu1 %v4699_v14 }
  0x74   :  { %2473 = vmatpush1.bf16.msra.mxu1 %v4702_v15  ;;  %1709 = vmatprep.mubr.bf16.mxu1 %v4706_v16 }
  0x75   :  { %2474 = vmatprep.subr.bf16.mxu1 %v4904_v0 }
  0x78   :  { %2475 = vmatpush1.bf16.msra.mxu1 %v4712_v17 }
  0x79   :  { %1004 = vmatmul.mubr.bf16.gmra.mxu0 %v5299_v18  ;;  %2476 = vmatprep.subr.bf16.mxu1 %v4904_v0 }
  0x7a   :  { %1011 = vmatprep.mubr.bf16.mxu0 %v5304_v19 }
  0x7b   :  { %1710 = vmatmul.mubr.bf16.gmra.mxu1 %v4708_v20 }
  0x7c   :  { %1717 = vmatprep.mubr.bf16.mxu1 %v5056_v27  ;;  %2477 = vmatpush1.bf16.msra.mxu1 %v4719_v21  ;;  %v5344_v27 = vld [vmem:[%s7331_s0 + $0x108] ss:$12 sps:$4 sm:$0xff]  }
  0x7d   :  { %2478 = vmatprep.subr.bf16.mxu1 %v4904_v0 }
  0x80   :  { %2479 = vmatpush1.bf16.msra.mxu1 %v4726_v22 }
  0x81   :  { %1012 = vmatmul.mubr.bf16.gmra.mxu0 %v5322_v23  ;;  %2480 = vmatprep.subr.bf16.mxu1 %v4904_v0 }
  0x82   :  { %1019 = vmatprep.mubr.bf16.mxu0 %v5328_v24 }
  0x83   :  { %1718 = vmatmul.mubr.bf16.gmra.mxu1 %v5117_v43  ;;  %v5441_v43 = vld [vmem:[%s7331_s0 + $0x180] ss:$12 sps:$4 sm:$0xff]  }
  0x84   :  { %1725 = vmatprep.mubr.bf16.mxu1 %v5123_v44  ;;  %2481 = vmatpush1.bf16.msra.mxu1 %v4733_v25  ;;  %v5446_v44 = vld [vmem:[%s7331_s0 + $0x19c] ss:$12 sps:$4 sm:$0xff]  }
  0x85   :  { %2482 = vmatprep.subr.bf16.mxu1 %v4904_v0 }
  0x88   :  { %2483 = vmatpush1.bf16.msra.mxu1 %v4740_v26 }
  0x89   :  { %1020 = vmatmul.mubr.bf16.gmra.mxu0 %v5344_v27  ;;  %2484 = vmatprep.subr.bf16.mxu1 %v4904_v0 }
  0x8a   :  { %1027 = vmatprep.mubr.bf16.mxu0 %v5350_v28 }
  0x8b   :  { %1726 = vmatmul.mubr.bf16.gmra.mxu1 %v5146_v49  ;;  %v5478_v49 = vld [vmem:[%s7331_s0 + $0x1cc] ss:$12 sps:$4 sm:$0xff]  }
  0x8c   :  { %1733 = vmatprep.mubr.bf16.mxu1 %v5152_v50  ;;  %2485 = vmatpush1.bf16.msra.mxu1 %v4747_v29  ;;  %v5484_v50 = vld [vmem:[%s7330_s1 + $0xb8] sm:$0xff]   ;;  %v5656_v29 = vld [vmem:[%s7331_s0 + $0x288] ss:$12 sps:$4 sm:$0xff]  }
  0x8d   :  { %2486 = vmatprep.subr.bf16.mxu1 %v4904_v0  ;;  %4441 = vmatprep.subr.bf16.mxu0 %v5484_v50 }
  0x90   :  { %2487 = vmatpush1.bf16.msra.mxu1 %v4754_v30  ;;  %v5661_v30 = vld [vmem:[%s7331_s0 + $0x2a4] ss:$12 sps:$4 sm:$0xff]  }
  0x91   :  { %1028 = vmatmul.mubr.bf16.gmra.mxu0 %v5367_v31  ;;  %2488 = vmatprep.subr.bf16.mxu1 %v4904_v0 }
  0x92   :  { %1035 = vmatprep.mubr.bf16.mxu0 %v5373_v32 }
  0x93   :  { %1734 = vmatmul.mubr.bf16.gmra.mxu1 %v5176_v55  ;;  %v5516_v55 = vld [vmem:[%s7331_s0 + $0x1fc] ss:$12 sps:$4 sm:$0xff]  }
  0x94   :  { %1741 = vmatprep.mubr.bf16.mxu1 %v5185_v57  ;;  %2489 = vmatpush2.bf16.msra.mxu1 %v4761_v33  ;;  %v4804_v57 = vld [vmem:[%s7330_s1 + $0x1c8] sm:$0xff]  }
  0x95   :  { %2490 = vmatprep.subr.bf16.mxu1 %v4904_v0 }
  0x98   :  { %2491 = vmatpush2.bf16.msra.mxu1 %v4768_v34 }
  0x99   :  { %1036 = vmatmul.mubr.bf16.gmra.mxu0 %v5389_v35  ;;  %2492 = vmatprep.subr.bf16.mxu1 %v4904_v0 }
  0x9a   :  { %1043 = vmatprep.mubr.bf16.mxu0 %v5395_v36 }
  0x9b   :  { %1742 = vmatmul.mubr.bf16.gmra.mxu1 %v5206_v61 }
  0x9c   :  { %1749 = vmatprep.mubr.bf16.mxu1 %v5212_v62  ;;  %2493 = vmatpush2.bf16.msra.mxu1 %v4775_v37  ;;  %v5561_v62 = vld [vmem:[%s7331_s0 + $0x228] ss:$12 sps:$4 sm:$0xff]  }
  0x9d   :  { %2494 = vmatprep.subr.bf16.mxu1 %v4904_v0 }
  0xa0   :  { %2495 = vmatpush2.bf16.msra.mxu1 %v4782_v41 }
  0xa1   :  { %1044 = vmatmul.mubr.bf16.gmra.mxu0 %v5408_v38  ;;  %2496 = vmatprep.subr.bf16.mxu1 %v4904_v0 }
  0xa2   :  { %1051 = vmatprep.mubr.bf16.mxu0 %v5414_v39 }
  0xa3   :  { %1750 = vmatmul.mubr.bf16.gmra.mxu1 %v5236_v4 }
  0xa4   :  { %1757 = vmatprep.mubr.bf16.mxu1 %v5242_v5  ;;  %2497 = vmatpush2.bf16.msra.mxu1 %v4789_v46 }
  0xa5   :  { %2498 = vmatprep.subr.bf16.mxu1 %v4904_v0 }
  0xa8   :  { %2499 = vmatpush2.bf16.msra.mxu1 %v4796_v52 }
  0xa9   :  { %1052 = vmatmul.mubr.bf16.gmra.mxu0 %v5423_v40  ;;  %2500 = vmatprep.subr.bf16.mxu1 %v4904_v0 }
  0xaa   :  { %1059 = vmatprep.mubr.bf16.mxu0 %v5431_v42 }
  0xab   :  { %1758 = vmatmul.mubr.bf16.gmra.mxu1 %v5257_v8 }
  0xac   :  { %1765 = vmatprep.mubr.bf16.mxu1 %v5262_v9  ;;  %2501 = vmatpush2.bf16.msra.mxu1 %v4804_v57 }
  0xad   :  { %2502 = vmatprep.subr.bf16.mxu1 %v4904_v0 }
  0xb0   :  { %2503 = vmatpush2.bf16.msra.mxu1 %v4811_v63 }
  0xb1   :  { %1060 = vmatmul.mubr.bf16.gmra.mxu0 %v5441_v43 }
  0xb2   :  { %1067 = vmatprep.mubr.bf16.mxu0 %v5446_v44 }
  0xb3   :  { %1766 = vmatmul.mubr.bf16.gmra.mxu1 %v5275_v12  ;;  %v5608_v12 = vld [vmem:[%s7331_s0 + $0x258] ss:$12 sps:$4 sm:$0xff]  }
  0xb4   :  { %1773 = vmatprep.mubr.bf16.mxu1 %v5280_v13  ;;  %v5613_v13 = vld [vmem:[%s7331_s0 + $0x274] ss:$12 sps:$4 sm:$0xff]  }
  0xb9   :  { %1068 = vmatmul.mubr.bf16.gmra.mxu0 %v5455_v45 }
  0xba   :  { %1075 = vmatprep.mubr.bf16.mxu0 %v5463_v47 }
  0xbb   :  { %1774 = vmatmul.mubr.bf16.gmra.mxu1 %v5299_v18  ;;  %v5630_v18 = vld [vmem:[%s7331_s0 + $0x270] ss:$12 sps:$4 sm:$0xff]  }
  0xbc   :  { %1781 = vmatprep.mubr.bf16.mxu1 %v5304_v19  ;;  %v5635_v19 = vld [vmem:[%s7331_s0 + $0x28c] ss:$12 sps:$4 sm:$0xff]  }
  0xc1   :  { %1076 = vmatmul.mubr.bf16.gmra.mxu0 %v5473_v48 }
  0xc2   :  { %1083 = vmatprep.mubr.bf16.mxu0 %v5478_v49 }
  0xc3   :  { %1782 = vmatmul.mubr.bf16.gmra.mxu1 %v5322_v23 }
  0xc4   :  { %1789 = vmatprep.mubr.bf16.mxu1 %v5328_v24 }
  0xc9   :  { %1084 = vmatmul.mubr.bf16.gmra.mxu0 %v5493_v51 }
  0xca   :  { %1091 = vmatprep.mubr.bf16.mxu0 %v5501_v53 }
  0xcb   :  { %1790 = vmatmul.mubr.bf16.gmra.mxu1 %v5344_v27 }
  0xcc   :  { %1797 = vmatprep.mubr.bf16.mxu1 %v5350_v28 }
  0xd1   :  { %1092 = vmatmul.mubr.bf16.gmra.mxu0 %v5511_v54 }
  0xd2   :  { %1099 = vmatprep.mubr.bf16.mxu0 %v5516_v55 }
  0xd3   :  { %1798 = vmatmul.mubr.bf16.gmra.mxu1 %v5367_v31 }
  0xd4   :  { %1805 = vmatprep.mubr.bf16.mxu1 %v5373_v32 }
  0xd9   :  { %1100 = vmatmul.mubr.bf16.gmra.mxu0 %v5525_v56 }
  0xda   :  { %1107 = vmatprep.mubr.bf16.mxu0 %v5533_v58 }
  0xdb   :  { %1806 = vmatmul.mubr.bf16.gmra.mxu1 %v5389_v35 }
  0xdc   :  { %1813 = vmatprep.mubr.bf16.mxu1 %v5395_v36 }
  0xe1   :  { %1108 = vmatmul.mubr.bf16.gmra.mxu0 %v5543_v59 }
  0xe2   :  { %1115 = vmatprep.mubr.bf16.mxu0 %v5548_v60 }
  0xe3   :  { %v5552_v0 = vpop.f32.mrf.mxu1  ;;  %1814 = vmatmul.mubr.bf16.gmra.mxu1 %v5408_v38 }
  0xe4   :  { %1821 = vmatprep.mubr.bf16.mxu1 %v5414_v39 }
  0xe5   :  { %v5556_v61 = vpop.f32.mrf.mxu1 }
  0xe7   :  { %v5571_v2 = vpop.f32.mrf.mxu1 }
  0xe9   :  { %v5573_v3 = vpop.f32.mrf.mxu1  ;;  %1116 = vmatmul.mubr.bf16.gmra.mxu0 %v5561_v62 }
  0xea   :  { %1123 = vmatprep.mubr.bf16.mxu0 %v5569_v1 }
  0xeb   :  { %v5577_v4 = vpop.f32.mrf.mxu1  ;;  %1822 = vmatmul.mubr.bf16.gmra.mxu1 %v5423_v40 }
  0xec   :  { %1829 = vmatprep.mubr.bf16.mxu1 %v5431_v42 }
  0xed   :  { %v5581_v5 = vpop.f32.mrf.mxu1 }
  0xef   :  { %v5593_v8 = vpop.f32.mrf.mxu1 }
  0xf1   :  { %v5595_v9 = vpop.f32.mrf.mxu1  ;;  %1124 = vmatmul.mubr.bf16.gmra.mxu0 %v5586_v6 }
  0xf2   :  { %1131 = vmatprep.mubr.bf16.mxu0 %v5591_v7 }
  0xf3   :  { %v5599_v10 = vpop.f32.mrf.mxu1  ;;  %1830 = vmatmul.mubr.bf16.gmra.mxu1 %v5441_v43 }
  0xf4   :  { %1837 = vmatprep.mubr.bf16.mxu1 %v5446_v44 }
  0xf5   :  { %v5603_v11 = vpop.f32.mrf.mxu1 }
  0xf7   :  { %v5615_v14 = vpop.f32.mrf.mxu1 }
  0xf9   :  { %v5617_v15 = vpop.f32.mrf.mxu1  ;;  %1132 = vmatmul.mubr.bf16.gmra.mxu0 %v5608_v12 }
  0xfa   :  { %1139 = vmatprep.mubr.bf16.mxu0 %v5613_v13 }
  0xfb   :  { %v5621_v16 = vpop.f32.mrf.mxu1  ;;  %1838 = vmatmul.mubr.bf16.gmra.mxu1 %v5455_v45 }
  0xfc   :  { %1845 = vmatprep.mubr.bf16.mxu1 %v5463_v47  ;;  %v5682_v47 = vld [vmem:[%s7331_s0 + $0x2a0] ss:$12 sps:$4 sm:$0xff]  }
  0xfd   :  { %v5625_v17 = vpop.f32.mrf.mxu1 }
  0xff   :  { %v5637_v20 = vpop.f32.mrf.mxu1 }
 0x101   :  { %v5639_v21 = vpop.f32.mrf.mxu1  ;;  %v5641_v22 = vpop.f32.mrf.mxu0  ;;  %1140 = vmatmul.mubr.bf16.gmra.mxu0 %v5630_v18 }
 0x102   :  { %7340 = vst [vmem:[#allocation2_spill] sm:$0xff] %v5641_v22  ;;  %1147 = vmatprep.mubr.bf16.mxu0 %v5635_v19 }
 0x103   :  { %v5645_v23 = vpop.f32.mrf.mxu1  ;;  %1846 = vmatmul.mubr.bf16.gmra.mxu1 %v5473_v48  ;;  %v951_v24 = vpop.f32.mrf.mxu0  ;;  %v5687_v48 = vld [vmem:[%s7331_s0 + $0x2bc] ss:$12 sps:$4 sm:$0xff]  }
 0x104   :  { %1853 = vmatprep.mubr.bf16.mxu1 %v5478_v49 }
 0x105   :  { %v5649_v25 = vpop.f32.mrf.mxu1  ;;  %v5651_v26 = vpop.f32.mrf.mxu0 }
 0x106   :  { %7341 = vst [vmem:[#allocation3_spill] sm:$0xff] %v5651_v26 }
 0x107   :  { %v5663_v33 = vpop.f32.mrf.mxu1  ;;  %v954_v34 = vpop.f32.mrf.mxu0 }
 0x109   :  { %v5665_v37 = vpop.f32.mrf.mxu1  ;;  %v5667_v41 = vpop.f32.mrf.mxu0  ;;  %1148 = vmatmul.mubr.bf16.gmra.mxu0 %v5656_v29 }
 0x10a   :  { %7342 = vst [vmem:[#allocation4_spill] sm:$0xff] %v5667_v41  ;;  %1155 = vmatprep.mubr.bf16.mxu0 %v5661_v30 }
 0x10b   :  { %v5671_v43 = vpop.f32.mrf.mxu1  ;;  %1854 = vmatmul.mubr.bf16.gmra.mxu1 %v5493_v51  ;;  %v959_v44 = vpop.f32.mrf.mxu0 }
 0x10c   :  { %1861 = vmatprep.mubr.bf16.mxu1 %v5501_v53  ;;  %v5708_v44 = vld [vmem:[%s7331_s0 + $0x2b8] ss:$12 sps:$4 sm:$0xff]  }
 0x10d   :  { %v5675_v45 = vpop.f32.mrf.mxu1  ;;  %v5677_v46 = vpop.f32.mrf.mxu0 }
 0x10e   :  { %7343 = vst [vmem:[#allocation5_spill] sm:$0xff] %v5677_v46 }
 0x10f   :  { %v5689_v49 = vpop.f32.mrf.mxu1  ;;  %v962_v51 = vpop.f32.mrf.mxu0 }
 0x110   :  { %v5713_v51 = vld [vmem:[%s7331_s0 + $0x2d4] ss:$12 sps:$4 sm:$0xff]  }
 0x111   :  { %v5691_v52 = vpop.f32.mrf.mxu1  ;;  %v5693_v53 = vpop.f32.mrf.mxu0  ;;  %1156 = vmatmul.mubr.bf16.gmra.mxu0 %v5682_v47 }
 0x112   :  { %7344 = vst [vmem:[#allocation6_spill] sm:$0xff] %v5693_v53  ;;  %1163 = vmatprep.mubr.bf16.mxu0 %v5687_v48 }
 0x113   :  { %v5697_v57 = vpop.f32.mrf.mxu1  ;;  %1862 = vmatmul.mubr.bf16.gmra.mxu1 %v5511_v54  ;;  %v967_v63 = vpop.f32.mrf.mxu0 }
 0x114   :  { %7345 = vst [vmem:[#allocation7_spill] sm:$0xff] %v5697_v57  ;;  %1869 = vmatprep.mubr.bf16.mxu1 %v5516_v55 }
 0x115   :  { %v5701_v24 = vpop.f32.mrf.mxu1  ;;  %v5703_v34 = vpop.f32.mrf.mxu0 }
 0x116   :  { %7346 = vst [vmem:[#allocation8_spill] sm:$0xff] %v5703_v34 }
 0x117   :  { %v5715_v53 = vpop.f32.mrf.mxu1  ;;  %v970_v54 = vpop.f32.mrf.mxu0 }
 0x118   :  { %7347 = vst [vmem:[#allocation9_spill] sm:$0xff] %v5715_v53  ;;  %v5734_v54 = vld [vmem:[%s7331_s0 + $0x2d0] ss:$12 sps:$4 sm:$0xff]  }
 0x119   :  { %v5717_v63 = vpop.f32.mrf.mxu1  ;;  %v5719_v55 = vpop.f32.mrf.mxu0  ;;  %1164 = vmatmul.mubr.bf16.gmra.mxu0 %v5708_v44 }
 0x11a   :  { %7348 = vst [vmem:[#allocation10_spill] sm:$0xff] %v5717_v63  ;;  %7349 = vst [vmem:[#allocation11_spill] sm:$0xff] %v5719_v55  ;;  %1171 = vmatprep.mubr.bf16.mxu0 %v5713_v51  ;;  %v5739_v55 = vld [vmem:[%s7331_s0 + $0x2ec] ss:$12 sps:$4 sm:$0xff]  }
 0x11b   :  { %v5723_v34 = vpop.f32.mrf.mxu1  ;;  %1870 = vmatmul.mubr.bf16.gmra.mxu1 %v5525_v56  ;;  %v975_v26 = vpop.f32.mrf.mxu0 }
 0x11c   :  { %7350 = vst [vmem:[#allocation12_spill] sm:$0xff] %v5723_v34  ;;  %1877 = vmatprep.mubr.bf16.mxu1 %v5533_v58 }
 0x11d   :  { %v5727_v46 = vpop.f32.mrf.mxu1  ;;  %v5729_v22 = vpop.f32.mrf.mxu0 }
 0x11e   :  { %7351 = vst [vmem:[#allocation13_spill] sm:$0xff] %v5727_v46  ;;  %7352 = vst [vmem:[#allocation14_spill] sm:$0xff] %v5729_v22 }
 0x11f   :  { %v5741_v41 = vpop.f32.mrf.mxu1  ;;  %v978_v56 = vpop.f32.mrf.mxu0 }
 0x120   :  { %7353 = vst [vmem:[#allocation15_spill] sm:$0xff] %v5741_v41  ;;  %v5760_v56 = vld [vmem:[%s7331_s0 + $0x2e8] ss:$12 sps:$4 sm:$0xff]  }
 0x121   :  { %v5743_v26 = vpop.f32.mrf.mxu1  ;;  %v5745_v58 = vpop.f32.mrf.mxu0  ;;  %1172 = vmatmul.mubr.bf16.gmra.mxu0 %v5734_v54 }
 0x122   :  { %7354 = vst [vmem:[#allocation16_spill] sm:$0xff] %v5743_v26  ;;  %7355 = vst [vmem:[#allocation17_spill] sm:$0xff] %v5745_v58  ;;  %1179 = vmatprep.mubr.bf16.mxu0 %v5739_v55  ;;  %v4788_v58 = vld [vmem:[%s7331_s0 + $0x304] ss:$12 sps:$4 sm:$0xff]  }
 0x123   :  { %v5749_v22 = vpop.f32.mrf.mxu1  ;;  %1878 = vmatmul.mubr.bf16.gmra.mxu1 %v5543_v59  ;;  %v983_v34 = vpop.f32.mrf.mxu0 }
 0x124   :  { %7356 = vst [vmem:[#allocation18_spill] sm:$0xff] %v5749_v22  ;;  %1885 = vmatprep.mubr.bf16.mxu1 %v5548_v60 }
 0x125   :  { %v5753_v46 = vpop.f32.mrf.mxu1  ;;  %v5755_v53 = vpop.f32.mrf.mxu0 }
 0x126   :  { %7357 = vst [vmem:[#allocation19_spill] sm:$0xff] %v5753_v46  ;;  %7358 = vst [vmem:[#allocation20_spill] sm:$0xff] %v5755_v53 }
 0x127   :  { %v5765_v41 = vpop.f32.mrf.mxu1  ;;  %v986_v22 = vpop.f32.mrf.mxu0 }
 0x128   :  { %7359 = vst [vmem:[#allocation21_spill] sm:$0xff] %v5765_v41  ;;  %v4786_v22 = vld [vmem:[%s7331_s0 + $0x300] ss:$12 sps:$4 sm:$0xff]  }
 0x129   :  { %v5767_v59 = vpop.f32.mrf.mxu1  ;;  %v5769_v34 = vpop.f32.mrf.mxu0  ;;  %1180 = vmatmul.mubr.bf16.gmra.mxu0 %v5760_v56 }
 0x12a   :  { %7360 = vst [vmem:[#allocation22_spill] sm:$0xff] %v5767_v59  ;;  %7361 = vst [vmem:[#allocation23_spill] sm:$0xff] %v5769_v34  ;;  %1187 = vmatprep.mubr.bf16.mxu0 %v4788_v58  ;;  %v4792_v34 = vld [vmem:[%s7331_s0 + $0x31c] ss:$12 sps:$4 sm:$0xff]  }
 0x12b   :  { %v5772_v60 = vpop.f32.mrf.mxu1  ;;  %1886 = vmatmul.mubr.bf16.gmra.mxu1 %v5561_v62  ;;  %v991_v53 = vpop.f32.mrf.mxu0 }
 0x12c   :  { %7362 = vst [vmem:[#allocation24_spill] sm:$0xff] %v5772_v60  ;;  %1893 = vmatprep.mubr.bf16.mxu1 %v5569_v1 }
 0x12d   :  { %v5776_v46 = vpop.f32.mrf.mxu1  ;;  %v5778_v26 = vpop.f32.mrf.mxu0 }
 0x12e   :  { %7363 = vst [vmem:[#allocation25_spill] sm:$0xff] %v5776_v46  ;;  %7364 = vst [vmem:[#allocation26_spill] sm:$0xff] %v5778_v26 }
 0x12f   :  { %v5786_v58 = vpop.f32.mrf.mxu1  ;;  %v994_v60 = vpop.f32.mrf.mxu0 }
 0x130   :  { %7365 = vst [vmem:[#allocation27_spill] sm:$0xff] %v5786_v58  ;;  %v4790_v60 = vld [vmem:[%s7331_s0 + $0x318] ss:$12 sps:$4 sm:$0xff]  }
 0x131   :  { %v5788_v41 = vpop.f32.mrf.mxu1  ;;  %v5790_v62 = vpop.f32.mrf.mxu0  ;;  %1188 = vmatmul.mubr.bf16.gmra.mxu0 %v4786_v22 }
 0x132   :  { %7366 = vst [vmem:[#allocation28_spill] sm:$0xff] %v5788_v41  ;;  %7367 = vst [vmem:[#allocation29_spill] sm:$0xff] %v5790_v62  ;;  %1195 = vmatprep.mubr.bf16.mxu0 %v4792_v34  ;;  %v5804_v62 = vld [vmem:[%s7331_s0 + $0x38] ss:$12 sps:$4 sm:$0xff]  }
 0x133   :  { %v5792_v1 = vpop.f32.mrf.mxu1  ;;  %1894 = vmatmul.mubr.bf16.gmra.mxu1 %v5586_v6  ;;  %v999_v53 = vpop.f32.mrf.mxu0 }
 0x134   :  { %7368 = vst [vmem:[#allocation30_spill] sm:$0xff] %v5792_v1  ;;  %1901 = vmatprep.mubr.bf16.mxu1 %v5591_v7 }
 0x135   :  { %v1705_v26 = vpop.f32.mrf.mxu1  ;;  %v5796_v46 = vpop.f32.mrf.mxu0 }
 0x136   :  { %7369 = vst [vmem:[#allocation31_spill] sm:$0xff] %v5796_v46 }
 0x137   :  { %v5806_v34 = vpop.f32.mrf.mxu1  ;;  %v1002_v22 = vpop.f32.mrf.mxu0 }
 0x138   :  { %7370 = vst [vmem:[#allocation32_spill] sm:$0xff] %v5806_v34  ;;  %v5820_v22 = vld [vmem:[%s7331_s0 + $0x50] ss:$12 sps:$4 sm:$0xff]  }
 0x139   :  { %v1708_v1 = vpop.f32.mrf.mxu1  ;;  %v5808_v6 = vpop.f32.mrf.mxu0  ;;  %1196 = vmatmul.mubr.bf16.gmra.mxu0 %v4790_v60 }
 0x13a   :  { %7371 = vst [vmem:[#allocation33_spill] sm:$0xff] %v5808_v6  ;;  %4377 = vmatprep.mubr.bf16.mxu0 %v5804_v62  ;;  %v5825_v1 = vld [vmem:[%s7331_s0 + $0x68] ss:$12 sps:$4 sm:$0xff]  }
 0x13b   :  { %v5811_v7 = vpop.f32.mrf.mxu1  ;;  %1902 = vmatmul.mubr.bf16.gmra.mxu1 %v5608_v12  ;;  %v1007_v26 = vpop.f32.mrf.mxu0  ;;  %v4797_v12 = vld [vmem:[%s7330_s1 + $0xb0] sm:$0xff]  }
 0x13c   :  { %7372 = vst [vmem:[#allocation34_spill] sm:$0xff] %v5811_v7  ;;  %1909 = vmatprep.mubr.bf16.mxu1 %v5613_v13 }
 0x13d   :  { %v1713_v53 = vpop.f32.mrf.mxu1  ;;  %v5815_v46 = vpop.f32.mrf.mxu0 }
 0x13e   :  { %7373 = vst [vmem:[#allocation35_spill] sm:$0xff] %v5815_v46 }
 0x13f   :  { %v5827_v60 = vpop.f32.mrf.mxu1  ;;  %v1010_v6 = vpop.f32.mrf.mxu0 }
 0x140   :  { %7374 = vst [vmem:[#allocation36_spill] sm:$0xff] %v5827_v60  ;;  %v4800_v6 = vld [vmem:[%s7330_s1 + $0xa8] sm:$0xff]  }
 0x141   :  { %v1716_v13 = vpop.f32.mrf.mxu1  ;;  %v5832_v26 = vpop.f32.mrf.mxu0  ;;  %4378 = vmatmul.mubr.bf16.vlgmr.msra.gmra.mxu0 %v5820_v22 }
 0x142   :  { %7375 = vst [vmem:[#allocation37_spill] sm:$0xff] %v5832_v26  ;;  %4442 = vmatpush3.bf16.msra.mxu0 %v5484_v50  ;;  %4381 = vmatprep.mubr.bf16.mxu0 %v5825_v1  ;;  %v5849_v50 = vld [vmem:[%s7331_s0 + $0x80] ss:$12 sps:$4 sm:$0xff]  }
 0x143   :  { %v5837_v53 = vpop.f32.mrf.mxu1  ;;  %1910 = vmatmul.mubr.bf16.gmra.mxu1 %v5630_v18  ;;  %v1015_v46 = vpop.f32.mrf.mxu0  ;;  %4443 = vmatprep.subr.bf16.mxu0 %v4797_v12  ;;  %v5854_v18 = vld [vmem:[%s7331_s0 + $0x98] ss:$12 sps:$4 sm:$0xff]  }
 0x144   :  { %7376 = vst [vmem:[#allocation38_spill] sm:$0xff] %v5837_v53  ;;  %1917 = vmatprep.mubr.bf16.mxu1 %v5635_v19  ;;  %7378 = vst [vmem:[#allocation40_spill] sm:$0xff] %v5854_v18  ;;  %v4803_v19 = vld [vmem:[%s7330_s1 + $0xa0] sm:$0xff]  }
 0x145   :  { %v1721_v13 = vpop.f32.mrf.mxu1  ;;  %v5844_v26 = vpop.f32.mrf.mxu0 }
 0x146   :  { %7377 = vst [vmem:[#allocation39_spill] sm:$0xff] %v5844_v26  ;;  %4444 = vmatpush3.bf16.msra.mxu0 %v4797_v12 }
 0x147   :  { %v5856_v46 = vpop.f32.mrf.mxu1  ;;  %v1018_v53 = vpop.f32.mrf.mxu0  ;;  %4445 = vmatprep.subr.bf16.mxu0 %v4800_v6 }
 0x148   :  { %7379 = vst [vmem:[#allocation41_spill] sm:$0xff] %v5856_v46  ;;  %v4807_v53 = vld [vmem:[%s7330_s1 + $0x98] sm:$0xff]  }
 0x149   :  { %v1724_v13 = vpop.f32.mrf.mxu1  ;;  %v5861_v26 = vpop.f32.mrf.mxu0  ;;  %4382 = vmatmul.mubr.bf16.gmra.mxu0 %v5849_v50 }
 0x14a   :  { %7380 = vst [vmem:[#allocation42_spill] sm:$0xff] %v5861_v26  ;;  %4446 = vmatpush3.bf16.msra.mxu0 %v4800_v6  ;;  %4385 = vmatprep.mubr.bf16.mxu0 %v5854_v18  ;;  %v5877_v6 = vld [vmem:[%s7331_s0 + $0xb0] ss:$12 sps:$4 sm:$0xff]  }
 0x14b   :  { %v5865_v12 = vpop.f32.mrf.mxu1  ;;  %1918 = vmatmul.mubr.bf16.gmra.mxu1 %v5656_v29  ;;  %v1023_v34 = vpop.f32.mrf.mxu0  ;;  %4447 = vmatprep.subr.bf16.mxu0 %v4803_v19  ;;  %7383 = vst [vmem:[#allocation45_spill] sm:$0xff] %v5877_v6  ;;  %v5882_v29 = vld [vmem:[%s7331_s0 + $0xc8] ss:$12 sps:$4 sm:$0xff]  }
 0x14c   :  { %7381 = vst [vmem:[#allocation43_spill] sm:$0xff] %v5865_v12  ;;  %1925 = vmatprep.mubr.bf16.mxu1 %v5661_v30  ;;  %7384 = vst [vmem:[#allocation46_spill] sm:$0xff] %v5882_v29  ;;  %v4808_v30 = vld [vmem:[%s7330_s1 + $0x90] sm:$0xff]  }
 0x14d   :  { %v1729_v13 = vpop.f32.mrf.mxu1  ;;  %v5872_v46 = vpop.f32.mrf.mxu0 }
 0x14e   :  { %7382 = vst [vmem:[#allocation44_spill] sm:$0xff] %v5872_v46  ;;  %4448 = vmatpush3.bf16.msra.mxu0 %v4803_v19 }
 0x14f   :  { %v5884_v34 = vpop.f32.mrf.mxu1  ;;  %v1026_v26 = vpop.f32.mrf.mxu0  ;;  %4449 = vmatprep.subr.bf16.mxu0 %v4807_v53 }
 0x150   :  { %7385 = vst [vmem:[#allocation47_spill] sm:$0xff] %v5884_v34  ;;  %v4812_v26 = vld [vmem:[%s7330_s1 + $0x88] sm:$0xff]  }
 0x151   :  { %v1732_v13 = vpop.f32.mrf.mxu1  ;;  %v5889_v46 = vpop.f32.mrf.mxu0  ;;  %4386 = vmatmul.mubr.bf16.gmra.mxu0 %v5877_v6 }
 0x152   :  { %7386 = vst [vmem:[#allocation48_spill] sm:$0xff] %v5889_v46  ;;  %4389 = vmatprep.mubr.bf16.mxu0 %v5882_v29  ;;  %4450 = vmatpush3.bf16.msra.mxu0 %v4807_v53  ;;  %v5905_v46 = vld [vmem:[%s7331_s0 + $0xe0] ss:$12 sps:$4 sm:$0xff]  }
 0x153   :  { %v5893_v19 = vpop.f32.mrf.mxu1  ;;  %1926 = vmatmul.mubr.bf16.gmra.mxu1 %v5682_v47  ;;  %v1031_v12 = vpop.f32.mrf.mxu0  ;;  %4451 = vmatprep.subr.bf16.mxu0 %v4808_v30  ;;  %7389 = vst [vmem:[#allocation51_spill] sm:$0xff] %v5905_v46  ;;  %v5910_v47 = vld [vmem:[%s7331_s0 + $0xf8] ss:$12 sps:$4 sm:$0xff]  }
 0x154   :  { %7387 = vst [vmem:[#allocation49_spill] sm:$0xff] %v5893_v19  ;;  %1933 = vmatprep.mubr.bf16.mxu1 %v5687_v48  ;;  %7390 = vst [vmem:[#allocation52_spill] sm:$0xff] %v5910_v47  ;;  %v4815_v48 = vld [vmem:[%s7330_s1 + $0x80] sm:$0xff]  }
 0x155   :  { %v1737_v13 = vpop.f32.mrf.mxu1  ;;  %v5900_v34 = vpop.f32.mrf.mxu0 }
 0x156   :  { %7388 = vst [vmem:[#allocation50_spill] sm:$0xff] %v5900_v34  ;;  %4452 = vmatpush3.bf16.msra.mxu0 %v4808_v30 }
 0x157   :  { %v5912_v12 = vpop.f32.mrf.mxu1  ;;  %v1034_v53 = vpop.f32.mrf.mxu0  ;;  %4453 = vmatprep.subr.bf16.mxu0 %v4812_v26 }
 0x158   :  { %7391 = vst [vmem:[#allocation53_spill] sm:$0xff] %v5912_v12  ;;  %v4818_v53 = vld [vmem:[%s7330_s1 + $0x238] sm:$0xff]  }
 0x159   :  { %v1740_v13 = vpop.f32.mrf.mxu1  ;;  %v5917_v34 = vpop.f32.mrf.mxu0  ;;  %4390 = vmatmul.mubr.bf16.gmra.mxu0 %v5905_v46 }
 0x15a   :  { %7392 = vst [vmem:[#allocation54_spill] sm:$0xff] %v5917_v34  ;;  %4393 = vmatprep.mubr.bf16.mxu0 %v5910_v47  ;;  %4454 = vmatpush3.bf16.msra.mxu0 %v4812_v26  ;;  %v5933_v34 = vld [vmem:[%s7331_s0 + $0x110] ss:$12 sps:$4 sm:$0xff]  }
 0x15b   :  { %v5921_v19 = vpop.f32.mrf.mxu1  ;;  %1934 = vmatmul.mubr.bf16.gmra.mxu1 %v5708_v44  ;;  %v1039_v30 = vpop.f32.mrf.mxu0  ;;  %4455 = vmatprep.subr.bf16.mxu0 %v4815_v48  ;;  %v5938_v44 = vld [vmem:[%s7331_s0 + $0x128] ss:$12 sps:$4 sm:$0xff]  }
 0x15c   :  { %7393 = vst [vmem:[#allocation55_spill] sm:$0xff] %v5921_v19  ;;  %1941 = vmatprep.mubr.bf16.mxu1 %v5713_v51 }
 0x15d   :  { %v1745_v13 = vpop.f32.mrf.mxu1  ;;  %v5928_v12 = vpop.f32.mrf.mxu0 }
 0x15e   :  { %7394 = vst [vmem:[#allocation56_spill] sm:$0xff] %v5928_v12  ;;  %4456 = vmatpush3.bf16.msra.mxu0 %v4815_v48 }
 0x15f   :  { %v5940_v26 = vpop.f32.mrf.mxu1  ;;  %v1042_v30 = vpop.f32.mrf.mxu0  ;;  %4521 = vmatprep.subr.bf16.mxu0 %v4818_v53 }
 0x160   :  { %7395 = vst [vmem:[#allocation57_spill] sm:$0xff] %v5940_v26  ;;  %v4816_v30 = vld [vmem:[%s7331_s0 + $0x8] ss:$12 sps:$4 sm:$0xff]  }
 0x161   :  { %v1748_v19 = vpop.f32.mrf.mxu1  ;;  %v5942_v51 = vpop.f32.mrf.mxu0  ;;  %4394 = vmatmul.mubr.bf16.gmra.mxu0 %v5933_v34 }
 0x162   :  { %4397 = vmatprep.mubr.bf16.mxu0 %v5938_v44  ;;  %v5955_v19 = vld [vmem:[%s7331_s0 + $0x140] ss:$12 sps:$4 sm:$0xff]  }
 0x163   :  { %v5946_v13 = vpop.f32.mrf.mxu1  ;;  %1942 = vmatmul.mubr.bf16.gmra.mxu1 %v5734_v54  ;;  %v1047_v12 = vpop.f32.mrf.mxu0 }
 0x164   :  { %7396 = vst [vmem:[#allocation58_spill] sm:$0xff] %v5946_v13  ;;  %1949 = vmatprep.mubr.bf16.mxu1 %v5739_v55  ;;  %v4834_v12 = vld [vmem:[%s7331_s0 + $0x64] ss:$12 sps:$4 sm:$0xff]  }
 0x165   :  { %v1753_v60 = vpop.f32.mrf.mxu1  ;;  %v5950_v48 = vpop.f32.mrf.mxu0 }
 0x167   :  { %v5960_v26 = vpop.f32.mrf.mxu1  ;;  %v1050_v13 = vpop.f32.mrf.mxu0 }
 0x168   :  { %7397 = vst [vmem:[#allocation59_spill] sm:$0xff] %v5960_v26 }
 0x169   :  { %v1756_v7 = vpop.f32.mrf.mxu1  ;;  %v5962_v54 = vpop.f32.mrf.mxu0  ;;  %4398 = vmatmul.mubr.bf16.gmra.mxu0 %v5955_v19 }
 0x16a   :  { %4457 = vmatprep.mubr.bf16.mxu0 %v4816_v30  ;;  %v4817_v7 = vld [vmem:[%s7331_s0 + $0x20] ss:$12 sps:$4 sm:$0xff]  }
 0x16b   :  { %v5965_v55 = vpop.f32.mrf.mxu1  ;;  %1950 = vmatmul.mubr.bf16.gmra.mxu1 %v5760_v56  ;;  %v1055_v60 = vpop.f32.mrf.mxu0  ;;  %v4819_v56 = vld [vmem:[%s7330_s1 + $0x230] sm:$0xff]  }
 0x16c   :  { %7398 = vst [vmem:[#allocation60_spill] sm:$0xff] %v5965_v55  ;;  %2504 = vmatprep.mubr.bf16.mxu1 %v4834_v12  ;;  %v4835_v12 = vld [vmem:[%s7331_s0 + $0x60] ss:$12 sps:$4 sm:$0xff]  }
 0x16d   :  { %v1761_v58 = vpop.f32.mrf.mxu1  ;;  %v5971_v41 = vpop.f32.mrf.mxu0 }
 0x16f   :  { %v5976_v13 = vpop.f32.mrf.mxu1  ;;  %v1058_v30 = vpop.f32.mrf.mxu0 }
 0x170   :  { %7399 = vst [vmem:[#allocation61_spill] sm:$0xff] %v5976_v13  ;;  %v4820_v30 = vld [vmem:[%s7330_s1 + $0x228] sm:$0xff]  }
 0x171   :  { %v1764_v60 = vpop.f32.mrf.mxu1  ;;  %v5981_v26 = vpop.f32.mrf.mxu0  ;;  %4458 = vmatmul.mubr.bf16.vlgmr.msra.gmra.mxu0 %v4817_v7  ;;  %v4836_v7 = vld [vmem:[%s7331_s0 + $0x7c] ss:$12 sps:$4 sm:$0xff]  }
 0x172   :  { %4522 = vmatpush3.bf16.msra.mxu0 %v4818_v53  ;;  %4461 = vmatprep.mubr.bf16.mxu0 %v5804_v62 }
 0x173   :  { %v5984_v58 = vpop.f32.mrf.mxu1  ;;  %2505 = vmatmul.mubr.bf16.vlgmr.msra.gmra.mxu1 %v4835_v12  ;;  %v1063_v13 = vpop.f32.mrf.mxu0  ;;  %4523 = vmatprep.subr.bf16.mxu0 %v4819_v56 }
 0x174   :  { %7400 = vst [vmem:[#allocation62_spill] sm:$0xff] %v5984_v58  ;;  %2512 = vmatprep.mubr.bf16.mxu1 %v4836_v7  ;;  %v4821_v13 = vld [vmem:[%s7330_s1 + $0x220] sm:$0xff]  }
 0x175   :  { %v1769_v53 = vpop.f32.mrf.mxu1  ;;  %v5995_v62 = vpop.f32.mrf.mxu0 }
 0x176   :  { %4524 = vmatpush3.bf16.msra.mxu0 %v4819_v56  ;;  %v4837_v56 = vld [vmem:[%s7331_s0 + $0x78] ss:$12 sps:$4 sm:$0xff]  }
 0x177   :  { %v5997_v60 = vpop.f32.mrf.mxu1  ;;  %v1066_v58 = vpop.f32.mrf.mxu0  ;;  %4525 = vmatprep.subr.bf16.mxu0 %v4820_v30  ;;  %v4822_v53 = vld [vmem:[%s7330_s1 + $0x218] sm:$0xff]  }
 0x178   :  { %7401 = vst [vmem:[#allocation63_spill] sm:$0xff] %v5997_v60 }
 0x179   :  { %v1772_v12 = vpop.f32.mrf.mxu1  ;;  %v6002_v55 = vpop.f32.mrf.mxu0  ;;  %4462 = vmatmul.mubr.bf16.gmra.mxu0 %v5820_v22  ;;  %v4838_v22 = vld [vmem:[%s7331_s0 + $0x94] ss:$12 sps:$4 sm:$0xff]  }
 0x17a   :  { %4465 = vmatprep.mubr.bf16.mxu0 %v5825_v1  ;;  %4526 = vmatpush3.bf16.msra.mxu0 %v4820_v30 }
 0x17b   :  { %v6006_v7 = vpop.f32.mrf.mxu1  ;;  %2513 = vmatmul.mubr.bf16.gmra.mxu1 %v4837_v56  ;;  %v1071_v58 = vpop.f32.mrf.mxu0  ;;  %4527 = vmatprep.subr.bf16.mxu0 %v4821_v13  ;;  %v4823_v56 = vld [vmem:[%s7330_s1 + $0x210] sm:$0xff]  }
 0x17c   :  { %7402 = vst [vmem:[#allocation64_spill] sm:$0xff] %v6006_v7  ;;  %2520 = vmatprep.mubr.bf16.mxu1 %v4838_v22 }
 0x17d   :  { %v1777_v12 = vpop.f32.mrf.mxu1  ;;  %v6017_v30 = vpop.f32.mrf.mxu0 }
 0x17e   :  { %4528 = vmatpush3.bf16.msra.mxu0 %v4821_v13  ;;  %v4839_v13 = vld [vmem:[%s7331_s0 + $0x90] ss:$12 sps:$4 sm:$0xff]   ;;  %v4824_v12 = vld [vmem:[%s7330_s1 + $0x208] sm:$0xff]  }
 0x17f   :  { %v6019_v60 = vpop.f32.mrf.mxu1  ;;  %v1074_v7 = vpop.f32.mrf.mxu0  ;;  %4529 = vmatprep.subr.bf16.mxu0 %v4822_v53 }
 0x180   :  { %7403 = vst [vmem:[#allocation65_spill] sm:$0xff] %v6019_v60 }
 0x181   :  { %v1780_v58 = vpop.f32.mrf.mxu1  ;;  %v6024_v59 = vpop.f32.mrf.mxu0  ;;  %4466 = vmatmul.mubr.bf16.gmra.mxu0 %v5849_v50 }
 0x182   :  { %4469 = vmatprep.mubr.bf16.mxu0 %v5854_v18  ;;  %4530 = vmatpush3.bf16.msra.mxu0 %v4822_v53  ;;  %v4840_v58 = vld [vmem:[%s7331_s0 + $0xac] ss:$12 sps:$4 sm:$0xff]  }
 0x183   :  { %v6028_v22 = vpop.f32.mrf.mxu1  ;;  %2521 = vmatmul.mubr.bf16.gmra.mxu1 %v4839_v13  ;;  %v1079_v7 = vpop.f32.mrf.mxu0  ;;  %4531 = vmatprep.subr.bf16.mxu0 %v4823_v56  ;;  %v4825_v13 = vld [vmem:[%s7330_s1 + $0x200] sm:$0xff]  }
 0x184   :  { %7404 = vst [vmem:[#allocation66_spill] sm:$0xff] %v6028_v22  ;;  %2528 = vmatprep.mubr.bf16.mxu1 %v4840_v58  ;;  %v4842_v58 = vld [vmem:[%s7331_s0 + $0xc4] ss:$12 sps:$4 sm:$0xff]  }
 0x185   :  { %v1785_v60 = vpop.f32.mrf.mxu1  ;;  %v6039_v53 = vpop.f32.mrf.mxu0 }
 0x186   :  { %4532 = vmatpush3.bf16.msra.mxu0 %v4823_v56  ;;  %v4841_v56 = vld [vmem:[%s7331_s0 + $0xa8] ss:$12 sps:$4 sm:$0xff]  }
 0x187   :  { %v6041_v22 = vpop.f32.mrf.mxu1  ;;  %v1082_v57 = vpop.f32.mrf.mxu0  ;;  %4533 = vmatprep.subr.bf16.mxu0 %v4824_v12 }
 0x188   :  { %7405 = vst [vmem:[#allocation67_spill] sm:$0xff] %v6041_v22 }
 0x189   :  { %v1788_v7 = vpop.f32.mrf.mxu1  ;;  %v6046_v63 = vpop.f32.mrf.mxu0  ;;  %4470 = vmatmul.mubr.bf16.gmra.mxu0 %v5877_v6 }
 0x18a   :  { %4473 = vmatprep.mubr.bf16.mxu0 %v5882_v29  ;;  %4534 = vmatpush3.bf16.msra.mxu0 %v4824_v12 }
 0x18b   :  { %v6050_v60 = vpop.f32.mrf.mxu1  ;;  %2529 = vmatmul.mubr.bf16.gmra.mxu1 %v4841_v56  ;;  %v1087_v57 = vpop.f32.mrf.mxu0  ;;  %4535 = vmatprep.subr.bf16.mxu0 %v4825_v13  ;;  %v1335_v56 = vadd.f32 %v5556_v61, %v5942_v51  ;;  %v1338_v61 = vadd.f32 %v5573_v3, %v5950_v48 }
 0x18c   :  { %7406 = vst [vmem:[#allocation68_spill] sm:$0xff] %v6050_v60  ;;  %2536 = vmatprep.mubr.bf16.mxu1 %v4842_v58  ;;  %v4843_v58 = vld [vmem:[%s7331_s0 + $0xc0] ss:$12 sps:$4 sm:$0xff]  }
 0x18d   :  { %v1793_v7 = vpop.f32.mrf.mxu1  ;;  %v6058_v22 = vpop.f32.mrf.mxu0 }
 0x18e   :  { %4536 = vmatpush3.bf16.msra.mxu0 %v4825_v13 }
 0x18f   :  { %v6060_v29 = vpop.f32.mrf.mxu1  ;;  %v1090_v12 = vpop.f32.mrf.mxu0 }
 0x190   :  { %7407 = vst [vmem:[#allocation69_spill] sm:$0xff] %v6060_v29 }
 0x191   :  { %v1796_v60 = vpop.f32.mrf.mxu1  ;;  %v6062_v6 = vpop.f32.mrf.mxu0  ;;  %4474 = vmatmul.mubr.bf16.gmra.mxu0 %v5905_v46 }
 0x192   :  { %4477 = vmatprep.mubr.bf16.mxu0 %v5910_v47  ;;  %v4844_v60 = vld [vmem:[%s7331_s0 + $0xdc] ss:$12 sps:$4 sm:$0xff]  }
 0x193   :  { %v1799_v57 = vpop.f32.mrf.mxu1  ;;  %2537 = vmatmul.mubr.bf16.gmra.mxu1 %v4843_v58  ;;  %v1095_v13 = vpop.f32.mrf.mxu0 }
 0x194   :  { %v6071_v7 = vadd.f32 %v1799_v57, %v1335_v56  ;;  %2544 = vmatprep.mubr.bf16.mxu1 %v4844_v60  ;;  %v1343_v56 = vadd.f32 %v5552_v0, %v5962_v54  ;;  %v4845_v13 = vld [vmem:[%s7331_s0 + $0xd8] ss:$12 sps:$4 sm:$0xff]   ;;  %v1346_v0 = vadd.f32 %v5571_v2, %v5971_v41  ;;  %v4848_v41 = vld [vmem:[%s7331_s0 + $0xf0] ss:$12 sps:$4 sm:$0xff]  }
 0x195   :  { %v1801_v12 = vpop.f32.mrf.mxu1  ;;  %v6076_v29 = vpop.f32.mrf.mxu0 }
 0x197   :  { %v1802_v51 = vpop.f32.mrf.mxu1  ;;  %v1098_v47 = vpop.f32.mrf.mxu0 }
 0x198   :  { %v6080_v46 = vadd.f32 %v1802_v51, %v1338_v61 }
 0x199   :  { %v1804_v18 = vpop.f32.mrf.mxu1  ;;  %v6082_v58 = vpop.f32.mrf.mxu0  ;;  %4478 = vmatmul.mubr.bf16.gmra.mxu0 %v5933_v34 }
 0x19a   :  { %7408 = vst [vmem:[#allocation70_spill] sm:$0xff] %v6080_v46  ;;  %4481 = vmatprep.mubr.bf16.mxu0 %v5938_v44  ;;  %v4846_v18 = vld [vmem:[%s7331_s0 + $0xf4] ss:$12 sps:$4 sm:$0xff]  }
 0x19b   :  { %v1807_v57 = vpop.f32.mrf.mxu1  ;;  %2545 = vmatmul.mubr.bf16.gmra.mxu1 %v4845_v13  ;;  %v1103_v3 = vpop.f32.mrf.mxu0 }
 0x19c   :  { %v6091_v47 = vadd.f32 %v1807_v57, %v1343_v56  ;;  %2552 = vmatprep.mubr.bf16.mxu1 %v4846_v18  ;;  %v1351_v56 = vadd.f32 %v5581_v5, %v5981_v26  ;;  %v6110_v57 = vld [vmem:[%s7331_s0 + $0x158] ss:$12 sps:$4 sm:$0xff]  }
 0x19d   :  { %v1809_v48 = vpop.f32.mrf.mxu1  ;;  %v6096_v60 = vpop.f32.mrf.mxu0  ;;  %v4849_v5 = vld [vmem:[%s7331_s0 + $0x10c] ss:$12 sps:$4 sm:$0xff]  }
 0x19f   :  { %v1810_v54 = vpop.f32.mrf.mxu1  ;;  %v1106_v12 = vpop.f32.mrf.mxu0 }
 0x1a0   :  { %v6100_v61 = vadd.f32 %v1810_v54, %v1346_v0  ;;  %v1354_v0 = vadd.f32 %v5595_v9, %v5995_v62  ;;  %v6140_v9 = vld [vmem:[%s7331_s0 + $0x188] ss:$12 sps:$4 sm:$0xff]  }
 0x1a1   :  { %v1812_v51 = vpop.f32.mrf.mxu1  ;;  %v6102_v13 = vpop.f32.mrf.mxu0  ;;  %4482 = vmatmul.mubr.bf16.gmra.mxu0 %v5955_v19 }
 0x1a2   :  { %4485 = vmatprep.mubr.bf16.mxu0 %v6110_v57 }
 0x1a3   :  { %v1815_v2 = vpop.f32.mrf.mxu1  ;;  %2553 = vmatmul.mubr.bf16.gmra.mxu1 %v4848_v41  ;;  %v1111_v3 = vpop.f32.mrf.mxu0 }
 0x1a4   :  { %v6116_v18 = vadd.f32 %v1815_v2, %v1351_v56  ;;  %2560 = vmatprep.mubr.bf16.mxu1 %v4849_v5  ;;  %v6132_v56 = vld [vmem:[%s7331_s0 + $0x170] ss:$12 sps:$4 sm:$0xff]   ;;  %v1359_v2 = vadd.f32 %v5577_v4, %v6002_v55  ;;  %v1362_v4 = vadd.f32 %v5593_v8, %v6017_v30  ;;  %v6166_v8 = vld [vmem:[%s7331_s0 + $0x1b8] ss:$12 sps:$4 sm:$0xff]  }
 0x1a5   :  { %v1817_v26 = vpop.f32.mrf.mxu1  ;;  %v6121_v48 = vpop.f32.mrf.mxu0 }
 0x1a7   :  { %v1818_v54 = vpop.f32.mrf.mxu1  ;;  %v1114_v12 = vpop.f32.mrf.mxu0 }
 0x1a8   :  { %v6125_v51 = vadd.f32 %v1818_v54, %v1354_v0 }
 0x1a9   :  { %v1820_v46 = vpop.f32.mrf.mxu1  ;;  %v6127_v41 = vpop.f32.mrf.mxu0  ;;  %4486 = vmatmul.mubr.bf16.gmra.mxu0 %v6132_v56 }
 0x1aa   :  { %7409 = vst [vmem:[#allocation71_spill] sm:$0xff] %v6125_v51  ;;  %4489 = vmatprep.mubr.bf16.mxu0 %v6140_v9 }
 0x1ab   :  { %v1823_v46 = vpop.f32.mrf.mxu1  ;;  %2561 = vmatmul.mubr.bf16.gmra.mxu1 %v5344_v27  ;;  %v1119_v62 = vpop.f32.mrf.mxu0  ;;  %v6158_v27 = vld [vmem:[%s7331_s0 + $0x1a0] ss:$12 sps:$4 sm:$0xff]  }
 0x1ac   :  { %v6144_v3 = vadd.f32 %v1823_v46, %v1359_v2  ;;  %2568 = vmatprep.mubr.bf16.mxu1 %v5350_v28  ;;  %v1367_v28 = vadd.f32 %v5603_v11, %v6024_v59  ;;  %v1370_v11 = vadd.f32 %v5617_v15, %v6039_v53  ;;  %v6192_v15 = vld [vmem:[%s7331_s0 + $0x1e8] ss:$12 sps:$4 sm:$0xff]  }
 0x1ad   :  { %v1825_v5 = vpop.f32.mrf.mxu1  ;;  %v6147_v26 = vpop.f32.mrf.mxu0 }
 0x1af   :  { %v1826_v55 = vpop.f32.mrf.mxu1  ;;  %v1122_v0 = vpop.f32.mrf.mxu0 }
 0x1b0   :  { %v6151_v54 = vadd.f32 %v1826_v55, %v1362_v4 }
 0x1b1   :  { %v1828_v12 = vpop.f32.mrf.mxu1  ;;  %v6153_v51 = vpop.f32.mrf.mxu0  ;;  %4490 = vmatmul.mubr.bf16.gmra.mxu0 %v6158_v27 }
 0x1b2   :  { %4493 = vmatprep.mubr.bf16.mxu0 %v6166_v8 }
 0x1b3   :  { %v1831_v30 = vpop.f32.mrf.mxu1  ;;  %2569 = vmatmul.mubr.bf16.gmra.mxu1 %v5367_v31  ;;  %v1127_v2 = vpop.f32.mrf.mxu0  ;;  %v6184_v31 = vld [vmem:[%s7331_s0 + $0x1d0] ss:$12 sps:$4 sm:$0xff]  }
 0x1b4   :  { %v6170_v46 = vadd.f32 %v1831_v30, %v1367_v28  ;;  %2576 = vmatprep.mubr.bf16.mxu1 %v5373_v32  ;;  %v1375_v32 = vadd.f32 %v5599_v10, %v6046_v63  ;;  %v1378_v10 = vadd.f32 %v5615_v14, %v6058_v22  ;;  %v6218_v14 = vld [vmem:[%s7331_s0 + $0x218] ss:$12 sps:$4 sm:$0xff]  }
 0x1b5   :  { %v1833_v62 = vpop.f32.mrf.mxu1  ;;  %v6173_v5 = vpop.f32.mrf.mxu0 }
 0x1b7   :  { %v1834_v59 = vpop.f32.mrf.mxu1  ;;  %v1130_v4 = vpop.f32.mrf.mxu0 }
 0x1b8   :  { %v6177_v55 = vadd.f32 %v1834_v59, %v1370_v11 }
 0x1b9   :  { %v1836_v0 = vpop.f32.mrf.mxu1  ;;  %v6179_v12 = vpop.f32.mrf.mxu0  ;;  %4494 = vmatmul.mubr.bf16.gmra.mxu0 %v6184_v31 }
 0x1ba   :  { %4497 = vmatprep.mubr.bf16.mxu0 %v6192_v15 }
 0x1bb   :  { %v1839_v53 = vpop.f32.mrf.mxu1  ;;  %2577 = vmatmul.mubr.bf16.gmra.mxu1 %v5389_v35  ;;  %v1135_v28 = vpop.f32.mrf.mxu0  ;;  %v6210_v35 = vld [vmem:[%s7331_s0 + $0x200] ss:$12 sps:$4 sm:$0xff]  }
 0x1bc   :  { %v6196_v30 = vadd.f32 %v1839_v53, %v1375_v32  ;;  %2584 = vmatprep.mubr.bf16.mxu1 %v5395_v36  ;;  %v1383_v36 = vadd.f32 %v5625_v17, %v6062_v6  ;;  %v1386_v17 = vadd.f32 %v5639_v21, %v6076_v29  ;;  %v6244_v21 = vld [vmem:[%s7331_s0 + $0x248] ss:$12 sps:$4 sm:$0xff]  }
 0x1bd   :  { %v1841_v2 = vpop.f32.mrf.mxu1  ;;  %v6199_v62 = vpop.f32.mrf.mxu0 }
 0x1bf   :  { %v1842_v63 = vpop.f32.mrf.mxu1  ;;  %v1138_v11 = vpop.f32.mrf.mxu0 }
 0x1c0   :  { %v6203_v59 = vadd.f32 %v1842_v63, %v1378_v10 }
 0x1c1   :  { %v1844_v4 = vpop.f32.mrf.mxu1  ;;  %v6205_v0 = vpop.f32.mrf.mxu0  ;;  %4498 = vmatmul.mubr.bf16.gmra.mxu0 %v6210_v35 }
 0x1c2   :  { %4501 = vmatprep.mubr.bf16.mxu0 %v6218_v14 }
 0x1c3   :  { %v1847_v22 = vpop.f32.mrf.mxu1  ;;  %2585 = vmatmul.mubr.bf16.gmra.mxu1 %v5408_v38  ;;  %v1143_v32 = vpop.f32.mrf.mxu0  ;;  %v6236_v38 = vld [vmem:[%s7331_s0 + $0x230] ss:$12 sps:$4 sm:$0xff]  }
 0x1c4   :  { %v6222_v53 = vadd.f32 %v1847_v22, %v1383_v36  ;;  %2592 = vmatprep.mubr.bf16.mxu1 %v5414_v39  ;;  %v1391_v39 = vadd.f32 %v5621_v16, %v6082_v58  ;;  %v1394_v16 = vadd.f32 %v5637_v20, %v6096_v60  ;;  %v6270_v20 = vld [vmem:[%s7331_s0 + $0x278] ss:$12 sps:$4 sm:$0xff]  }
 0x1c5   :  { %v1849_v28 = vpop.f32.mrf.mxu1  ;;  %v6225_v2 = vpop.f32.mrf.mxu0 }
 0x1c7   :  { %v1850_v6 = vpop.f32.mrf.mxu1  ;;  %v1146_v10 = vpop.f32.mrf.mxu0 }
 0x1c8   :  { %v6229_v63 = vadd.f32 %v1850_v6, %v1386_v17 }
 0x1c9   :  { %v1852_v11 = vpop.f32.mrf.mxu1  ;;  %v6231_v4 = vpop.f32.mrf.mxu0  ;;  %4502 = vmatmul.mubr.bf16.gmra.mxu0 %v6236_v38 }
 0x1ca   :  { %7410 = vst [vmem:[#allocation72_spill] sm:$0xff] %v6229_v63  ;;  %4505 = vmatprep.mubr.bf16.mxu0 %v6244_v21 }
 0x1cb   :  { %v1855_v29 = vpop.f32.mrf.mxu1  ;;  %2593 = vmatmul.mubr.bf16.gmra.mxu1 %v5423_v40  ;;  %v1151_v36 = vpop.f32.mrf.mxu0  ;;  %v6262_v40 = vld [vmem:[%s7331_s0 + $0x260] ss:$12 sps:$4 sm:$0xff]  }
 0x1cc   :  { %v6248_v22 = vadd.f32 %v1855_v29, %v1391_v39  ;;  %2600 = vmatprep.mubr.bf16.mxu1 %v5431_v42  ;;  %v1399_v42 = vadd.f32 %v5649_v25, %v6102_v13  ;;  %v4862_v39 = vld [vmem:[%s7331_s0 + $0x180] ss:$12 sps:$4 sm:$0xff]   ;;  %v4863_v25 = vld [vmem:[%s7331_s0 + $0x19c] ss:$12 sps:$4 sm:$0xff]  }
 0x1cd   :  { %v1857_v32 = vpop.f32.mrf.mxu1  ;;  %v6251_v28 = vpop.f32.mrf.mxu0 }
 0x1cf   :  { %v1858_v58 = vpop.f32.mrf.mxu1  ;;  %v1154_v17 = vpop.f32.mrf.mxu0 }
 0x1d0   :  { %v6255_v6 = vadd.f32 %v1858_v58, %v1394_v16  ;;  %v1402_v16 = vadd.f32 %v5665_v37, %v6121_v48  ;;  %v6300_v37 = vld [vmem:[%s7331_s0 + $0x2a8] ss:$12 sps:$4 sm:$0xff]  }
 0x1d1   :  { %v1860_v10 = vpop.f32.mrf.mxu1  ;;  %v6257_v11 = vpop.f32.mrf.mxu0  ;;  %4506 = vmatmul.mubr.bf16.gmra.mxu0 %v6262_v40 }
 0x1d2   :  { %4509 = vmatprep.mubr.bf16.mxu0 %v6270_v20 }
 0x1d3   :  { %v1863_v60 = vpop.f32.mrf.mxu1  ;;  %2601 = vmatmul.mubr.bf16.gmra.mxu1 %v4862_v39  ;;  %v1159_v29 = vpop.f32.mrf.mxu0 }
 0x1d4   :  { %v6276_v36 = vadd.f32 %v1863_v60, %v1399_v42  ;;  %2608 = vmatprep.mubr.bf16.mxu1 %v4863_v25  ;;  %v6292_v42 = vld [vmem:[%s7331_s0 + $0x290] ss:$12 sps:$4 sm:$0xff]   ;;  %v1407_v60 = vadd.f32 %v5645_v23, %v6127_v41  ;;  %v4867_v23 = vld [vmem:[%s7331_s0 + $0x1b4] ss:$12 sps:$4 sm:$0xff]  }
 0x1d5   :  { %v1865_v13 = vpop.f32.mrf.mxu1  ;;  %v6281_v32 = vpop.f32.mrf.mxu0 }
 0x1d6   :  { %7411 = vst [vmem:[#allocation73_spill] sm:$0xff] %v6276_v36 }
 0x1d7   :  { %v1866_v58 = vpop.f32.mrf.mxu1  ;;  %v1162_v17 = vpop.f32.mrf.mxu0 }
 0x1d8   :  { %v6285_v10 = vadd.f32 %v1866_v58, %v1402_v16  ;;  %v1410_v16 = vadd.f32 %v5663_v33, %v6147_v26  ;;  %v6330_v33 = vld [vmem:[%s7331_s0 + $0x2d8] ss:$12 sps:$4 sm:$0xff]  }
 0x1d9   :  { %v1868_v63 = vpop.f32.mrf.mxu1  ;;  %v6287_v39 = vpop.f32.mrf.mxu0  ;;  %4510 = vmatmul.mubr.bf16.gmra.mxu0 %v6292_v42 }
 0x1da   :  { %7412 = vst [vmem:[#allocation74_spill] sm:$0xff] %v6285_v10  ;;  %4513 = vmatprep.mubr.bf16.mxu0 %v6300_v37  ;;  %v4866_v63 = vld [vmem:[%s7331_s0 + $0x198] ss:$12 sps:$4 sm:$0xff]  }
 0x1db   :  { %v1871_v48 = vpop.f32.mrf.mxu1  ;;  %2609 = vmatmul.mubr.bf16.gmra.mxu1 %v4866_v63  ;;  %v1167_v29 = vpop.f32.mrf.mxu0 }
 0x1dc   :  { %v6306_v25 = vadd.f32 %v1871_v48, %v1407_v60  ;;  %2616 = vmatprep.mubr.bf16.mxu1 %v4867_v23  ;;  %v6322_v60 = vld [vmem:[%s7331_s0 + $0x2c0] ss:$12 sps:$4 sm:$0xff]   ;;  %v1415_v48 = vadd.f32 %v5675_v45, %v6153_v51 }
 0x1dd   :  { %v1873_v41 = vpop.f32.mrf.mxu1  ;;  %v6311_v13 = vpop.f32.mrf.mxu0  ;;  %v4871_v45 = vld [vmem:[%s7331_s0 + $0x1cc] ss:$12 sps:$4 sm:$0xff]  }
 0x1de   :  { %7413 = vst [vmem:[#allocation75_spill] sm:$0xff] %v6306_v25 }
 0x1df   :  { %v1874_v58 = vpop.f32.mrf.mxu1  ;;  %v1170_v17 = vpop.f32.mrf.mxu0 }
 0x1e0   :  { %v6315_v10 = vadd.f32 %v1874_v58, %v1410_v16  ;;  %v1418_v16 = vadd.f32 %v5691_v52, %v6173_v5  ;;  %v4873_v5 = vld [vmem:[%s7331_s0 + $0x1c8] ss:$12 sps:$4 sm:$0xff]  }
 0x1e1   :  { %v1876_v36 = vpop.f32.mrf.mxu1  ;;  %v6317_v63 = vpop.f32.mrf.mxu0  ;;  %4514 = vmatmul.mubr.bf16.gmra.mxu0 %v6322_v60 }
 0x1e2   :  { %7414 = vst [vmem:[#allocation76_spill] sm:$0xff] %v6315_v10  ;;  %4517 = vmatprep.mubr.bf16.mxu0 %v6330_v33  ;;  %v4870_v36 = vld [vmem:[%s7331_s0 + $0x1b0] ss:$12 sps:$4 sm:$0xff]  }
 0x1e3   :  { %v1879_v26 = vpop.f32.mrf.mxu1  ;;  %2617 = vmatmul.mubr.bf16.gmra.mxu1 %v4870_v36  ;;  %v1175_v29 = vpop.f32.mrf.mxu0 }
 0x1e4   :  { %v6336_v23 = vadd.f32 %v1879_v26, %v1415_v48  ;;  %2624 = vmatprep.mubr.bf16.mxu1 %v4871_v45  ;;  %v6352_v48 = vld [vmem:[%s7331_s0 + $0x2f0] ss:$12 sps:$4 sm:$0xff]   ;;  %v1423_v26 = vadd.f32 %v5671_v43, %v6179_v12  ;;  %v1426_v43 = vadd.f32 %v5689_v49, %v6199_v62 }
 0x1e5   :  { %v1881_v51 = vpop.f32.mrf.mxu1  ;;  %v6341_v41 = vpop.f32.mrf.mxu0  ;;  %v4874_v45 = vld [vmem:[%s7331_s0 + $0x1e4] ss:$12 sps:$4 sm:$0xff]  }
 0x1e6   :  { %7415 = vst [vmem:[#allocation77_spill] sm:$0xff] %v6336_v23 }
 0x1e7   :  { %v1882_v58 = vpop.f32.mrf.mxu1  ;;  %v1178_v17 = vpop.f32.mrf.mxu0 }
 0x1e8   :  { %v6345_v10 = vadd.f32 %v1882_v58, %v1418_v16 }
 0x1e9   :  { %v1884_v25 = vpop.f32.mrf.mxu1  ;;  %v6347_v36 = vpop.f32.mrf.mxu0  ;;  %4518 = vmatmul.mubr.bf16.gmra.mxu0 %v6352_v48 }
 0x1ea   :  { %7416 = vst [vmem:[#allocation78_spill] sm:$0xff] %v6345_v10  ;;  %4537 = vmatprep.mubr.bf16.mxu0 %v5825_v1 }
 0x1eb   :  { %v1887_v52 = vpop.f32.mrf.mxu1  ;;  %2625 = vmatmul.mubr.bf16.gmra.mxu1 %v4873_v5  ;;  %v1183_v25 = vpop.f32.mrf.mxu0 }
 0x1ec   :  { %v6361_v29 = vadd.f32 %v1887_v52, %v1423_v26  ;;  %2632 = vmatprep.mubr.bf16.mxu1 %v4874_v45  ;;  %v1431_v26 = vadd.f32 %v5701_v24, %v6205_v0  ;;  %v7418_v52 = vld [vmem:[#allocation40_spill] sm:$0xff]  ;;  %v4875_v45 = vld [vmem:[%s7331_s0 + $0x1e0] ss:$12 sps:$4 sm:$0xff]  }
 0x1ed   :  { %v1889_v51 = vpop.f32.mrf.mxu1  ;;  %v6366_v16 = vpop.f32.mrf.mxu0  ;;  %v7420_v24 = vld [vmem:[#allocation10_spill] sm:$0xff] }
 0x1ee   :  { %v4876_v51 = vld [vmem:[%s7331_s0 + $0x1fc] ss:$12 sps:$4 sm:$0xff]   ;;  %v1434_v0 = vadd.f32 %v7420_v24, %v6225_v2 }
 0x1ef   :  { %v1890_v1 = vpop.f32.mrf.mxu1  ;;  %v1186_v12 = vpop.f32.mrf.mxu0 }
 0x1f0   :  { %v6370_v58 = vadd.f32 %v1890_v1, %v1426_v43 }
 0x1f1   :  { %v1892_v17 = vpop.f32.mrf.mxu1  ;;  %v6372_v5 = vpop.f32.mrf.mxu0  ;;  %4538 = vmatmul.mubr.bf16.vlgmr.msra.gmra.mxu0 %v5849_v50 }
 0x1f2   :  { %7417 = vst [vmem:[#allocation79_spill] sm:$0xff] %v6370_v58  ;;  %4541 = vmatprep.mubr.bf16.mxu0 %v7418_v52  ;;  %v7457_v58 = vld [vmem:[#allocation3_spill] sm:$0xff] }
 0x1f3   :  { %v1895_v25 = vpop.f32.mrf.mxu1  ;;  %2633 = vmatmul.mubr.bf16.gmra.mxu1 %v4875_v45  ;;  %v1191_v49 = vpop.f32.mrf.mxu0 }
 0x1f4   :  { %v6381_v62 = vadd.f32 %v1895_v25, %v1431_v26  ;;  %2640 = vmatprep.mubr.bf16.mxu1 %v4876_v51  ;;  %v7422_v26 = vld [vmem:[#allocation45_spill] sm:$0xff]  ;;  %v7423_v25 = vld [vmem:[#allocation7_spill] sm:$0xff] }
 0x1f5   :  { %v1897_v50 = vpop.f32.mrf.mxu1  ;;  %v6386_v43 = vpop.f32.mrf.mxu0  ;;  %v1439_v49 = vadd.f32 %v7423_v25, %v6231_v4  ;;  %v7426_v4 = vld [vmem:[#allocation9_spill] sm:$0xff] }
 0x1f6   :  { %7419 = vst [vmem:[#allocation40_spill] sm:$0xff] %v6381_v62  ;;  %v7424_v62 = vld [vmem:[#allocation46_spill] sm:$0xff] }
 0x1f7   :  { %v1898_v1 = vpop.f32.mrf.mxu1  ;;  %v1194_v12 = vpop.f32.mrf.mxu0  ;;  %v4877_v50 = vld [vmem:[%s7331_s0 + $0x1f8] ss:$12 sps:$4 sm:$0xff]  }
 0x1f8   :  { %v6390_v17 = vadd.f32 %v1898_v1, %v1434_v0  ;;  %v4878_v0 = vld [vmem:[%s7331_s0 + $0x214] ss:$12 sps:$4 sm:$0xff]  }
 0x1f9   :  { %v1900_v52 = vpop.f32.mrf.mxu1  ;;  %v6392_v45 = vpop.f32.mrf.mxu0  ;;  %4542 = vmatmul.mubr.bf16.gmra.mxu0 %v7422_v26 }
 0x1fa   :  { %7421 = vst [vmem:[#allocation10_spill] sm:$0xff] %v6390_v17  ;;  %4545 = vmatprep.mubr.bf16.mxu0 %v7424_v62  ;;  %v1442_v62 = vadd.f32 %v7426_v4, %v6251_v28 }
 0x1fb   :  { %v1903_v51 = vpop.f32.mrf.mxu1  ;;  %2641 = vmatmul.mubr.bf16.gmra.mxu1 %v4877_v50  ;;  %v1199_v2 = vpop.f32.mrf.mxu0 }
 0x1fc   :  { %v6401_v24 = vadd.f32 %v1903_v51, %v1439_v49  ;;  %2648 = vmatprep.mubr.bf16.mxu1 %v4878_v0  ;;  %v7428_v49 = vld [vmem:[#allocation51_spill] sm:$0xff]  ;;  %v7429_v51 = vld [vmem:[#allocation13_spill] sm:$0xff] }
 0x1fd   :  { %v1905_v1 = vpop.f32.mrf.mxu1  ;;  %v6406_v12 = vpop.f32.mrf.mxu0  ;;  %v1447_v2 = vadd.f32 %v7429_v51, %v6257_v11  ;;  %v7432_v11 = vld [vmem:[#allocation16_spill] sm:$0xff] }
 0x1fe   :  { %7425 = vst [vmem:[#allocation45_spill] sm:$0xff] %v6401_v24  ;;  %v7430_v24 = vld [vmem:[#allocation52_spill] sm:$0xff] }
 0x1ff   :  { %v1906_v52 = vpop.f32.mrf.mxu1  ;;  %v1202_v26 = vpop.f32.mrf.mxu0  ;;  %v4879_v1 = vld [vmem:[%s7331_s0 + $0x210] ss:$12 sps:$4 sm:$0xff]  }
 0x200   :  { %v6410_v25 = vadd.f32 %v1906_v52, %v1442_v62 }
 0x201   :  { %v1908_v17 = vpop.f32.mrf.mxu1  ;;  %v6412_v50 = vpop.f32.mrf.mxu0  ;;  %4546 = vmatmul.mubr.bf16.gmra.mxu0 %v7428_v49 }
 0x202   :  { %7427 = vst [vmem:[#allocation7_spill] sm:$0xff] %v6410_v25  ;;  %4549 = vmatprep.mubr.bf16.mxu0 %v7430_v24  ;;  %v4880_v17 = vld [vmem:[%s7331_s0 + $0x22c] ss:$12 sps:$4 sm:$0xff]   ;;  %v1450_v24 = vadd.f32 %v7432_v11, %v6281_v32  ;;  %v4881_v32 = vld [vmem:[%s7331_s0 + $0x228] ss:$12 sps:$4 sm:$0xff]  }
 0x203   :  { %v1911_v0 = vpop.f32.mrf.mxu1  ;;  %2649 = vmatmul.mubr.bf16.gmra.mxu1 %v4879_v1  ;;  %v6421_v28 = vpop.f32.mrf.mxu0 }
 0x204   :  { %v6423_v4 = vadd.f32 %v1911_v0, %v1447_v2  ;;  %2656 = vmatprep.mubr.bf16.mxu1 %v4880_v17  ;;  %v7434_v2 = vld [vmem:[#allocation12_spill] sm:$0xff] }
 0x205   :  { %v1913_v62 = vpop.f32.mrf.mxu1  ;;  %v6428_v52 = vpop.f32.mrf.mxu0  ;;  %v1455_v0 = vadd.f32 %v7434_v2, %v6287_v39 }
 0x206   :  { %7431 = vst [vmem:[#allocation46_spill] sm:$0xff] %v6423_v4 }
 0x207   :  { %v1914_v26 = vpop.f32.mrf.mxu1  ;;  %v6432_v49 = vpop.f32.mrf.mxu0 }
 0x208   :  { %v6434_v51 = vadd.f32 %v1914_v26, %v1450_v24  ;;  %v4882_v24 = vld [vmem:[%s7331_s0 + $0x244] ss:$12 sps:$4 sm:$0xff]  }
 0x209   :  { %v1916_v1 = vpop.f32.mrf.mxu1  ;;  %v6436_v25 = vpop.f32.mrf.mxu0  ;;  %4550 = vmatmul.mubr.bf16.gmra.mxu0 %v5933_v34 }
 0x20a   :  { %7433 = vst [vmem:[#allocation9_spill] sm:$0xff] %v6434_v51  ;;  %4553 = vmatprep.mubr.bf16.mxu0 %v5938_v44  ;;  %v7436_v44 = vld [vmem:[#allocation15_spill] sm:$0xff] }
 0x20b   :  { %v1919_v17 = vpop.f32.mrf.mxu1  ;;  %2657 = vmatmul.mubr.bf16.gmra.mxu1 %v4881_v32  ;;  %v6445_v62 = vpop.f32.mrf.mxu0  ;;  %v1458_v39 = vadd.f32 %v7436_v44, %v6311_v13  ;;  %v4883_v13 = vld [vmem:[%s7331_s0 + $0x240] ss:$12 sps:$4 sm:$0xff]  }
 0x20c   :  { %v6447_v11 = vadd.f32 %v1919_v17, %v1455_v0  ;;  %2664 = vmatprep.mubr.bf16.mxu1 %v4882_v24  ;;  %v7438_v0 = vld [vmem:[#allocation19_spill] sm:$0xff] }
 0x20d   :  { %v1921_v34 = vpop.f32.mrf.mxu1  ;;  %v6452_v26 = vpop.f32.mrf.mxu0  ;;  %v1463_v17 = vadd.f32 %v7438_v0, %v6317_v63 }
 0x20e   :  { %7435 = vst [vmem:[#allocation51_spill] sm:$0xff] %v6447_v11 }
 0x20f   :  { %v1922_v1 = vpop.f32.mrf.mxu1  ;;  %v6456_v2 = vpop.f32.mrf.mxu0 }
 0x210   :  { %v6458_v51 = vadd.f32 %v1922_v1, %v1458_v39  ;;  %v4884_v39 = vld [vmem:[%s7331_s0 + $0x25c] ss:$12 sps:$4 sm:$0xff]  }
 0x211   :  { %v1924_v32 = vpop.f32.mrf.mxu1  ;;  %v6460_v4 = vpop.f32.mrf.mxu0  ;;  %4554 = vmatmul.mubr.bf16.gmra.mxu0 %v5955_v19 }
 0x212   :  { %7437 = vst [vmem:[#allocation13_spill] sm:$0xff] %v6458_v51  ;;  %4557 = vmatprep.mubr.bf16.mxu0 %v6110_v57  ;;  %v7440_v57 = vld [vmem:[#allocation22_spill] sm:$0xff] }
 0x213   :  { %v1927_v24 = vpop.f32.mrf.mxu1  ;;  %2665 = vmatmul.mubr.bf16.gmra.mxu1 %v4883_v13  ;;  %v6469_v34 = vpop.f32.mrf.mxu0  ;;  %v1466_v63 = vadd.f32 %v7440_v57, %v6341_v41  ;;  %v4885_v41 = vld [vmem:[%s7331_s0 + $0x258] ss:$12 sps:$4 sm:$0xff]  }
 0x214   :  { %v6471_v44 = vadd.f32 %v1927_v24, %v1463_v17  ;;  %2672 = vmatprep.mubr.bf16.mxu1 %v4884_v39  ;;  %v7442_v17 = vld [vmem:[#allocation18_spill] sm:$0xff] }
 0x215   :  { %v1929_v19 = vpop.f32.mrf.mxu1  ;;  %v6476_v1 = vpop.f32.mrf.mxu0  ;;  %v1471_v24 = vadd.f32 %v7442_v17, %v6347_v36 }
 0x216   :  { %7439 = vst [vmem:[#allocation52_spill] sm:$0xff] %v6471_v44 }
 0x217   :  { %v1930_v32 = vpop.f32.mrf.mxu1  ;;  %v6480_v0 = vpop.f32.mrf.mxu0 }
 0x218   :  { %v6482_v51 = vadd.f32 %v1930_v32, %v1466_v63  ;;  %v4886_v63 = vld [vmem:[%s7331_s0 + $0x274] ss:$12 sps:$4 sm:$0xff]  }
 0x219   :  { %v1932_v13 = vpop.f32.mrf.mxu1  ;;  %v6484_v11 = vpop.f32.mrf.mxu0  ;;  %4558 = vmatmul.mubr.bf16.gmra.mxu0 %v6132_v56 }
 0x21a   :  { %7441 = vst [vmem:[#allocation16_spill] sm:$0xff] %v6482_v51  ;;  %4561 = vmatprep.mubr.bf16.mxu0 %v6140_v9  ;;  %v7444_v9 = vld [vmem:[#allocation21_spill] sm:$0xff] }
 0x21b   :  { %v1935_v39 = vpop.f32.mrf.mxu1  ;;  %2673 = vmatmul.mubr.bf16.gmra.mxu1 %v4885_v41  ;;  %v6493_v19 = vpop.f32.mrf.mxu0  ;;  %v1474_v36 = vadd.f32 %v7444_v9, %v6366_v16  ;;  %v4887_v16 = vld [vmem:[%s7331_s0 + $0x270] ss:$12 sps:$4 sm:$0xff]  }
 0x21c   :  { %v6495_v57 = vadd.f32 %v1935_v39, %v1471_v24  ;;  %2680 = vmatprep.mubr.bf16.mxu1 %v4886_v63  ;;  %v7446_v24 = vld [vmem:[#allocation25_spill] sm:$0xff] }
 0x21d   :  { %v1937_v56 = vpop.f32.mrf.mxu1  ;;  %v6500_v32 = vpop.f32.mrf.mxu0  ;;  %v1479_v39 = vadd.f32 %v7446_v24, %v6372_v5 }
 0x21e   :  { %7443 = vst [vmem:[#allocation12_spill] sm:$0xff] %v6495_v57 }
 0x21f   :  { %v1938_v13 = vpop.f32.mrf.mxu1  ;;  %v6504_v17 = vpop.f32.mrf.mxu0 }
 0x220   :  { %v6506_v51 = vadd.f32 %v1938_v13, %v1474_v36  ;;  %v4888_v36 = vld [vmem:[%s7331_s0 + $0x28c] ss:$12 sps:$4 sm:$0xff]  }
 0x221   :  { %v1940_v41 = vpop.f32.mrf.mxu1  ;;  %v6508_v44 = vpop.f32.mrf.mxu0  ;;  %4562 = vmatmul.mubr.bf16.gmra.mxu0 %v6158_v27 }
 0x222   :  { %7445 = vst [vmem:[#allocation15_spill] sm:$0xff] %v6506_v51  ;;  %4565 = vmatprep.mubr.bf16.mxu0 %v6166_v8  ;;  %v7448_v8 = vld [vmem:[#allocation28_spill] sm:$0xff] }
 0x223   :  { %v1943_v63 = vpop.f32.mrf.mxu1  ;;  %2681 = vmatmul.mubr.bf16.gmra.mxu1 %v4887_v16  ;;  %v6517_v56 = vpop.f32.mrf.mxu0  ;;  %v1482_v5 = vadd.f32 %v7448_v8, %v6386_v43  ;;  %v4889_v43 = vld [vmem:[%s7331_s0 + $0x288] ss:$12 sps:$4 sm:$0xff]  }
 0x224   :  { %v6519_v9 = vadd.f32 %v1943_v63, %v1479_v39  ;;  %2688 = vmatprep.mubr.bf16.mxu1 %v4888_v36  ;;  %v7450_v39 = vld [vmem:[#allocation24_spill] sm:$0xff] }
 0x225   :  { %v1945_v27 = vpop.f32.mrf.mxu1  ;;  %v6524_v13 = vpop.f32.mrf.mxu0  ;;  %v1487_v63 = vadd.f32 %v7450_v39, %v6392_v45  ;;  %v7451_v8 = vld [vmem:[#allocation4_spill] sm:$0xff] }
 0x226   :  { %7447 = vst [vmem:[#allocation19_spill] sm:$0xff] %v6519_v9 }
 0x227   :  { %v1946_v41 = vpop.f32.mrf.mxu1  ;;  %v6528_v24 = vpop.f32.mrf.mxu0 }
 0x228   :  { %v6530_v51 = vadd.f32 %v1946_v41, %v1482_v5  ;;  %v1247_v5 = vadd.f32 %v6412_v50, %v7451_v8  ;;  %v7455_v50 = vld [vmem:[#allocation5_spill] sm:$0xff]  ;;  %v7456_v8 = vld [vmem:[#allocation34_spill] sm:$0xff] }
 0x229   :  { %v1948_v16 = vpop.f32.mrf.mxu1  ;;  %v6532_v57 = vpop.f32.mrf.mxu0  ;;  %4566 = vmatmul.mubr.bf16.gmra.mxu0 %v6184_v31  ;;  %v4890_v31 = vld [vmem:[%s7331_s0 + $0x2a4] ss:$12 sps:$4 sm:$0xff]  }
 0x22a   :  { %7449 = vst [vmem:[#allocation22_spill] sm:$0xff] %v6530_v51  ;;  %4569 = vmatprep.mubr.bf16.mxu0 %v6192_v15  ;;  %v7453_v16 = vld [vmem:[#allocation27_spill] sm:$0xff]  ;;  %v7454_v51 = vld [vmem:[#allocation2_spill] sm:$0xff] }
 0x22b   :  { %v1951_v36 = vpop.f32.mrf.mxu1  ;;  %2689 = vmatmul.mubr.bf16.gmra.mxu1 %v4889_v43  ;;  %v6541_v27 = vpop.f32.mrf.mxu0  ;;  %v1490_v39 = vadd.f32 %v7453_v16, %v6406_v12  ;;  %v1239_v43 = vadd.f32 %v6421_v28, %v7454_v51  ;;  %v1242_v12 = vadd.f32 %v6432_v49, %v7457_v58  ;;  %v7458_v28 = vld [vmem:[#allocation30_spill] sm:$0xff]  ;;  %v7461_v58 = vld [vmem:[#allocation36_spill] sm:$0xff] }
 0x22c   :  { %v6545_v41 = vadd.f32 %v1951_v36, %v1487_v63  ;;  %2696 = vmatprep.mubr.bf16.mxu1 %v4890_v31  ;;  %v1250_v63 = vadd.f32 %v6428_v52, %v7455_v50  ;;  %v4891_v52 = vld [vmem:[%s7331_s0 + $0x2a0] ss:$12 sps:$4 sm:$0xff]  }
 0x22d   :  { %v1953_v45 = vpop.f32.mrf.mxu1  ;;  %v6550_v15 = vpop.f32.mrf.mxu0  ;;  %v1704_v51 = vadd.f32 %v7458_v28, %v1239_v43  ;;  %v7462_v50 = vld [vmem:[#allocation6_spill] sm:$0xff] }
 0x22e   :  { %7452 = vst [vmem:[#allocation18_spill] sm:$0xff] %v6545_v41  ;;  %v1712_v41 = vadd.f32 %v7456_v8, %v1247_v5  ;;  %v7459_v5 = vld [vmem:[#allocation11_spill] sm:$0xff]  ;;  %v1715_v49 = vadd.f32 %v7461_v58, %v1250_v63  ;;  %v1255_v8 = vadd.f32 %v6445_v62, %v7462_v50 }
 0x22f   :  { %v1954_v9 = vpop.f32.mrf.mxu1  ;;  %v6556_v10 = vpop.f32.mrf.mxu0 }
 0x230   :  { %v6560_v36 = vadd.f32 %v1954_v9, %v1490_v39 }
 0x231   :  { %v1956_v31 = vpop.f32.mrf.mxu1  ;;  %v4459_v45 = vpop.f32.mrf.mxu0  ;;  %4570 = vmatmul.mubr.bf16.gmra.mxu0 %v6210_v35  ;;  %v1263_v35 = vadd.f32 %v6436_v25, %v7459_v5  ;;  %v7465_v5 = vld [vmem:[#allocation43_spill] sm:$0xff] }
 0x232   :  { %v6566_v16 = vadd.f32 %v4459_v45, %v1712_v41  ;;  %4573 = vmatprep.mubr.bf16.mxu0 %v6218_v14  ;;  %v4892_v41 = vld [vmem:[%s7331_s0 + $0x2bc] ss:$12 sps:$4 sm:$0xff]   ;;  %v7463_v45 = vld [vmem:[#allocation32_spill] sm:$0xff] }
 0x233   :  { %v6570_v23 = vpop.f32.mrf.mxu1  ;;  %2697 = vmatmul.mubr.bf16.gmra.mxu1 %v4891_v52  ;;  %v1992_v9 = vpop.f32.mrf.mxu0  ;;  %v1707_v28 = vadd.f32 %v7463_v45, %v1242_v12  ;;  %v1728_v58 = vadd.f32 %v7465_v5, %v1263_v35  ;;  %v7467_v12 = vld [vmem:[#allocation38_spill] sm:$0xff]  ;;  %v7468_v45 = vld [vmem:[#allocation23_spill] sm:$0xff] }
 0x234   :  { %v6577_v39 = vadd.f32 %v1992_v9, %v1704_v51  ;;  %2704 = vmatprep.mubr.bf16.mxu1 %v4892_v41  ;;  %v7464_v51 = vld [vmem:[#allocation14_spill] sm:$0xff] }
 0x235   :  { %v2508_v14 = vpop.f32.mrf.mxu1  ;;  %v4460_v43 = vpop.f32.mrf.mxu0  ;;  %v1266_v63 = vadd.f32 %v6452_v26, %v7464_v51  ;;  %v4893_v26 = vld [vmem:[%s7331_s0 + $0x2b8] ss:$12 sps:$4 sm:$0xff]  }
 0x236   :  { %7460 = vst [vmem:[#allocation21_spill] sm:$0xff] %v6577_v39  ;;  %v6585_v31 = vadd.f32 %v4460_v43, %v1715_v49  ;;  %v7466_v39 = vld [vmem:[#allocation8_spill] sm:$0xff]  ;;  %v1720_v43 = vadd.f32 %v7467_v12, %v1255_v8  ;;  %v7470_v51 = vld [vmem:[#allocation17_spill] sm:$0xff] }
 0x237   :  { %v6588_v52 = vpop.f32.mrf.mxu1  ;;  %v1995_v25 = vpop.f32.mrf.mxu0  ;;  %v1258_v62 = vadd.f32 %v6456_v2, %v7466_v39  ;;  %v7469_v2 = vld [vmem:[#allocation47_spill] sm:$0xff]  ;;  %v4894_v8 = vld [vmem:[%s7331_s0 + $0x2d4] ss:$12 sps:$4 sm:$0xff]   ;;  %v1271_v5 = vadd.f32 %v6469_v34, %v7470_v51 }
 0x238   :  { %v6592_v9 = vadd.f32 %v1995_v25, %v1707_v28  ;;  %v1731_v39 = vadd.f32 %v7469_v2, %v1266_v63 }
 0x239   :  { %v2511_v41 = vpop.f32.mrf.mxu1  ;;  %v4463_v14 = vpop.f32.mrf.mxu0  ;;  %4574 = vmatmul.mubr.bf16.gmra.mxu0 %v6236_v38  ;;  %v1279_v38 = vadd.f32 %v6460_v4, %v7468_v45 }
 0x23a   :  { %v6598_v49 = vadd.f32 %v4463_v14, %v1728_v58  ;;  %4577 = vmatprep.mubr.bf16.mxu0 %v6244_v21  ;;  %v7471_v41 = vld [vmem:[#allocation41_spill] sm:$0xff] }
 0x23b   :  { %v6602_v50 = vpop.f32.mrf.mxu1  ;;  %2705 = vmatmul.mubr.bf16.gmra.mxu1 %v4893_v26  ;;  %v2008_v35 = vpop.f32.mrf.mxu0  ;;  %v1723_v14 = vadd.f32 %v7471_v41, %v1258_v62  ;;  %v7475_v62 = vld [vmem:[#allocation49_spill] sm:$0xff] }
 0x23c   :  { %v6609_v28 = vadd.f32 %v2008_v35, %v1720_v43  ;;  %2712 = vmatprep.mubr.bf16.mxu1 %v4894_v8  ;;  %v7472_v43 = vld [vmem:[#allocation26_spill] sm:$0xff]  ;;  %v7473_v35 = vld [vmem:[#allocation55_spill] sm:$0xff]  ;;  %v7476_v41 = vld [vmem:[#allocation33_spill] sm:$0xff] }
 0x23d   :  { %v2516_v21 = vpop.f32.mrf.mxu1  ;;  %v4464_v25 = vpop.f32.mrf.mxu0  ;;  %v1282_v63 = vadd.f32 %v6476_v1, %v7472_v43  ;;  %v1744_v45 = vadd.f32 %v7473_v35, %v1279_v38  ;;  %v4895_v1 = vld [vmem:[%s7331_s0 + $0x2d0] ss:$12 sps:$4 sm:$0xff]  }
 0x23e   :  { %v6617_v58 = vadd.f32 %v4464_v25, %v1731_v39  ;;  %v7474_v21 = vld [vmem:[#allocation20_spill] sm:$0xff]  ;;  %v1736_v25 = vadd.f32 %v7475_v62, %v1271_v5  ;;  %v4896_v5 = vld [vmem:[%s7331_s0 + $0x2ec] ss:$12 sps:$4 sm:$0xff]  }
 0x23f   :  { %v6620_v12 = vpop.f32.mrf.mxu1  ;;  %v2011_v4 = vpop.f32.mrf.mxu0  ;;  %v1274_v34 = vadd.f32 %v6480_v0, %v7474_v21  ;;  %v7477_v0 = vld [vmem:[#allocation57_spill] sm:$0xff] }
 0x240   :  { %v6624_v26 = vadd.f32 %v2011_v4, %v1723_v14  ;;  %v1747_v4 = vadd.f32 %v7477_v0, %v1282_v63  ;;  %v7478_v35 = vld [vmem:[#allocation29_spill] sm:$0xff] }
 0x241   :  { %v2519_v2 = vpop.f32.mrf.mxu1  ;;  %v4467_v8 = vpop.f32.mrf.mxu0  ;;  %4578 = vmatmul.mubr.bf16.gmra.mxu0 %v6262_v40  ;;  %v1295_v40 = vadd.f32 %v6484_v11, %v7476_v41 }
 0x242   :  { %v6630_v39 = vadd.f32 %v4467_v8, %v1744_v45  ;;  %4581 = vmatprep.mubr.bf16.mxu0 %v6270_v20  ;;  %v1287_v45 = vadd.f32 %v6493_v19, %v7478_v35  ;;  %v7479_v8 = vld [vmem:[#allocation53_spill] sm:$0xff] }
 0x243   :  { %v6634_v51 = vpop.f32.mrf.mxu1  ;;  %2713 = vmatmul.mubr.bf16.gmra.mxu1 %v4895_v1  ;;  %v2024_v38 = vpop.f32.mrf.mxu0  ;;  %v1739_v21 = vadd.f32 %v7479_v8, %v1274_v34  ;;  %v7483_v34 = vld [vmem:[#allocation58_spill] sm:$0xff] }
 0x244   :  { %v6641_v14 = vadd.f32 %v2024_v38, %v1736_v25  ;;  %2720 = vmatprep.mubr.bf16.mxu1 %v4896_v5  ;;  %v7480_v25 = vld [vmem:[#allocation35_spill] sm:$0xff]  ;;  %v7481_v38 = vld [vmem:[#allocation60_spill] sm:$0xff]  ;;  %v7484_v8 = vld [vmem:[#allocation42_spill] sm:$0xff] }
 0x245   :  { %v2524_v20 = vpop.f32.mrf.mxu1  ;;  %v4468_v43 = vpop.f32.mrf.mxu0  ;;  %v1298_v63 = vadd.f32 %v6500_v32, %v7480_v25  ;;  %v1760_v41 = vadd.f32 %v7481_v38, %v1295_v40  ;;  %v4897_v32 = vld [vmem:[%s7331_s0 + $0x2e8] ss:$12 sps:$4 sm:$0xff]   ;;  %v7486_v38 = vld [vmem:[#allocation37_spill] sm:$0xff] }
 0x246   :  { %v6649_v2 = vadd.f32 %v4468_v43, %v1747_v4  ;;  %v7482_v20 = vld [vmem:[#allocation31_spill] sm:$0xff]  ;;  %v1752_v43 = vadd.f32 %v7483_v34, %v1287_v45  ;;  %v4898_v45 = vld [vmem:[%s7331_s0 + $0x304] ss:$12 sps:$4 sm:$0xff]  }
 0x247   :  { %v6652_v62 = vpop.f32.mrf.mxu1  ;;  %v2027_v11 = vpop.f32.mrf.mxu0  ;;  %v1290_v19 = vadd.f32 %v6504_v17, %v7482_v20  ;;  %v7485_v17 = vld [vmem:[#allocation61_spill] sm:$0xff] }
 0x248   :  { %v6656_v1 = vadd.f32 %v2027_v11, %v1739_v21  ;;  %v1763_v11 = vadd.f32 %v7485_v17, %v1298_v63 }
 0x249   :  { %v2527_v0 = vpop.f32.mrf.mxu1  ;;  %v4471_v5 = vpop.f32.mrf.mxu0  ;;  %4582 = vmatmul.mubr.bf16.gmra.mxu0 %v6292_v42  ;;  %v1311_v42 = vadd.f32 %v6508_v44, %v7484_v8 }
 0x24a   :  { %v6662_v4 = vadd.f32 %v4471_v5, %v1760_v41  ;;  %4585 = vmatprep.mubr.bf16.mxu0 %v6300_v37  ;;  %v1303_v41 = vadd.f32 %v6517_v56, %v7486_v38  ;;  %v7487_v5 = vld [vmem:[#allocation59_spill] sm:$0xff] }
 0x24b   :  { %v6666_v35 = vpop.f32.mrf.mxu1  ;;  %2721 = vmatmul.mubr.bf16.gmra.mxu1 %v4897_v32  ;;  %v2040_v40 = vpop.f32.mrf.mxu0  ;;  %v1755_v20 = vadd.f32 %v7487_v5, %v1290_v19  ;;  %v7491_v19 = vld [vmem:[#allocation62_spill] sm:$0xff] }
 0x24c   :  { %v6673_v21 = vadd.f32 %v2040_v40, %v1752_v43  ;;  %2728 = vmatprep.mubr.bf16.mxu1 %v4898_v45  ;;  %v7488_v43 = vld [vmem:[#allocation44_spill] sm:$0xff]  ;;  %v7492_v5 = vld [vmem:[#allocation54_spill] sm:$0xff] }
 0x24d   :  { %v2532_v37 = vpop.f32.mrf.mxu1  ;;  %v4472_v25 = vpop.f32.mrf.mxu0  ;;  %v1314_v63 = vadd.f32 %v6524_v13, %v7488_v43  ;;  %v7489_v40 = vld [vmem:[#allocation64_spill] sm:$0xff]  ;;  %v4899_v13 = vld [vmem:[%s7331_s0 + $0x300] ss:$12 sps:$4 sm:$0xff]  }
 0x24e   :  { %v6681_v0 = vadd.f32 %v4472_v25, %v1763_v11  ;;  %v1776_v8 = vadd.f32 %v7489_v40, %v1311_v42  ;;  %v7490_v37 = vld [vmem:[#allocation39_spill] sm:$0xff]  ;;  %v1768_v25 = vadd.f32 %v7491_v19, %v1303_v41  ;;  %v7494_v40 = vld [vmem:[#allocation48_spill] sm:$0xff] }
 0x24f   :  { %v6684_v34 = vpop.f32.mrf.mxu1  ;;  %v2043_v44 = vpop.f32.mrf.mxu0  ;;  %v1306_v56 = vadd.f32 %v6528_v24, %v7490_v37  ;;  %v7493_v24 = vld [vmem:[#allocation65_spill] sm:$0xff] }
 0x250   :  { %v6688_v32 = vadd.f32 %v2043_v44, %v1755_v20  ;;  %v1779_v44 = vadd.f32 %v7493_v24, %v1314_v63  ;;  %v4900_v41 = vld [vmem:[%s7331_s0 + $0x31c] ss:$12 sps:$4 sm:$0xff]   ;;  %v4828_v24 = vld [vmem:[%s7331_s0 + $0x334] ss:$12 sps:$4 sm:$0xff]  }
 0x251   :  { %v2535_v17 = vpop.f32.mrf.mxu1  ;;  %v4475_v45 = vpop.f32.mrf.mxu0  ;;  %4586 = vmatmul.mubr.bf16.gmra.mxu0 %v6322_v60  ;;  %v1327_v60 = vadd.f32 %v6532_v57, %v7492_v5 }
 0x252   :  { %v6694_v11 = vadd.f32 %v4475_v45, %v1776_v8  ;;  %4589 = vmatprep.mubr.bf16.mxu0 %v6330_v33  ;;  %v1319_v8 = vadd.f32 %v6541_v27, %v7494_v40  ;;  %v7495_v45 = vld [vmem:[#allocation63_spill] sm:$0xff] }
 0x253   :  { %v6698_v38 = vpop.f32.mrf.mxu1  ;;  %2729 = vmatmul.mubr.bf16.gmra.mxu1 %v4899_v13  ;;  %v2056_v42 = vpop.f32.mrf.mxu0  ;;  %v1771_v37 = vadd.f32 %v7495_v45, %v1306_v56  ;;  %v4902_v45 = vld [vmem:[%s7331_s0 + $0x318] ss:$12 sps:$4 sm:$0xff]  }
 0x254   :  { %v6705_v20 = vadd.f32 %v2056_v42, %v1768_v25  ;;  %2736 = vmatprep.mubr.bf16.mxu1 %v4900_v41  ;;  %v7496_v25 = vld [vmem:[#allocation56_spill] sm:$0xff] }
 0x255   :  { %v2540_v33 = vpop.f32.mrf.mxu1  ;;  %v4476_v43 = vpop.f32.mrf.mxu0  ;;  %v1330_v63 = vadd.f32 %v6550_v15, %v7496_v25  ;;  %v7497_v42 = vld [vmem:[#allocation68_spill] sm:$0xff] }
 0x256   :  { %v6713_v17 = vadd.f32 %v4476_v43, %v1779_v44  ;;  %v1792_v5 = vadd.f32 %v7497_v42, %v1327_v60  ;;  %v7498_v44 = vld [vmem:[#allocation50_spill] sm:$0xff]  ;;  %v4901_v15 = vld [vmem:[%s7331_s0 + $0x308] ss:$12 sps:$4 sm:$0xff]  }
 0x257   :  { %v6716_v19 = vpop.f32.mrf.mxu1  ;;  %v2059_v57 = vpop.f32.mrf.mxu0  ;;  %v1322_v56 = vadd.f32 %v6556_v10, %v7498_v44  ;;  %v7499_v43 = vld [vmem:[#allocation66_spill] sm:$0xff]  ;;  %v7500_v10 = vld [vmem:[#allocation69_spill] sm:$0xff] }
 0x258   :  { %v6720_v13 = vadd.f32 %v2059_v57, %v1771_v37  ;;  %v1784_v40 = vadd.f32 %v7499_v43, %v1319_v8  ;;  %v1795_v57 = vadd.f32 %v7500_v10, %v1330_v63  ;;  %v4832_v63 = vld [vmem:[%s7331_s0 + $0x34c] ss:$12 sps:$4 sm:$0xff]  }
 0x259   :  { %v2543_v41 = vpop.f32.mrf.mxu1  ;;  %v4479_v27 = vpop.f32.mrf.mxu0  ;;  %4590 = vmatmul.mubr.bf16.gmra.mxu0 %v6352_v48 }
 0x25a   :  { %v6729_v33 = vadd.f32 %v4479_v27, %v1792_v5  ;;  %4593 = vmatprep.mubr.bf16.mxu0 %v4901_v15  ;;  %v7501_v5 = vld [vmem:[#allocation67_spill] sm:$0xff]  ;;  %v4829_v27 = vld [vmem:[%s7331_s0 + $0x338] ss:$12 sps:$4 sm:$0xff]  }
 0x25b   :  { %v6735_v60 = vpop.f32.mrf.mxu1  ;;  %2737 = vmatmul.mubr.bf16.gmra.mxu1 %v4902_v45  ;;  %v2072_v48 = vpop.f32.mrf.mxu0  ;;  %v1787_v41 = vadd.f32 %v7501_v5, %v1322_v56  ;;  %v4903_v56 = vld [vmem:[%s7331_s0 + $0x320] ss:$12 sps:$4 sm:$0xff]  }
 0x25c   :  { %v6740_v37 = vadd.f32 %v2072_v48, %v1784_v40  ;;  %2744 = vmatprep.mubr.bf16.mxu1 %v4828_v24  ;;  %v4826_v40 = vld [vmem:[%s7331_s0 + $0x330] ss:$12 sps:$4 sm:$0xff]  }
 0x25d   :  { %v2548_v25 = vpop.f32.mrf.mxu1  ;;  %v4480_v8 = vpop.f32.mrf.mxu0 }
 0x25e   :  { %v6743_v42 = vadd.f32 %v4480_v8, %v1795_v57 }
 0x25f   :  { %v6749_v44 = vpop.f32.mrf.mxu1  ;;  %v2075_v43 = vpop.f32.mrf.mxu0 }
 0x260   :  { %v6754_v15 = vadd.f32 %v2075_v43, %v1787_v41  ;;  %v4833_v41 = vld [vmem:[%s7331_s0 + $0x350] ss:$12 sps:$4 sm:$0xff]  }
 0x261   :  { %v2551_v24 = vpop.f32.mrf.mxu1  ;;  %v4483_v45 = vpop.f32.mrf.mxu0  ;;  %4594 = vmatmul.mubr.bf16.gmra.mxu0 %v4903_v56 }
 0x262   :  { %7502 = vst [vmem:[#allocation25_spill] sm:$0xff] %v6754_v15  ;;  %v6763_v48 = vadd.f32 %v4483_v45, %v6091_v47  ;;  %4597 = vmatprep.mubr.bf16.mxu0 %v4829_v27  ;;  %v7506_v24 = vld [vmem:[#allocation70_spill] sm:$0xff] }
 0x263   :  { %v6765_v10 = vpop.f32.mrf.mxu1  ;;  %2745 = vmatmul.mubr.bf16.gmra.mxu1 %v4826_v40  ;;  %v2088_v57 = vpop.f32.mrf.mxu0  ;;  %v4830_v40 = vld [vmem:[%s7331_s0 + $0x348] ss:$12 sps:$4 sm:$0xff]  }
 0x264   :  { %7503 = vst [vmem:[#allocation28_spill] sm:$0xff] %v6763_v48  ;;  %v6768_v25 = vadd.f32 %v2088_v57, %v6071_v7  ;;  %2752 = vmatprep.mubr.bf16.mxu1 %v4832_v63 }
 0x265   :  { %v2556_v8 = vpop.f32.mrf.mxu1  ;;  %v4484_v5 = vpop.f32.mrf.mxu0 }
 0x266   :  { %7504 = vst [vmem:[#allocation24_spill] sm:$0xff] %v6768_v25  ;;  %v6774_v43 = vadd.f32 %v4484_v5, %v6100_v61 }
 0x267   :  { %v6776_v47 = vpop.f32.mrf.mxu1  ;;  %v2091_v27 = vpop.f32.mrf.mxu0 }
 0x268   :  { %7505 = vst [vmem:[#allocation4_spill] sm:$0xff] %v6774_v43  ;;  %v6782_v7 = vadd.f32 %v2091_v27, %v7506_v24 }
 0x269   :  { %v2559_v63 = vpop.f32.mrf.mxu1  ;;  %v4487_v45 = vpop.f32.mrf.mxu0  ;;  %4598 = vmatmul.mubr.bf16.gmra.mxu0 %v4833_v41 }
 0x26a   :  { %7507 = vst [vmem:[#allocation27_spill] sm:$0xff] %v6782_v7  ;;  %v6785_v56 = vadd.f32 %v4487_v45, %v6144_v3  ;;  %v7511_v63 = vld [vmem:[#allocation71_spill] sm:$0xff] }
 0x26b   :  { %v6787_v57 = vpop.f32.mrf.mxu1  ;;  %2753 = vmatmul.mubr.bf16.gmra.mxu1 %v4830_v40  ;;  %v2104_v61 = vpop.f32.mrf.mxu0 }
 0x26c   :  { %7508 = vst [vmem:[#allocation2_spill] sm:$0xff] %v6785_v56  ;;  %v6790_v8 = vadd.f32 %v2104_v61, %v6116_v18 }
 0x26d   :  { %v2564_v5 = vpop.f32.mrf.mxu1  ;;  %v4488_v43 = vpop.f32.mrf.mxu0 }
 0x26e   :  { %7509 = vst [vmem:[#allocation5_spill] sm:$0xff] %v6790_v8  ;;  %v6793_v25 = vadd.f32 %v4488_v43, %v6151_v54 }
 0x26f   :  { %v6795_v27 = vpop.f32.mrf.mxu1  ;;  %v2107_v24 = vpop.f32.mrf.mxu0 }
 0x270   :  { %7510 = vst [vmem:[#allocation34_spill] sm:$0xff] %v6793_v25  ;;  %v6798_v41 = vadd.f32 %v2107_v24, %v7511_v63 }
 0x271   :  { %v2567_v3 = vpop.f32.mrf.mxu1  ;;  %v4491_v45 = vpop.f32.mrf.mxu0 }
 0x272   :  { %7512 = vst [vmem:[#allocation3_spill] sm:$0xff] %v6798_v41  ;;  %v6801_v56 = vadd.f32 %v4491_v45, %v6196_v30 }
 0x273   :  { %v6803_v40 = vpop.f32.mrf.mxu1  ;;  %v2120_v18 = vpop.f32.mrf.mxu0 }
 0x274   :  { %7513 = vst [vmem:[#allocation30_spill] sm:$0xff] %v6801_v56  ;;  %v6806_v61 = vadd.f32 %v2120_v18, %v6170_v46 }
 0x275   :  { %v2572_v5 = vpop.f32.mrf.mxu1  ;;  %v4492_v54 = vpop.f32.mrf.mxu0 }
 0x276   :  { %7514 = vst [vmem:[#allocation11_spill] sm:$0xff] %v6806_v61  ;;  %v6809_v43 = vadd.f32 %v4492_v54, %v6203_v59 }
 0x277   :  { %v6811_v25 = vpop.f32.mrf.mxu1  ;;  %v2123_v24 = vpop.f32.mrf.mxu0 }
 0x278   :  { %7515 = vst [vmem:[#allocation36_spill] sm:$0xff] %v6809_v43  ;;  %v6814_v63 = vadd.f32 %v2123_v24, %v6177_v55  ;;  %v7520_v24 = vld [vmem:[#allocation72_spill] sm:$0xff] }
 0x279   :  { %v2575_v3 = vpop.f32.mrf.mxu1  ;;  %v4495_v30 = vpop.f32.mrf.mxu0 }
 0x27a   :  { %7516 = vst [vmem:[#allocation6_spill] sm:$0xff] %v6814_v63  ;;  %v6817_v45 = vadd.f32 %v4495_v30, %v6248_v22  ;;  %v7522_v30 = vld [vmem:[#allocation75_spill] sm:$0xff] }
 0x27b   :  { %v6819_v56 = vpop.f32.mrf.mxu1  ;;  %v2136_v46 = vpop.f32.mrf.mxu0 }
 0x27c   :  { %7517 = vst [vmem:[#allocation32_spill] sm:$0xff] %v6817_v45  ;;  %v6822_v18 = vadd.f32 %v2136_v46, %v6222_v53  ;;  %v7524_v46 = vld [vmem:[#allocation73_spill] sm:$0xff] }
 0x27d   :  { %v2580_v5 = vpop.f32.mrf.mxu1  ;;  %v4496_v59 = vpop.f32.mrf.mxu0 }
 0x27e   :  { %7518 = vst [vmem:[#allocation14_spill] sm:$0xff] %v6822_v18  ;;  %v6825_v54 = vadd.f32 %v4496_v59, %v6255_v6  ;;  %v7526_v59 = vld [vmem:[#allocation76_spill] sm:$0xff] }
 0x27f   :  { %v6827_v43 = vpop.f32.mrf.mxu1  ;;  %v2139_v55 = vpop.f32.mrf.mxu0 }
 0x280   :  { %7519 = vst [vmem:[#allocation43_spill] sm:$0xff] %v6825_v54  ;;  %v6830_v3 = vadd.f32 %v2139_v55, %v7520_v24  ;;  %v7528_v24 = vld [vmem:[#allocation74_spill] sm:$0xff] }
 0x281   :  { %v2583_v63 = vpop.f32.mrf.mxu1  ;;  %v4499_v22 = vpop.f32.mrf.mxu0 }
 0x282   :  { %7521 = vst [vmem:[#allocation8_spill] sm:$0xff] %v6830_v3  ;;  %v6833_v45 = vadd.f32 %v4499_v22, %v7522_v30 }
 0x283   :  { %v6835_v61 = vpop.f32.mrf.mxu1  ;;  %v2152_v53 = vpop.f32.mrf.mxu0 }
 0x284   :  { %7523 = vst [vmem:[#allocation38_spill] sm:$0xff] %v6833_v45  ;;  %v6838_v5 = vadd.f32 %v2152_v53, %v7524_v46  ;;  %v7531_v46 = vld [vmem:[#allocation77_spill] sm:$0xff] }
 0x285   :  { %v2588_v18 = vpop.f32.mrf.mxu1  ;;  %v4500_v6 = vpop.f32.mrf.mxu0 }
 0x286   :  { %7525 = vst [vmem:[#allocation23_spill] sm:$0xff] %v6838_v5  ;;  %v6841_v54 = vadd.f32 %v4500_v6, %v7526_v59  ;;  %v7533_v59 = vld [vmem:[#allocation79_spill] sm:$0xff] }
 0x287   :  { %v6843_v41 = vpop.f32.mrf.mxu1  ;;  %v2155_v55 = vpop.f32.mrf.mxu0 }
 0x288   :  { %7527 = vst [vmem:[#allocation47_spill] sm:$0xff] %v6841_v54  ;;  %v6846_v63 = vadd.f32 %v2155_v55, %v7528_v24  ;;  %v7535_v24 = vld [vmem:[#allocation78_spill] sm:$0xff] }
 0x289   :  { %v2591_v3 = vpop.f32.mrf.mxu1  ;;  %v4503_v22 = vpop.f32.mrf.mxu0 }
 0x28a   :  { %7529 = vst [vmem:[#allocation17_spill] sm:$0xff] %v6846_v63  ;;  %v6849_v30 = vadd.f32 %v4503_v22, %v6361_v29  ;;  %v7537_v22 = vld [vmem:[#allocation45_spill] sm:$0xff] }
 0x28b   :  { %v6851_v45 = vpop.f32.mrf.mxu1  ;;  %v2168_v53 = vpop.f32.mrf.mxu0 }
 0x28c   :  { %7530 = vst [vmem:[#allocation41_spill] sm:$0xff] %v6849_v30  ;;  %v6854_v18 = vadd.f32 %v2168_v53, %v7531_v46  ;;  %v7540_v46 = vld [vmem:[#allocation40_spill] sm:$0xff] }
 0x28d   :  { %v2596_v5 = vpop.f32.mrf.mxu1  ;;  %v4504_v6 = vpop.f32.mrf.mxu0 }
 0x28e   :  { %7532 = vst [vmem:[#allocation26_spill] sm:$0xff] %v6854_v18  ;;  %v6857_v54 = vadd.f32 %v4504_v6, %v7533_v59  ;;  %v7542_v59 = vld [vmem:[#allocation7_spill] sm:$0xff] }
 0x28f   :  { %v6859_v8 = vpop.f32.mrf.mxu1  ;;  %v2171_v55 = vpop.f32.mrf.mxu0 }
 0x290   :  { %7534 = vst [vmem:[#allocation55_spill] sm:$0xff] %v6857_v54  ;;  %v6862_v3 = vadd.f32 %v2171_v55, %v7535_v24  ;;  %v7545_v24 = vld [vmem:[#allocation10_spill] sm:$0xff] }
 0x291   :  { %v2599_v63 = vpop.f32.mrf.mxu1  ;;  %v4507_v29 = vpop.f32.mrf.mxu0 }
 0x292   :  { %7536 = vst [vmem:[#allocation20_spill] sm:$0xff] %v6862_v3  ;;  %v6865_v30 = vadd.f32 %v4507_v29, %v7537_v22  ;;  %v7547_v22 = vld [vmem:[#allocation51_spill] sm:$0xff] }
 0x293   :  { %v6867_v7 = vpop.f32.mrf.mxu1  ;;  %v2184_v53 = vpop.f32.mrf.mxu0 }
 0x294   :  { %7538 = vst [vmem:[#allocation49_spill] sm:$0xff] %v6865_v30  ;;  %7539 = vst [vmem:[#allocation33_spill] sm:$0xff] %v6867_v7  ;;  %v6870_v5 = vadd.f32 %v2184_v53, %v7540_v46  ;;  %v7549_v46 = vld [vmem:[#allocation46_spill] sm:$0xff] }
 0x295   :  { %v2604_v18 = vpop.f32.mrf.mxu1  ;;  %v4508_v6 = vpop.f32.mrf.mxu0 }
 0x296   :  { %7541 = vst [vmem:[#allocation57_spill] sm:$0xff] %v6870_v5  ;;  %v6873_v54 = vadd.f32 %v4508_v6, %v7542_v59  ;;  %v7551_v59 = vld [vmem:[#allocation13_spill] sm:$0xff] }
 0x297   :  { %v6875_v48 = vpop.f32.mrf.mxu1  ;;  %v2187_v55 = vpop.f32.mrf.mxu0 }
 0x298   :  { %7543 = vst [vmem:[#allocation29_spill] sm:$0xff] %v6873_v54  ;;  %7544 = vst [vmem:[#allocation53_spill] sm:$0xff] %v6875_v48  ;;  %v6878_v63 = vadd.f32 %v2187_v55, %v7545_v24  ;;  %v7554_v24 = vld [vmem:[#allocation9_spill] sm:$0xff] }
 0x299   :  { %v2607_v3 = vpop.f32.mrf.mxu1  ;;  %v4511_v29 = vpop.f32.mrf.mxu0 }
 0x29a   :  { %7546 = vst [vmem:[#allocation35_spill] sm:$0xff] %v6878_v63  ;;  %v6881_v30 = vadd.f32 %v4511_v29, %v7547_v22  ;;  %v7556_v22 = vld [vmem:[#allocation12_spill] sm:$0xff] }
 0x29b   :  { %v6883_v7 = vpop.f32.mrf.mxu1  ;;  %v2200_v53 = vpop.f32.mrf.mxu0 }
 0x29c   :  { %7548 = vst [vmem:[#allocation60_spill] sm:$0xff] %v6881_v30  ;;  %v6886_v18 = vadd.f32 %v2200_v53, %v7549_v46  ;;  %v7559_v46 = vld [vmem:[#allocation52_spill] sm:$0xff] }
 0x29d   :  { %v2612_v5 = vpop.f32.mrf.mxu1  ;;  %v4512_v6 = vpop.f32.mrf.mxu0 }
 0x29e   :  { %7550 = vst [vmem:[#allocation31_spill] sm:$0xff] %v6886_v18  ;;  %v6889_v54 = vadd.f32 %v4512_v6, %v7551_v59  ;;  %v7561_v59 = vld [vmem:[#allocation15_spill] sm:$0xff] }
 0x29f   :  { %v6891_v48 = vpop.f32.mrf.mxu1  ;;  %v2203_v55 = vpop.f32.mrf.mxu0 }
 0x2a0   :  { %7552 = vst [vmem:[#allocation58_spill] sm:$0xff] %v6889_v54  ;;  %7553 = vst [vmem:[#allocation42_spill] sm:$0xff] %v6891_v48  ;;  %v6894_v3 = vadd.f32 %v2203_v55, %v7554_v24  ;;  %v7564_v24 = vld [vmem:[#allocation16_spill] sm:$0xff] }
 0x2a1   :  { %v2615_v63 = vpop.f32.mrf.mxu1  ;;  %v4515_v29 = vpop.f32.mrf.mxu0 }
 0x2a2   :  { %7555 = vst [vmem:[#allocation61_spill] sm:$0xff] %v6894_v3  ;;  %v6897_v30 = vadd.f32 %v4515_v29, %v7556_v22  ;;  %v7566_v22 = vld [vmem:[#allocation18_spill] sm:$0xff] }
 0x2a3   :  { %v6899_v15 = vpop.f32.mrf.mxu1  ;;  %v2216_v53 = vpop.f32.mrf.mxu0 }
 0x2a4   :  { %7557 = vst [vmem:[#allocation37_spill] sm:$0xff] %v6897_v30  ;;  %7558 = vst [vmem:[#allocation59_spill] sm:$0xff] %v6899_v15  ;;  %v6902_v5 = vadd.f32 %v2216_v53, %v7559_v46  ;;  %v7568_v46 = vld [vmem:[#allocation19_spill] sm:$0xff] }
 0x2a5   :  { %v2620_v18 = vpop.f32.mrf.mxu1  ;;  %v4516_v6 = vpop.f32.mrf.mxu0 }
 0x2a6   :  { %7560 = vst [vmem:[#allocation44_spill] sm:$0xff] %v6902_v5  ;;  %v6905_v54 = vadd.f32 %v4516_v6, %v7561_v59 }
 0x2a7   :  { %v6907_v48 = vpop.f32.mrf.mxu1  ;;  %v2219_v55 = vpop.f32.mrf.mxu0 }
 0x2a8   :  { %7562 = vst [vmem:[#allocation64_spill] sm:$0xff] %v6905_v54  ;;  %7563 = vst [vmem:[#allocation39_spill] sm:$0xff] %v6907_v48  ;;  %v6910_v63 = vadd.f32 %v2219_v55, %v7564_v24  ;;  %v7571_v24 = vld [vmem:[#allocation22_spill] sm:$0xff] }
 0x2a9   :  { %v2623_v3 = vpop.f32.mrf.mxu1  ;;  %v4519_v29 = vpop.f32.mrf.mxu0 }
 0x2aa   :  { %7565 = vst [vmem:[#allocation62_spill] sm:$0xff] %v6910_v63  ;;  %v6913_v30 = vadd.f32 %v4519_v29, %v7566_v22 }
 0x2ab   :  { %v6915_v15 = vpop.f32.mrf.mxu1  ;;  %v2232_v53 = vpop.f32.mrf.mxu0 }
 0x2ac   :  { %7567 = vst [vmem:[#allocation54_spill] sm:$0xff] %v6913_v30  ;;  %v6918_v18 = vadd.f32 %v2232_v53, %v7568_v46  ;;  %v6932_v53 = vld [vmem:[%s7332_s2] ss:$0 sm:$0xff] }
 0x2ad   :  { %v2628_v5 = vpop.f32.mrf.mxu1  ;;  %v4520_v6 = vpop.f32.mrf.mxu0 }
 0x2ae   :  { %7569 = vst [vmem:[#allocation65_spill] sm:$0xff] %v6918_v18  ;;  %v6921_v59 = vadd.f32 %v4520_v6, %v6560_v36 }
 0x2af   :  { %v6923_v54 = vpop.f32.mrf.mxu1  ;;  %v2235_v55 = vpop.f32.mrf.mxu0 }
 0x2b0   :  { %7570 = vst [vmem:[#allocation48_spill] sm:$0xff] %v6921_v59  ;;  %v6926_v3 = vadd.f32 %v2235_v55, %v7571_v24 }
 0x2b1   :  { %v2631_v63 = vpop.f32.mrf.mxu1  ;;  %v4539_v29 = vpop.f32.mrf.mxu0 }
 0x2b2   :  { %7572 = vst [vmem:[#allocation63_spill] sm:$0xff] %v6926_v3  ;;  %v2804_v22 = vadd.f32 %v4539_v29, %v6602_v50  ;;  %v6942_v50 = vld [vmem:[%s7333_s3] ss:$0 sm:$0xff]  ;;  %v7574_v63 = vld [vmem:[#allocation21_spill] sm:$0xff] }
 0x2b3   :  { %v6934_v5 = vpop.f32.mrf.mxu1  ;;  %v2795_v46 = vpop.f32.mrf.mxu0 }
 0x2b4   :  { %7573 = vst [vmem:[#allocation56_spill] sm:$0xff] %v6934_v5  ;;  %v3052_v36 = vadd.f32 %v2804_v22, %v6566_v16  ;;  %v2796_v6 = vadd.f32 %v2795_v46, %v6570_v23 }
 0x2b5   :  { %v2636_v59 = vpop.f32.mrf.mxu1  ;;  %v4540_v18 = vpop.f32.mrf.mxu0 }
 0x2b6   :  { %v3123_v55 = vmul.f32 %v6932_v53, %v3052_v36  ;;  %v3050_v24 = vadd.f32 %v2796_v6, %v7574_v63  ;;  %v2807_v29 = vadd.f32 %v4540_v18, %v6620_v12 }
 0x2b7   :  { %v6946_v3 = vpop.f32.mrf.mxu1  ;;  %v2798_v30 = vpop.f32.mrf.mxu0 }
 0x2b8   :  { %7575 = vst [vmem:[#allocation68_spill] sm:$0xff] %v6946_v3  ;;  %v3121_v16 = vmul.f32 %v6932_v53, %v3050_v24  ;;  %v3053_v23 = vadd.f32 %v2807_v29, %v6585_v31  ;;  %v2799_v59 = vadd.f32 %v2798_v30, %v6588_v52  ;;  %v3194_v22 = vadd.f32 %v6942_v50, %v3123_v55 }
 0x2b9   :  { %v2639_v46 = vpop.f32.mrf.mxu1  ;;  %v4543_v36 = vpop.f32.mrf.mxu0 }
 0x2ba   :  { %v3124_v5 = vmul.f32 %v6932_v53, %v3053_v23  ;;  %v3051_v48 = vadd.f32 %v2799_v59, %v6592_v9  ;;  %v2820_v6 = vadd.f32 %v4543_v36, %v6666_v35  ;;  %v3192_v63 = vadd.f32 %v6942_v50, %v3121_v16 }
 0x2bb   :  { %v6955_v12 = vpop.f32.mrf.mxu1  ;;  %v2811_v18 = vpop.f32.mrf.mxu0  ;;  %v3258_v30 = vmax.f32 %v3194_v22, 0.0 }
 0x2bc   :  { %v3195_v24 = vadd.f32 %v6942_v50, %v3124_v5  ;;  %v3122_v31 = vmul.f32 %v6932_v53, %v3051_v48  ;;  %v2812_v52 = vadd.f32 %v2811_v18, %v6634_v51  ;;  %v3056_v55 = vadd.f32 %v2820_v6, %v6598_v49 }
 0x2bd   :  { %v2644_v29 = vpop.f32.mrf.mxu1  ;;  %v4544_v23 = vpop.f32.mrf.mxu0  ;;  %v3256_v48 = vmax.f32 %v3192_v63, 0.0 }
 0x2be   :  { %v3259_v46 = vmax.f32 %v3195_v24, 0.0  ;;  %v3193_v9 = vadd.f32 %v6942_v50, %v3122_v31  ;;  %v3054_v35 = vadd.f32 %v2812_v52, %v6609_v28  ;;  %v2823_v59 = vadd.f32 %v4544_v23, %v6684_v34 }
 0x2bf   :  { %v3127_v16 = vmul.f32 %v6932_v53, %v3056_v55  ;;  %v6966_v36 = vpop.f32.mrf.mxu1  ;;  %v2814_v5 = vpop.f32.mrf.mxu0 }
 0x2c0   :  { %v4058_v3 = vpack.c.bf16 %v3259_v46, %v3258_v30  ;;  %v3257_v51 = vmax.f32 %v3193_v9, 0.0  ;;  %v3057_v22 = vadd.f32 %v2823_v59, %v6617_v58  ;;  %v3125_v6 = vmul.f32 %v6932_v53, %v3054_v35 }
 0x2c1   :  { %v3198_v49 = vadd.f32 %v6942_v50, %v3127_v16  ;;  %v2815_v18 = vadd.f32 %v2814_v5, %v6652_v62  ;;  %v2647_v24 = vpop.f32.mrf.mxu1  ;;  %v4547_v28 = vpop.f32.mrf.mxu0 }
 0x2c2   :  { %4210 = vst [vmem:[%s7334_s4 + $0x8] sm:$0xff] %v4058_v3   ;;  %v4053_v34 = vpack.c.bf16 %v3257_v51, %v3256_v48  ;;  %v3128_v31 = vmul.f32 %v6932_v53, %v3057_v22  ;;  %v2836_v63 = vadd.f32 %v4547_v28, %v6735_v60  ;;  %v3196_v23 = vadd.f32 %v6942_v50, %v3125_v6 }
 0x2c3   :  { %v3055_v52 = vadd.f32 %v2815_v18, %v6624_v26  ;;  %v6978_v58 = vpop.f32.mrf.mxu1  ;;  %v2827_v30 = vpop.f32.mrf.mxu0  ;;  %v3262_v29 = vmax.f32 %v3198_v49, 0.0 }
 0x2c4   :  { %4054 = vst [vmem:[%s7334_s4] sm:$0xff] %v4053_v34   ;;  %v3199_v62 = vadd.f32 %v6942_v50, %v3128_v31  ;;  %v3060_v55 = vadd.f32 %v2836_v63, %v6630_v39  ;;  %v2828_v3 = vadd.f32 %v2827_v30, %v6698_v38  ;;  %v3260_v49 = vmax.f32 %v3196_v23, 0.0 }
 0x2c5   :  { %v3126_v60 = vmul.f32 %v6932_v53, %v3055_v52  ;;  %v2652_v46 = vpop.f32.mrf.mxu1  ;;  %v4548_v26 = vpop.f32.mrf.mxu0 }
 0x2c6   :  { %v3263_v9 = vmax.f32 %v3199_v62, 0.0  ;;  %v3131_v35 = vmul.f32 %v6932_v53, %v3060_v55  ;;  %v3058_v59 = vadd.f32 %v2828_v3, %v6641_v14  ;;  %v2839_v16 = vadd.f32 %v4548_v26, %v6749_v44 }
 0x2c7   :  { %v3197_v5 = vadd.f32 %v6942_v50, %v3126_v60  ;;  %v6992_v48 = vpop.f32.mrf.mxu1  ;;  %v2830_v39 = vpop.f32.mrf.mxu0 }
 0x2c8   :  { %v4068_v38 = vpack.c.bf16 %v3263_v9, %v3262_v29  ;;  %v3129_v51 = vmul.f32 %v6932_v53, %v3058_v59  ;;  %v3061_v22 = vadd.f32 %v2839_v16, %v6649_v2  ;;  %v3202_v18 = vadd.f32 %v6942_v50, %v3131_v35 }
 0x2c9   :  { %v3261_v6 = vmax.f32 %v3197_v5, 0.0  ;;  %v2831_v24 = vadd.f32 %v2830_v39, %v6716_v19  ;;  %v2655_v28 = vpop.f32.mrf.mxu1  ;;  %v4551_v14 = vpop.f32.mrf.mxu0 }
 0x2ca   :  { %4212 = vst [vmem:[%s7334_s4 + $0x18] sm:$0xff] %v4068_v38   ;;  %v3132_v44 = vmul.f32 %v6932_v53, %v3061_v22  ;;  %v2852_v34 = vadd.f32 %v4551_v14, %v6787_v57  ;;  %v3200_v30 = vadd.f32 %v6942_v50, %v3129_v51  ;;  %v3266_v3 = vmax.f32 %v3202_v18, 0.0 }
 0x2cb   :  { %v4063_v31 = vpack.c.bf16 %v3261_v6, %v3260_v49  ;;  %v3059_v63 = vadd.f32 %v2831_v24, %v6656_v1  ;;  %v7004_v2 = vpop.f32.mrf.mxu1  ;;  %v2843_v52 = vpop.f32.mrf.mxu0 }
 0x2cc   :  { %v3203_v19 = vadd.f32 %v6942_v50, %v3132_v44  ;;  %v3064_v62 = vadd.f32 %v2852_v34, %v6662_v4  ;;  %v2844_v55 = vadd.f32 %v2843_v52, %v6765_v10  ;;  %v3264_v35 = vmax.f32 %v3200_v30, 0.0 }
 0x2cd   :  { %4211 = vst [vmem:[%s7334_s4 + $0x10] sm:$0xff] %v4063_v31   ;;  %v3130_v57 = vmul.f32 %v6932_v53, %v3059_v63  ;;  %v2660_v29 = vpop.f32.mrf.mxu1  ;;  %v4552_v1 = vpop.f32.mrf.mxu0 }
 0x2ce   :  { %v3267_v23 = vmax.f32 %v3203_v19, 0.0  ;;  %v3135_v60 = vmul.f32 %v6932_v53, %v3064_v62  ;;  %v3062_v46 = vadd.f32 %v2844_v55, %v6673_v21  ;;  %v2855_v26 = vadd.f32 %v4552_v1, %v6795_v27 }
 0x2cf   :  { %v3201_v4 = vadd.f32 %v6942_v50, %v3130_v57  ;;  %v7018_v9 = vpop.f32.mrf.mxu1  ;;  %v2846_v10 = vpop.f32.mrf.mxu0 }
 0x2d0   :  { %v4078_v59 = vpack.c.bf16 %v3267_v23, %v3266_v3  ;;  %v3065_v16 = vadd.f32 %v2855_v26, %v6681_v0  ;;  %v3206_v39 = vadd.f32 %v6942_v50, %v3135_v60  ;;  %v3133_v38 = vmul.f32 %v6932_v53, %v3062_v46 }
 0x2d1   :  { %v3265_v5 = vmax.f32 %v3201_v4, 0.0  ;;  %v2847_v51 = vadd.f32 %v2846_v10, %v6776_v47  ;;  %v2663_v22 = vpop.f32.mrf.mxu1  ;;  %v4555_v21 = vpop.f32.mrf.mxu0 }
 0x2d2   :  { %4214 = vst [vmem:[%s7334_s4 + $0x28] sm:$0xff] %v4078_v59   ;;  %v3136_v27 = vmul.f32 %v6932_v53, %v3065_v16  ;;  %v2868_v49 = vadd.f32 %v4555_v21, %v6819_v56  ;;  %v3270_v44 = vmax.f32 %v3206_v39, 0.0  ;;  %v3204_v34 = vadd.f32 %v6942_v50, %v3133_v38 }
 0x2d3   :  { %v4073_v6 = vpack.c.bf16 %v3265_v5, %v3264_v35  ;;  %v3063_v0 = vadd.f32 %v2847_v51, %v6688_v32  ;;  %v7030_v18 = vpop.f32.mrf.mxu1  ;;  %v2859_v24 = vpop.f32.mrf.mxu0 }
 0x2d4   :  { %v3207_v28 = vadd.f32 %v6942_v50, %v3136_v27  ;;  %v3068_v47 = vadd.f32 %v2868_v49, %v6694_v11  ;;  %v2860_v14 = vadd.f32 %v2859_v24, %v6803_v40  ;;  %v3268_v29 = vmax.f32 %v3204_v34, 0.0 }
 0x2d5   :  { %4213 = vst [vmem:[%s7334_s4 + $0x20] sm:$0xff] %v4073_v6   ;;  %v3134_v56 = vmul.f32 %v6932_v53, %v3063_v0  ;;  %v2668_v31 = vpop.f32.mrf.mxu1  ;;  %v4556_v32 = vpop.f32.mrf.mxu0 }
 0x2d6   :  { %v3271_v63 = vmax.f32 %v3207_v28, 0.0  ;;  %v3139_v52 = vmul.f32 %v6932_v53, %v3068_v47  ;;  %v3066_v30 = vadd.f32 %v2860_v14, %v6705_v20  ;;  %v2871_v11 = vadd.f32 %v4556_v32, %v6827_v43  ;;  %v7576_v32 = vld [vmem:[#allocation25_spill] sm:$0xff] }
 0x2d7   :  { %v3205_v40 = vadd.f32 %v6942_v50, %v3134_v56  ;;  %v7044_v19 = vpop.f32.mrf.mxu1  ;;  %v2862_v62 = vpop.f32.mrf.mxu0 }
 0x2d8   :  { %v4088_v55 = vpack.c.bf16 %v3271_v63, %v3270_v44  ;;  %v3137_v3 = vmul.f32 %v6932_v53, %v3066_v30  ;;  %v3069_v57 = vadd.f32 %v2871_v11, %v6713_v17  ;;  %v3210_v23 = vadd.f32 %v6942_v50, %v3139_v52  ;;  %v7577_v11 = vld [vmem:[#allocation28_spill] sm:$0xff] }
 0x2d9   :  { %v3269_v1 = vmax.f32 %v3205_v40, 0.0  ;;  %v2863_v60 = vadd.f32 %v2862_v62, %v6811_v25  ;;  %v2671_v46 = vpop.f32.mrf.mxu1  ;;  %v4559_v20 = vpop.f32.mrf.mxu0  ;;  %v7578_v40 = vld [vmem:[#allocation33_spill] sm:$0xff] }
 0x2da   :  { %4216 = vst [vmem:[%s7334_s4 + $0x38] sm:$0xff] %v4088_v55   ;;  %v3140_v43 = vmul.f32 %v6932_v53, %v3069_v57  ;;  %v2884_v26 = vadd.f32 %v4559_v20, %v6851_v45  ;;  %v3208_v59 = vadd.f32 %v6942_v50, %v3137_v3  ;;  %v3274_v39 = vmax.f32 %v3210_v23, 0.0  ;;  %v7580_v20 = vld [vmem:[#allocation42_spill] sm:$0xff] }
 0x2db   :  { %v4083_v4 = vpack.c.bf16 %v3269_v1, %v3268_v29  ;;  %v3067_v10 = vadd.f32 %v2863_v60, %v6720_v13  ;;  %v7056_v17 = vpop.f32.mrf.mxu1  ;;  %v2875_v35 = vpop.f32.mrf.mxu0  ;;  %v7579_v60 = vld [vmem:[#allocation24_spill] sm:$0xff] }
 0x2dc   :  { %v3211_v25 = vadd.f32 %v6942_v50, %v3140_v43  ;;  %v3072_v16 = vadd.f32 %v2884_v26, %v6729_v33  ;;  %v2876_v5 = vadd.f32 %v2875_v35, %v6835_v61  ;;  %v3272_v6 = vmax.f32 %v3208_v59, 0.0 }
 0x2dd   :  { %4215 = vst [vmem:[%s7334_s4 + $0x30] sm:$0xff] %v4083_v4   ;;  %v3138_v45 = vmul.f32 %v6932_v53, %v3067_v10  ;;  %v2676_v38 = vpop.f32.mrf.mxu1  ;;  %v4560_v13 = vpop.f32.mrf.mxu0 }
 0x2de   :  { %v3275_v51 = vmax.f32 %v3211_v25, 0.0  ;;  %v3143_v22 = vmul.f32 %v6932_v53, %v3072_v16  ;;  %v3070_v21 = vadd.f32 %v2876_v5, %v6740_v37  ;;  %v2887_v27 = vadd.f32 %v4560_v13, %v6859_v8  ;;  %v7581_v25 = vld [vmem:[#allocation4_spill] sm:$0xff]  ;;  %v7582_v38 = vld [vmem:[#allocation53_spill] sm:$0xff] }
 0x2df   :  { %v3209_v33 = vadd.f32 %v6942_v50, %v3138_v45  ;;  %v7070_v49 = vpop.f32.mrf.mxu1  ;;  %v2878_v61 = vpop.f32.mrf.mxu0 }
 0x2e0   :  { %v4098_v0 = vpack.c.bf16 %v3275_v51, %v3274_v39  ;;  %v3073_v24 = vadd.f32 %v2887_v27, %v6743_v42  ;;  %v3214_v47 = vadd.f32 %v6942_v50, %v3143_v22  ;;  %v3141_v14 = vmul.f32 %v6932_v53, %v3070_v21 }
 0x2e1   :  { %v3273_v28 = vmax.f32 %v3209_v33, 0.0  ;;  %v2879_v44 = vadd.f32 %v2878_v61, %v6843_v41  ;;  %v2679_v34 = vpop.f32.mrf.mxu1  ;;  %v4563_v37 = vpop.f32.mrf.mxu0  ;;  %v7583_v61 = vld [vmem:[#allocation27_spill] sm:$0xff] }
 0x2e2   :  { %4218 = vst [vmem:[%s7334_s4 + $0x48] sm:$0xff] %v4098_v0   ;;  %v3144_v8 = vmul.f32 %v6932_v53, %v3073_v24  ;;  %v2900_v56 = vadd.f32 %v4563_v37, %v6883_v7  ;;  %v3278_v55 = vmax.f32 %v3214_v47, 0.0  ;;  %v3212_v3 = vadd.f32 %v6942_v50, %v3141_v14  ;;  %v7584_v14 = vld [vmem:[#allocation2_spill] sm:$0xff]  ;;  %v7585_v34 = vld [vmem:[#allocation59_spill] sm:$0xff] }
 0x2e3   :  { %v4093_v31 = vpack.c.bf16 %v3273_v28, %v3272_v6  ;;  %v3071_v42 = vadd.f32 %v2879_v44, %v7576_v32  ;;  %v7082_v63 = vpop.f32.mrf.mxu1  ;;  %v2891_v52 = vpop.f32.mrf.mxu0 }
 0x2e4   :  { %v3215_v30 = vadd.f32 %v6942_v50, %v3144_v8  ;;  %v3076_v41 = vadd.f32 %v2900_v56, %v7577_v11  ;;  %v2892_v62 = vadd.f32 %v2891_v52, %v7578_v40  ;;  %v3276_v5 = vmax.f32 %v3212_v3, 0.0  ;;  %v7586_v52 = vld [vmem:[#allocation5_spill] sm:$0xff] }
 0x2e5   :  { %4217 = vst [vmem:[%s7334_s4 + $0x40] sm:$0xff] %v4093_v31   ;;  %v3142_v7 = vmul.f32 %v6932_v53, %v3071_v42  ;;  %v2684_v57 = vpop.f32.mrf.mxu1  ;;  %v4564_v29 = vpop.f32.mrf.mxu0 }
 0x2e6   :  { %v3279_v1 = vmax.f32 %v3215_v30, 0.0  ;;  %v3147_v23 = vmul.f32 %v6932_v53, %v3076_v41  ;;  %v3074_v46 = vadd.f32 %v2892_v62, %v7579_v60  ;;  %v2903_v43 = vadd.f32 %v4564_v29, %v7580_v20  ;;  %v7588_v60 = vld [vmem:[#allocation39_spill] sm:$0xff] }
 0x2e7   :  { %v3213_v26 = vadd.f32 %v6942_v50, %v3142_v7  ;;  %v7096_v4 = vpop.f32.mrf.mxu1  ;;  %v2894_v10 = vpop.f32.mrf.mxu0  ;;  %v7587_v7 = vld [vmem:[#allocation34_spill] sm:$0xff] }
 0x2e8   :  { %v4108_v35 = vpack.c.bf16 %v3279_v1, %v3278_v55  ;;  %v3145_v59 = vmul.f32 %v6932_v53, %v3074_v46  ;;  %v3077_v16 = vadd.f32 %v2903_v43, %v7581_v25  ;;  %v3218_v45 = vadd.f32 %v6942_v50, %v3147_v23 }
 0x2e9   :  { %v3277_v39 = vmax.f32 %v3213_v26, 0.0  ;;  %v2895_v13 = vadd.f32 %v2894_v10, %v7582_v38  ;;  %v2687_v51 = vpop.f32.mrf.mxu1  ;;  %v4567_v22 = vpop.f32.mrf.mxu0  ;;  %v7591_v38 = vld [vmem:[#allocation56_spill] sm:$0xff] }
 0x2ea   :  { %4220 = vst [vmem:[%s7334_s4 + $0x58] sm:$0xff] %v4108_v35   ;;  %v3148_v21 = vmul.f32 %v6932_v53, %v3077_v16  ;;  %v2916_v27 = vadd.f32 %v4567_v22, %v6915_v15  ;;  %v3216_v28 = vadd.f32 %v6942_v50, %v3145_v59  ;;  %v3282_v8 = vmax.f32 %v3218_v45, 0.0  ;;  %v7589_v35 = vld [vmem:[#allocation3_spill] sm:$0xff] }
 0x2eb   :  { %v4103_v33 = vpack.c.bf16 %v3277_v39, %v3276_v5  ;;  %v3075_v6 = vadd.f32 %v2895_v13, %v7583_v61  ;;  %v7108_v0 = vpop.f32.mrf.mxu1  ;;  %v2907_v24 = vpop.f32.mrf.mxu0  ;;  %v7590_v39 = vld [vmem:[#allocation30_spill] sm:$0xff] }
 0x2ec   :  { %v3219_v47 = vadd.f32 %v6942_v50, %v3148_v21  ;;  %v3080_v44 = vadd.f32 %v2916_v27, %v7584_v14  ;;  %v2908_v37 = vadd.f32 %v2907_v24, %v7585_v34  ;;  %v3280_v55 = vmax.f32 %v3216_v28, 0.0 }
 0x2ed   :  { %4219 = vst [vmem:[%s7334_s4 + $0x50] sm:$0xff] %v4103_v33   ;;  %v3146_v15 = vmul.f32 %v6932_v53, %v3075_v6  ;;  %v2692_v56 = vpop.f32.mrf.mxu1  ;;  %v4568_v31 = vpop.f32.mrf.mxu0  ;;  %v7592_v6 = vld [vmem:[#allocation11_spill] sm:$0xff] }
 0x2ee   :  { %v3283_v32 = vmax.f32 %v3219_v47, 0.0  ;;  %v3151_v42 = vmul.f32 %v6932_v53, %v3080_v44  ;;  %v3078_v30 = vadd.f32 %v2908_v37, %v7586_v52  ;;  %v2919_v11 = vadd.f32 %v4568_v31, %v6923_v54 }
 0x2ef   :  { %v3217_v41 = vadd.f32 %v6942_v50, %v3146_v15  ;;  %v7122_v40 = vpop.f32.mrf.mxu1  ;;  %v2910_v62 = vpop.f32.mrf.mxu0 }
 0x2f0   :  { %v4118_v3 = vpack.c.bf16 %v3283_v32, %v3282_v8  ;;  %v3081_v57 = vadd.f32 %v2919_v11, %v7587_v7  ;;  %v3222_v1 = vadd.f32 %v6942_v50, %v3151_v42  ;;  %v3149_v23 = vmul.f32 %v6932_v53, %v3078_v30  ;;  %v7593_v8 = vld [vmem:[#allocation36_spill] sm:$0xff] }
 0x2f1   :  { %v3281_v29 = vmax.f32 %v3217_v41, 0.0  ;;  %v2911_v46 = vadd.f32 %v2910_v62, %v7588_v60  ;;  %v2695_v20 = vpop.f32.mrf.mxu1  ;;  %v4571_v43 = vpop.f32.mrf.mxu0  ;;  %v7594_v42 = vld [vmem:[#allocation68_spill] sm:$0xff] }
 0x2f2   :  { %4222 = vst [vmem:[%s7334_s4 + $0x68] sm:$0xff] %v4118_v3   ;;  %v3152_v54 = vmul.f32 %v6932_v53, %v3081_v57  ;;  %v2932_v26 = vadd.f32 %v4571_v43, %v6955_v12  ;;  %v3286_v51 = vmax.f32 %v3222_v1, 0.0  ;;  %v3220_v22 = vadd.f32 %v6942_v50, %v3149_v23  ;;  %v7596_v23 = vld [vmem:[#allocation32_spill] sm:$0xff] }
 0x2f3   :  { %v4113_v10 = vpack.c.bf16 %v3281_v29, %v3280_v55  ;;  %v3079_v59 = vadd.f32 %v2911_v46, %v7589_v35  ;;  %v7134_v25 = vpop.f32.mrf.mxu1  ;;  %v2923_v16 = vpop.f32.mrf.mxu0  ;;  %v7595_v55 = vld [vmem:[#allocation6_spill] sm:$0xff] }
 0x2f4   :  { %v3223_v5 = vadd.f32 %v6942_v50, %v3152_v54  ;;  %v3084_v45 = vadd.f32 %v2932_v26, %v7590_v39  ;;  %v2924_v13 = vadd.f32 %v2923_v16, %v7591_v38  ;;  %v3284_v56 = vmax.f32 %v3220_v22, 0.0  ;;  %v7597_v35 = vld [vmem:[#allocation14_spill] sm:$0xff] }
 0x2f5   :  { %4221 = vst [vmem:[%s7334_s4 + $0x60] sm:$0xff] %v4113_v10   ;;  %v3150_v12 = vmul.f32 %v6932_v53, %v3079_v59  ;;  %v2700_v21 = vpop.f32.mrf.mxu1  ;;  %v4572_v27 = vpop.f32.mrf.mxu0 }
 0x2f6   :  { %v3287_v33 = vmax.f32 %v3223_v5, 0.0  ;;  %v3155_v61 = vmul.f32 %v6932_v53, %v3084_v45  ;;  %v3082_v24 = vadd.f32 %v2924_v13, %v7592_v6  ;;  %v2935_v28 = vadd.f32 %v4572_v27, %v6966_v36  ;;  %v7598_v13 = vld [vmem:[#allocation43_spill] sm:$0xff] }
 0x2f7   :  { %v3221_v47 = vadd.f32 %v6942_v50, %v3150_v12  ;;  %v7148_v14 = vpop.f32.mrf.mxu1  ;;  %v2926_v44 = vpop.f32.mrf.mxu0 }
 0x2f8   :  { %v4128_v34 = vpack.c.bf16 %v3287_v33, %v3286_v51  ;;  %v3153_v37 = vmul.f32 %v6932_v53, %v3082_v24  ;;  %v3085_v15 = vadd.f32 %v2935_v28, %v7593_v8  ;;  %v3226_v32 = vadd.f32 %v6942_v50, %v3155_v61  ;;  %v7599_v28 = vld [vmem:[#allocation8_spill] sm:$0xff]  ;;  %v7600_v8 = vld [vmem:[#allocation38_spill] sm:$0xff] }
 0x2f9   :  { %v3285_v31 = vmax.f32 %v3221_v47, 0.0  ;;  %v2927_v52 = vadd.f32 %v2926_v44, %v7594_v42  ;;  %v2703_v30 = vpop.f32.mrf.mxu1  ;;  %v4575_v11 = vpop.f32.mrf.mxu0 }
 0x2fa   :  { %4224 = vst [vmem:[%s7334_s4 + $0x78] sm:$0xff] %v4128_v34   ;;  %v3156_v36 = vmul.f32 %v6932_v53, %v3085_v15  ;;  %v2948_v41 = vadd.f32 %v4575_v11, %v7004_v2  ;;  %v3224_v29 = vadd.f32 %v6942_v50, %v3153_v37  ;;  %v3290_v20 = vmax.f32 %v3226_v32, 0.0  ;;  %v7601_v11 = vld [vmem:[#allocation23_spill] sm:$0xff] }
 0x2fb   :  { %v4123_v62 = vpack.c.bf16 %v3285_v31, %v3284_v56  ;;  %v3083_v3 = vadd.f32 %v2927_v52, %v7595_v55  ;;  %v7160_v7 = vpop.f32.mrf.mxu1  ;;  %v2939_v57 = vpop.f32.mrf.mxu0 }
 0x2fc   :  { %v3227_v1 = vadd.f32 %v6942_v50, %v3156_v36  ;;  %v3088_v60 = vadd.f32 %v2948_v41, %v7596_v23  ;;  %v2940_v46 = vadd.f32 %v2939_v57, %v6978_v58  ;;  %v3288_v45 = vmax.f32 %v3224_v29, 0.0  ;;  %v7602_v29 = vld [vmem:[#allocation47_spill] sm:$0xff] }
 0x2fd   :  { %4223 = vst [vmem:[%s7334_s4 + $0x70] sm:$0xff] %v4123_v62   ;;  %v3154_v2 = vmul.f32 %v6932_v53, %v3083_v3  ;;  %v2708_v43 = vpop.f32.mrf.mxu1  ;;  %v4576_v54 = vpop.f32.mrf.mxu0 }
 0x2fe   :  { %v3291_v26 = vmax.f32 %v3227_v1, 0.0  ;;  %v3159_v10 = vmul.f32 %v6932_v53, %v3088_v60  ;;  %v3086_v59 = vadd.f32 %v2940_v46, %v7597_v35  ;;  %v2951_v16 = vadd.f32 %v4576_v54, %v7018_v9 }
 0x2ff   :  { %v3225_v5 = vadd.f32 %v6942_v50, %v3154_v2  ;;  %v7174_v39 = vpop.f32.mrf.mxu1  ;;  %v2942_v58 = vpop.f32.mrf.mxu0 }
 0x300   :  { %v4138_v38 = vpack.c.bf16 %v3291_v26, %v3290_v20  ;;  %v3089_v51 = vadd.f32 %v2951_v16, %v7598_v13  ;;  %v3230_v12 = vadd.f32 %v6942_v50, %v3159_v10  ;;  %v3157_v21 = vmul.f32 %v6932_v53, %v3086_v59  ;;  %v7603_v10 = vld [vmem:[#allocation17_spill] sm:$0xff] }
 0x301   :  { %v3289_v22 = vmax.f32 %v3225_v5, 0.0  ;;  %v2943_v27 = vadd.f32 %v2942_v58, %v6992_v48  ;;  %v2711_v33 = vpop.f32.mrf.mxu1  ;;  %v4579_v61 = vpop.f32.mrf.mxu0 }
 0x302   :  { %4226 = vst [vmem:[%s7334_s4 + $0x88] sm:$0xff] %v4138_v38   ;;  %v3160_v9 = vmul.f32 %v6932_v53, %v3089_v51  ;;  %v2964_v6 = vadd.f32 %v4579_v61, %v7056_v17  ;;  %v3294_v56 = vmax.f32 %v3230_v12, 0.0  ;;  %v3228_v31 = vadd.f32 %v6942_v50, %v3157_v21 }
 0x303   :  { %v4133_v24 = vpack.c.bf16 %v3289_v22, %v3288_v45  ;;  %v3087_v47 = vadd.f32 %v2943_v27, %v7599_v28  ;;  %v7186_v44 = vpop.f32.mrf.mxu1  ;;  %v2955_v34 = vpop.f32.mrf.mxu0  ;;  %v7605_v27 = vld [vmem:[#allocation26_spill] sm:$0xff] }
 0x304   :  { %v3231_v37 = vadd.f32 %v6942_v50, %v3160_v9  ;;  %v3092_v48 = vadd.f32 %v2964_v6, %v7600_v8  ;;  %v2956_v15 = vadd.f32 %v2955_v34, %v7030_v18  ;;  %v3292_v23 = vmax.f32 %v3228_v31, 0.0 }
 0x305   :  { %4225 = vst [vmem:[%s7334_s4 + $0x80] sm:$0xff] %v4133_v24   ;;  %v3158_v17 = vmul.f32 %v6932_v53, %v3087_v47  ;;  %v2716_v32 = vpop.f32.mrf.mxu1  ;;  %v4580_v42 = vpop.f32.mrf.mxu0  ;;  %v7606_v47 = vld [vmem:[#allocation55_spill] sm:$0xff] }
 0x306   :  { %v3295_v52 = vmax.f32 %v3231_v37, 0.0  ;;  %v3163_v30 = vmul.f32 %v6932_v53, %v3092_v48  ;;  %v3090_v36 = vadd.f32 %v2956_v15, %v7601_v11  ;;  %v2967_v41 = vadd.f32 %v4580_v42, %v7070_v49  ;;  %v7607_v42 = vld [vmem:[#allocation20_spill] sm:$0xff] }
 0x307   :  { %v3229_v18 = vadd.f32 %v6942_v50, %v3158_v17  ;;  %v7200_v62 = vpop.f32.mrf.mxu1  ;;  %v2958_v55 = vpop.f32.mrf.mxu0 }
 0x308   :  { %v4148_v3 = vpack.c.bf16 %v3295_v52, %v3294_v56  ;;  %v3161_v57 = vmul.f32 %v6932_v53, %v3090_v36  ;;  %v3093_v1 = vadd.f32 %v2967_v41, %v7602_v29  ;;  %v3234_v46 = vadd.f32 %v6942_v50, %v3163_v30  ;;  %v7608_v41 = vld [vmem:[#allocation49_spill] sm:$0xff] }
 0x309   :  { %v3293_v60 = vmax.f32 %v3229_v18, 0.0  ;;  %v2959_v20 = vadd.f32 %v2958_v55, %v7044_v19  ;;  %v2719_v2 = vpop.f32.mrf.mxu1  ;;  %v4583_v43 = vpop.f32.mrf.mxu0  ;;  %v7604_v19 = vld [vmem:[#allocation41_spill] sm:$0xff] }
 0x30a   :  { %4228 = vst [vmem:[%s7334_s4 + $0x98] sm:$0xff] %v4148_v3   ;;  %v3164_v49 = vmul.f32 %v6932_v53, %v3093_v1  ;;  %v2980_v54 = vadd.f32 %v4583_v43, %v7108_v0  ;;  %v3232_v5 = vadd.f32 %v6942_v50, %v3161_v57  ;;  %v3298_v13 = vmax.f32 %v3234_v46, 0.0 }
 0x30b   :  { %v4143_v26 = vpack.c.bf16 %v3293_v60, %v3292_v23  ;;  %v3091_v35 = vadd.f32 %v2959_v20, %v7603_v10  ;;  %v2722_v59 = vpop.f32.mrf.mxu1  ;;  %v2971_v16 = vpop.f32.mrf.mxu0  ;;  %v7609_v60 = vld [vmem:[#allocation57_spill] sm:$0xff] }
 0x30c   :  { %v3235_v58 = vadd.f32 %v6942_v50, %v3164_v49  ;;  %v3096_v45 = vadd.f32 %v2980_v54, %v7604_v19  ;;  %v2972_v38 = vadd.f32 %v2971_v16, %v7082_v63  ;;  %v3296_v24 = vmax.f32 %v3232_v5, 0.0 }
 0x30d   :  { %4227 = vst [vmem:[%s7334_s4 + $0x90] sm:$0xff] %v4143_v26   ;;  %v3162_v0 = vmul.f32 %v6932_v53, %v3091_v35  ;;  %v2724_v51 = vpop.f32.mrf.mxu1  ;;  %v4584_v22 = vpop.f32.mrf.mxu0  ;;  %v7610_v26 = vld [vmem:[#allocation29_spill] sm:$0xff] }
 0x30e   :  { %v3299_v12 = vmax.f32 %v3235_v58, 0.0  ;;  %v3167_v21 = vmul.f32 %v6932_v53, %v3096_v45  ;;  %v3094_v33 = vadd.f32 %v2972_v38, %v7605_v27  ;;  %v2983_v61 = vadd.f32 %v4584_v22, %v7122_v40 }
 0x30f   :  { %v3233_v9 = vadd.f32 %v6942_v50, %v3162_v0  ;;  %v2725_v6 = vpop.f32.mrf.mxu1  ;;  %v2974_v63 = vpop.f32.mrf.mxu0  ;;  %v7611_v0 = vld [vmem:[#allocation35_spill] sm:$0xff] }
 0x310   :  { %v4158_v28 = vpack.c.bf16 %v3299_v12, %v3298_v13  ;;  %v3097_v34 = vadd.f32 %v2983_v61, %v7606_v47  ;;  %v3238_v8 = vadd.f32 %v6942_v50, %v3167_v21  ;;  %v3165_v48 = vmul.f32 %v6932_v53, %v3094_v33  ;;  %v7612_v33 = vld [vmem:[#allocation60_spill] sm:$0xff] }
 0x311   :  { %v3297_v37 = vmax.f32 %v3233_v9, 0.0  ;;  %v2975_v15 = vadd.f32 %v2974_v63, %v7096_v4  ;;  %v2727_v56 = vpop.f32.mrf.mxu1  ;;  %v4587_v31 = vpop.f32.mrf.mxu0 }
 0x312   :  { %4230 = vst [vmem:[%s7334_s4 + $0xa8] sm:$0xff] %v4158_v28   ;;  %v3168_v40 = vmul.f32 %v6932_v53, %v3097_v34  ;;  %v2996_v17 = vadd.f32 %v4587_v31, %v7160_v7  ;;  %v3302_v55 = vmax.f32 %v3238_v8, 0.0  ;;  %v3236_v3 = vadd.f32 %v6942_v50, %v3165_v48  ;;  %v7613_v34 = vld [vmem:[#allocation31_spill] sm:$0xff] }
 0x313   :  { %v4153_v32 = vpack.c.bf16 %v3297_v37, %v3296_v24  ;;  %v3095_v52 = vadd.f32 %v2975_v15, %v7607_v42  ;;  %v7234_v30 = vpop.f32.mrf.mxu1  ;;  %v2987_v11 = vpop.f32.mrf.mxu0 }
 0x314   :  { %v3239_v36 = vadd.f32 %v6942_v50, %v3168_v40  ;;  %v3100_v4 = vadd.f32 %v2996_v17, %v7608_v41  ;;  %v2988_v18 = vadd.f32 %v2987_v11, %v7134_v25  ;;  %v3300_v35 = vmax.f32 %v3236_v3, 0.0  ;;  %v7614_v40 = vld [vmem:[#allocation58_spill] sm:$0xff] }
 0x315   :  { %4229 = vst [vmem:[%s7334_s4 + $0xa0] sm:$0xff] %v4153_v32   ;;  %v3166_v7 = vmul.f32 %v6932_v53, %v3095_v52  ;;  %v2732_v57 = vpop.f32.mrf.mxu1  ;;  %v4588_v29 = vpop.f32.mrf.mxu0 }
 0x316   :  { %v3303_v1 = vmax.f32 %v3239_v36, 0.0  ;;  %v3171_v23 = vmul.f32 %v6932_v53, %v3100_v4  ;;  %v3098_v46 = vadd.f32 %v2988_v18, %v7609_v60  ;;  %v2999_v20 = vadd.f32 %v4588_v29, %v7174_v39 }
 0x317   :  { %v3237_v25 = vadd.f32 %v6942_v50, %v3166_v7  ;;  %v7248_v2 = vpop.f32.mrf.mxu1  ;;  %v2990_v43 = vpop.f32.mrf.mxu0 }
 0x318   :  { %v4168_v49 = vpack.c.bf16 %v3303_v1, %v3302_v55  ;;  %v3169_v54 = vmul.f32 %v6932_v53, %v3098_v46  ;;  %v3101_v10 = vadd.f32 %v2999_v20, %v7610_v26  ;;  %v3242_v5 = vadd.f32 %v6942_v50, %v3171_v23  ;;  %v7615_v55 = vld [vmem:[#allocation61_spill] sm:$0xff]  ;;  %v7617_v26 = vld [vmem:[#allocation44_spill] sm:$0xff] }
 0x319   :  { %v3301_v16 = vmax.f32 %v3237_v25, 0.0  ;;  %v2991_v58 = vadd.f32 %v2990_v43, %v7148_v14  ;;  %v2735_v19 = vpop.f32.mrf.mxu1  ;;  %v4591_v45 = vpop.f32.mrf.mxu0  ;;  %v7616_v1 = vld [vmem:[#allocation37_spill] sm:$0xff] }
 0x31a   :  { %4232 = vst [vmem:[%s7334_s4 + $0xb8] sm:$0xff] %v4168_v49   ;;  %v3172_v39 = vmul.f32 %v6932_v53, %v3101_v10  ;;  %v3012_v38 = vadd.f32 %v4591_v45, %v2722_v59  ;;  %v3240_v21 = vadd.f32 %v6942_v50, %v3169_v54  ;;  %v3306_v9 = vmax.f32 %v3242_v5, 0.0  ;;  %v7618_v19 = vld [vmem:[#allocation64_spill] sm:$0xff] }
 0x31b   :  { %v4163_v13 = vpack.c.bf16 %v3301_v16, %v3300_v35  ;;  %v3099_v51 = vadd.f32 %v2991_v58, %v7611_v0  ;;  %v2738_v22 = vpop.f32.mrf.mxu1  ;;  %v3003_v12 = vpop.f32.mrf.mxu0 }
 0x31c   :  { %v3243_v27 = vadd.f32 %v6942_v50, %v3172_v39  ;;  %v3104_v14 = vadd.f32 %v3012_v38, %v7612_v33  ;;  %v3004_v61 = vadd.f32 %v3003_v12, %v7186_v44  ;;  %v3304_v44 = vmax.f32 %v3240_v21, 0.0  ;;  %v7619_v33 = vld [vmem:[#allocation62_spill] sm:$0xff] }
 0x31d   :  { %4231 = vst [vmem:[%s7334_s4 + $0xb0] sm:$0xff] %v4163_v13   ;;  %v3170_v59 = vmul.f32 %v6932_v53, %v3099_v51  ;;  %v2740_v63 = vpop.f32.mrf.mxu1  ;;  %v4592_v24 = vpop.f32.mrf.mxu0 }
 0x31e   :  { %v3307_v28 = vmax.f32 %v3243_v27, 0.0  ;;  %v3175_v47 = vmul.f32 %v6932_v53, %v3104_v14  ;;  %v3102_v37 = vadd.f32 %v3004_v61, %v7613_v34  ;;  %v3015_v8 = vadd.f32 %v4592_v24, %v2725_v6 }
 0x31f   :  { %v3241_v48 = vadd.f32 %v6942_v50, %v3170_v59  ;;  %v2741_v15 = vpop.f32.mrf.mxu1  ;;  %v3006_v56 = vpop.f32.mrf.mxu0 }
 0x320   :  { %v4178_v31 = vpack.c.bf16 %v3307_v28, %v3306_v9  ;;  %v3105_v17 = vadd.f32 %v3015_v8, %v7614_v40  ;;  %v3246_v42 = vadd.f32 %v6942_v50, %v3175_v47  ;;  %v3173_v52 = vmul.f32 %v6932_v53, %v3102_v37 }
 0x321   :  { %v3305_v32 = vmax.f32 %v3241_v48, 0.0  ;;  %v3007_v11 = vadd.f32 %v3006_v56, %v7200_v62  ;;  %v2743_v36 = vpop.f32.mrf.mxu1  ;;  %v4595_v41 = vpop.f32.mrf.mxu0  ;;  %v7620_v48 = vld [vmem:[#allocation54_spill] sm:$0xff]  ;;  %v7621_v56 = vld [vmem:[#allocation65_spill] sm:$0xff] }
 0x322   :  { %4234 = vst [vmem:[%s7334_s4 + $0xc8] sm:$0xff] %v4178_v31   ;;  %v3176_v6 = vmul.f32 %v6932_v53, %v3105_v17  ;;  %v3028_v4 = vadd.f32 %v4595_v41, %v2738_v22  ;;  %v3310_v60 = vmax.f32 %v3246_v42, 0.0  ;;  %v3244_v46 = vadd.f32 %v6942_v50, %v3173_v52 }
 0x323   :  { %v4173_v18 = vpack.c.bf16 %v3305_v32, %v3304_v44  ;;  %v3103_v3 = vadd.f32 %v3007_v11, %v7615_v55  ;;  %v2746_v7 = vpop.f32.mrf.mxu1  ;;  %v3019_v57 = vpop.f32.mrf.mxu0 }
 0x324   :  { %v3247_v29 = vadd.f32 %v6942_v50, %v3176_v6  ;;  %v3108_v23 = vadd.f32 %v3028_v4, %v7616_v1  ;;  %v3020_v62 = vadd.f32 %v3019_v57, %v7234_v30  ;;  %v3308_v39 = vmax.f32 %v3244_v46, 0.0 }
 0x325   :  { %4233 = vst [vmem:[%s7334_s4 + $0xc0] sm:$0xff] %v4173_v18   ;;  %v3174_v20 = vmul.f32 %v6932_v53, %v3103_v3  ;;  %v2748_v25 = vpop.f32.mrf.mxu1  ;;  %v4596_v43 = vpop.f32.mrf.mxu0  ;;  %v7622_v18 = vld [vmem:[#allocation48_spill] sm:$0xff] }
 0x326   :  { %v3311_v49 = vmax.f32 %v3247_v29, 0.0  ;;  %v3179_v54 = vmul.f32 %v6932_v53, %v3108_v23  ;;  %v3106_v10 = vadd.f32 %v3020_v62, %v7617_v26  ;;  %v3031_v35 = vadd.f32 %v4596_v43, %v2741_v15 }
 0x327   :  { %v3245_v16 = vadd.f32 %v6942_v50, %v3174_v20  ;;  %v2749_v30 = vpop.f32.mrf.mxu1  ;;  %v3022_v5 = vpop.f32.mrf.mxu0 }
 0x328   :  { %v4188_v58 = vpack.c.bf16 %v3311_v49, %v3310_v60  ;;  %v3109_v45 = vadd.f32 %v3031_v35, %v7618_v19  ;;  %v3177_v13 = vmul.f32 %v6932_v53, %v3106_v10  ;;  %v3023_v0 = vadd.f32 %v3022_v5, %v7248_v2 }
 0x329   :  { %v3309_v38 = vmax.f32 %v3245_v16, 0.0  ;;  %v2751_v51 = vpop.f32.mrf.mxu1  ;;  %v4599_v22 = vpop.f32.mrf.mxu0  ;;  %v3250_v12 = vadd.f32 %v6942_v50, %v3179_v54 }
 0x32a   :  { %4236 = vst [vmem:[%s7334_s4 + $0xd8] sm:$0xff] %v4188_v58   ;;  %v3180_v21 = vmul.f32 %v6932_v53, %v3109_v45  ;;  %v3107_v14 = vadd.f32 %v3023_v0, %v7619_v33  ;;  %v3248_v2 = vadd.f32 %v6942_v50, %v3177_v13 }
 0x32b   :  { %v4183_v27 = vpack.c.bf16 %v3309_v38, %v3308_v39  ;;  %v2754_v61 = vpop.f32.mrf.mxu1  ;;  %v3035_v9 = vpop.f32.mrf.mxu0  ;;  %v3314_v37 = vmax.f32 %v3250_v12, 0.0 }
 0x32c   :  { %v3251_v59 = vadd.f32 %v6942_v50, %v3180_v21  ;;  %v3044_v63 = vadd.f32 %v4599_v22, %v2754_v61  ;;  %v3036_v24 = vadd.f32 %v3035_v9, %v2746_v7  ;;  %v3178_v28 = vmul.f32 %v6932_v53, %v3107_v14  ;;  %v7623_v7 = vld [vmem:[#allocation63_spill] sm:$0xff] }
 0x32d   :  { %4235 = vst [vmem:[%s7334_s4 + $0xd0] sm:$0xff] %v4183_v27   ;;  %v2756_v47 = vpop.f32.mrf.mxu1  ;;  %v4600_v34 = vpop.f32.mrf.mxu0  ;;  %v3312_v11 = vmax.f32 %v3248_v2, 0.0 }
 0x32e   :  { %v3315_v8 = vmax.f32 %v3251_v59, 0.0  ;;  %v3112_v15 = vadd.f32 %v3044_v63, %v7620_v48  ;;  %v3110_v44 = vadd.f32 %v3036_v24, %v7621_v56  ;;  %v3249_v31 = vadd.f32 %v6942_v50, %v3178_v28 }
 0x32f   :  { %v2757_v40 = vpop.f32.mrf.mxu1  ;;  %v3038_v17 = vpop.f32.mrf.mxu0 }
 0x330   :  { %v4198_v32 = vpack.c.bf16 %v3315_v8, %v3314_v37  ;;  %v3183_v42 = vmul.f32 %v6932_v53, %v3112_v15  ;;  %v3047_v52 = vadd.f32 %v4600_v34, %v2757_v40  ;;  %v3313_v36 = vmax.f32 %v3249_v31, 0.0 }
 0x331   :  { %v3181_v41 = vmul.f32 %v6932_v53, %v3110_v44  ;;  %v3039_v6 = vadd.f32 %v3038_v17, %v2749_v30  ;;  %v2759_v4 = vpop.f32.mrf.mxu1 }
 0x332   :  { %4238 = vst [vmem:[%s7334_s4 + $0xe8] sm:$0xff] %v4198_v32   ;;  %v3113_v55 = vadd.f32 %v3047_v52, %v7622_v18  ;;  %v4193_v3 = vpack.c.bf16 %v3313_v36, %v3312_v11  ;;  %v3254_v29 = vadd.f32 %v6942_v50, %v3183_v42 }
 0x333   :  { %v3111_v57 = vadd.f32 %v3039_v6, %v7623_v7  ;;  %v3252_v23 = vadd.f32 %v6942_v50, %v3181_v41 }
 0x334   :  { %v3184_v1 = vmul.f32 %v6932_v53, %v3113_v55  ;;  %4237 = vst [vmem:[%s7334_s4 + $0xe0] sm:$0xff] %v4193_v3   ;;  %v3318_v20 = vmax.f32 %v3254_v29, 0.0 }
 0x335   :  { %v3182_v62 = vmul.f32 %v6932_v53, %v3111_v57  ;;  %v3316_v43 = vmax.f32 %v3252_v23, 0.0 }
 0x336   :  { %v3255_v60 = vadd.f32 %v6942_v50, %v3184_v1 }
 0x337   :  { %v3253_v46 = vadd.f32 %v6942_v50, %v3182_v62 }
 0x338   :  { %v3319_v25 = vmax.f32 %v3255_v60, 0.0 }
 0x339   :  { %v3317_v49 = vmax.f32 %v3253_v46, 0.0 }
 0x33a   :  { %v4208_v54 = vpack.c.bf16 %v3319_v25, %v3318_v20 }
 0x33b   :  { %v4203_v26 = vpack.c.bf16 %v3317_v49, %v3316_v43 }
 0x33c   :  { %4240 = vst [vmem:[%s7334_s4 + $0xf8] sm:$0xff] %v4208_v54  }
 0x33d   :  { %4239 = vst [vmem:[%s7334_s4 + $0xf0] sm:$0xff] %v4203_v26  }

// kernel: inception_through.8
= control target key start
LH: loop header
LB: loop body
LE: loop exit
PB: predicated region body
PF: predicated region fallthrough
CT: control target
= control target key end

     0   :  { %s3017_s1 = inlined_call_operand.vmem [shape: bf16[3,384,128], index: 1, kind: input, shape index: {}]   ;;  %s3018_s0 = inlined_call_operand.vmem [shape: bf16[1,17,16,384], index: 0, kind: input, shape index: {}]   ;;  %s3019_s2 = inlined_call_operand.vmem [shape: f32[1,128], index: 2, kind: input, shape index: {}]   ;;  %s3020_s3 = inlined_call_operand.vmem [shape: f32[1,128], index: 3, kind: input, shape index: {}]   ;;  %s3021_s4 = inlined_call_operand.vmem [shape: f32[8,16,128], index: 4, kind: output, shape index: {}]  }
   0x1   :  { %v2173_v0 = vld [vmem:[%s3017_s1 + $0x138] sm:$0xff]   ;;  %v2176_v3 = vld [vmem:[%s3017_s1 + $0x130] sm:$0xff]   ;;  %v2179_v6 = vld [vmem:[%s3017_s1 + $0x128] sm:$0xff]  }
   0x2   :  { %v2174_v1 = vld [vmem:[%s3017_s1 + $0x178] sm:$0xff]   ;;  %1837 = vmatprep.subr.bf16.mxu0 %v2173_v0  ;;  %v2177_v4 = vld [vmem:[%s3017_s1 + $0x170] sm:$0xff]   ;;  %v2180_v7 = vld [vmem:[%s3017_s1 + $0x168] sm:$0xff]  }
   0x3   :  { %v2175_v2 = vld [vmem:[%s3017_s1 + $0xf8] sm:$0xff]   ;;  %2077 = vmatprep.subr.bf16.mxu1 %v2174_v1  ;;  %v2178_v5 = vld [vmem:[%s3017_s1 + $0xf0] sm:$0xff]   ;;  %v2181_v8 = vld [vmem:[%s3017_s1 + $0xe8] sm:$0xff]  }
   0x4   :  { %1838 = vmatpush3.bf16.msra.mxu0 %v2175_v2  ;;  %2078 = vmatpush3.bf16.msra.mxu1 %v2174_v1  ;;  %v2182_v9 = vld [vmem:[%s3017_s1 + $0x120] sm:$0xff]   ;;  %v2185_v12 = vld [vmem:[%s3017_s1 + $0x118] sm:$0xff]   ;;  %v2188_v15 = vld [vmem:[%s3017_s1 + $0x110] sm:$0xff]  }
   0x5   :  { %1839 = vmatprep.subr.bf16.mxu0 %v2176_v3  ;;  %2079 = vmatprep.subr.bf16.mxu1 %v2177_v4  ;;  %v2183_v10 = vld [vmem:[%s3017_s1 + $0x160] sm:$0xff]   ;;  %v2186_v13 = vld [vmem:[%s3017_s1 + $0x158] sm:$0xff]   ;;  %v2189_v16 = vld [vmem:[%s3017_s1 + $0x150] sm:$0xff]  }
   0x6   :  { %v2184_v11 = vld [vmem:[%s3017_s1 + $0xe0] sm:$0xff]   ;;  %v2187_v14 = vld [vmem:[%s3017_s1 + $0xd8] sm:$0xff]   ;;  %v2190_v17 = vld [vmem:[%s3017_s1 + $0xd0] sm:$0xff]  }
   0x7   :  { %v2191_v18 = vld [vmem:[%s3017_s1 + $0x108] sm:$0xff]   ;;  %v2194_v21 = vld [vmem:[%s3017_s1 + $0x100] sm:$0xff]   ;;  %v2202_v26 = vld [vmem:[%s3017_s1 + $0x78] sm:$0xff]  }
   0x8   :  { %1840 = vmatpush3.bf16.msra.mxu0 %v2178_v5  ;;  %2080 = vmatpush3.bf16.msra.mxu1 %v2177_v4  ;;  %v2192_v19 = vld [vmem:[%s3017_s1 + $0x148] sm:$0xff]   ;;  %v2195_v22 = vld [vmem:[%s3017_s1 + $0x140] sm:$0xff]   ;;  %v2203_v28 = vld [vmem:[%s3017_s1 + $0xb8] sm:$0xff]  }
   0x9   :  { %1841 = vmatprep.subr.bf16.mxu0 %v2179_v6  ;;  %2081 = vmatprep.subr.bf16.mxu1 %v2180_v7  ;;  %v2193_v20 = vld [vmem:[%s3017_s1 + $0xc8] sm:$0xff]   ;;  %v2196_v25 = vld [vmem:[%s3017_s1 + $0xc0] sm:$0xff]   ;;  %v2204_v30 = vld [vmem:[%s3017_s1 + $0x38] sm:$0xff]  }
   0xa   :  { %v2199_v23 = vld [vmem:[%s3018_s0 + $0xdc] ss:$12 sps:$4 sm:$0xff]   ;;  %v2200_v24 = vld [vmem:[%s3018_s0 + $0xe0] ss:$12 sps:$4 sm:$0xff]   ;;  %v2197_v27 = vld [vmem:[%s3018_s0 + $0xd8] ss:$12 sps:$4 sm:$0xff]  }
   0xb   :  { %487 = vmatprep.mubr.bf16.mxu0 %v2199_v23  ;;  %2093 = vmatprep.mubr.bf16.mxu1 %v2200_v24  ;;  %v2201_v29 = vld [vmem:[%s3018_s0 + $0xf8] ss:$12 sps:$4 sm:$0xff]   ;;  %v2205_v31 = vld [vmem:[%s3017_s1 + $0x70] sm:$0xff]   ;;  %v2212_v35 = vld [vmem:[%s3017_s1 + $0x68] sm:$0xff]  }
   0xc   :  { %1842 = vmatpush3.bf16.msra.mxu0 %v2181_v8  ;;  %2082 = vmatpush3.bf16.msra.mxu1 %v2180_v7  ;;  %v2207_v32 = vld [vmem:[%s3018_s0 + $0xf4] ss:$12 sps:$4 sm:$0xff]   ;;  %v2209_v33 = vld [vmem:[%s3018_s0 + $0x110] ss:$12 sps:$4 sm:$0xff]   ;;  %v2214_v39 = vld [vmem:[%s3017_s1 + $0x28] sm:$0xff]  }
   0xd   :  { %1843 = vmatprep.subr.bf16.mxu0 %v2182_v9  ;;  %2083 = vmatprep.subr.bf16.mxu1 %v2183_v10  ;;  %v2206_v34 = vld [vmem:[%s3017_s1 + $0x30] sm:$0xff]   ;;  %v2215_v40 = vld [vmem:[%s3017_s1 + $0x60] sm:$0xff]   ;;  %v2217_v41 = vld [vmem:[%s3018_s0 + $0x10c] ss:$12 sps:$4 sm:$0xff]  }
   0xe   :  { %v2210_v36 = vld [vmem:[%s3018_s0 + $0xf0] ss:$12 sps:$4 sm:$0xff]   ;;  %v2211_v38 = vld [vmem:[%s3018_s0 + $0x128] ss:$12 sps:$4 sm:$0xff]   ;;  %v2219_v42 = vld [vmem:[%s3018_s0 + $0x140] ss:$12 sps:$4 sm:$0xff]  }
   0xf   :  { %v2213_v37 = vld [vmem:[%s3017_s1 + $0xb0] sm:$0xff]   ;;  %v2216_v43 = vld [vmem:[%s3017_s1 + $0x20] sm:$0xff]   ;;  %v2222_v44 = vld [vmem:[%s3017_s1 + $0x58] sm:$0xff]  }
  0x10   :  { %1844 = vmatpush3.bf16.msra.mxu0 %v2184_v11  ;;  %2084 = vmatpush3.bf16.msra.mxu1 %v2183_v10  ;;  %v2220_v45 = vld [vmem:[%s3018_s0 + $0x108] ss:$12 sps:$4 sm:$0xff]   ;;  %v2221_v47 = vld [vmem:[%s3018_s0 + $0x158] ss:$12 sps:$4 sm:$0xff]   ;;  %v2229_v51 = vld [vmem:[%s3018_s0 + $0x170] ss:$12 sps:$4 sm:$0xff]  }
  0x11   :  { %1845 = vmatprep.subr.bf16.mxu0 %v2185_v12  ;;  %2085 = vmatprep.subr.bf16.mxu1 %v2186_v13  ;;  %v2223_v46 = vld [vmem:[%s3017_s1 + $0xa8] sm:$0xff]   ;;  %v2224_v48 = vld [vmem:[%s3017_s1 + $0x18] sm:$0xff]   ;;  %v2225_v49 = vld [vmem:[%s3017_s1 + $0x50] sm:$0xff]  }
  0x12   :  { %v2227_v50 = vld [vmem:[%s3018_s0 + $0x124] ss:$12 sps:$4 sm:$0xff]   ;;  %v2230_v53 = vld [vmem:[%s3018_s0 + $0x120] ss:$12 sps:$4 sm:$0xff]   ;;  %v2231_v56 = vld [vmem:[%s3018_s0 + $0x188] ss:$12 sps:$4 sm:$0xff]  }
  0x13   :  { %v2226_v52 = vld [vmem:[%s3017_s1 + $0x10] sm:$0xff]   ;;  %v2232_v54 = vld [vmem:[%s3017_s1 + $0x48] sm:$0xff]   ;;  %v2233_v55 = vld [vmem:[%s3017_s1 + $0xa0] sm:$0xff]  }
  0x14   :  { %1846 = vmatpush3.bf16.msra.mxu0 %v2187_v14  ;;  %2086 = vmatpush3.bf16.msra.mxu1 %v2186_v13  ;;  %v2234_v57 = vld [vmem:[%s3017_s1 + $0x8] sm:$0xff]   ;;  %v2235_v58 = vld [vmem:[%s3017_s1 + $0x40] sm:$0xff]   ;;  %v2243_v62 = vld [vmem:[%s3017_s1 + $0x98] sm:$0xff]  }
  0x15   :  { %1847 = vmatprep.subr.bf16.mxu0 %v2188_v15  ;;  %2087 = vmatprep.subr.bf16.mxu1 %v2189_v16  ;;  %v2237_v59 = vld [vmem:[%s3018_s0 + $0x13c] ss:$12 sps:$4 sm:$0xff]   ;;  %v2236_v60 = vld [vmem:[%s3017_s1] sm:$0xff]   ;;  %v2250_v3 = vld [vmem:[%s3017_s1 + $0x90] sm:$0xff]  }
  0x16   :  { %v2241_v61 = vld [vmem:[%s3018_s0 + $0x4] ss:$12 sps:$4 sm:$0xff]   ;;  %v2239_v63 = vld [vmem:[%s3018_s0] ss:$12 sps:$4 sm:$0xff]   ;;  %v2539_v2 = vld [vmem:[%s3018_s0 + $0x1c] ss:$12 sps:$4 sm:$0xff]  }
  0x17   :  { %v2242_v0 = vld [vmem:[%s3018_s0 + $0x138] ss:$12 sps:$4 sm:$0xff]   ;;  %v2244_v1 = vld [vmem:[%s3018_s0 + $0x154] ss:$12 sps:$4 sm:$0xff]   ;;  %v2257_v4 = vld [vmem:[%s3017_s1 + $0x88] sm:$0xff]  }
  0x18   :  { %1848 = vmatpush3.bf16.msra.mxu0 %v2190_v17  ;;  %2088 = vmatpush3.bf16.msra.mxu1 %v2189_v16  ;;  %v2248_v5 = vld [vmem:[%s3018_s0 + $0x150] ss:$12 sps:$4 sm:$0xff]   ;;  %v2554_v6 = vld [vmem:[%s3018_s0 + $0x18] ss:$12 sps:$4 sm:$0xff]   ;;  %v2565_v9 = vld [vmem:[%s3018_s0 + $0x34] ss:$12 sps:$4 sm:$0xff]  }
  0x19   :  { %1849 = vmatprep.subr.bf16.mxu0 %v2191_v18  ;;  %2089 = vmatprep.subr.bf16.mxu1 %v2192_v19  ;;  %v2251_v7 = vld [vmem:[%s3018_s0 + $0x16c] ss:$12 sps:$4 sm:$0xff]   ;;  %v2264_v8 = vld [vmem:[%s3017_s1 + $0x80] sm:$0xff]   ;;  %v2255_v11 = vld [vmem:[%s3018_s0 + $0x168] ss:$12 sps:$4 sm:$0xff]  }
  0x1a   :  { %v2270_v10 = vld [vmem:[%s3017_s1 + $0x1f8] sm:$0xff]   ;;  %v2258_v14 = vld [vmem:[%s3018_s0 + $0x184] ss:$12 sps:$4 sm:$0xff]   ;;  %v2262_v17 = vld [vmem:[%s3018_s0 + $0x180] ss:$12 sps:$4 sm:$0xff]  }
  0x1b   :  { %v2578_v12 = vld [vmem:[%s3018_s0 + $0x30] ss:$12 sps:$4 sm:$0xff]   ;;  %v2589_v15 = vld [vmem:[%s3018_s0 + $0x4c] ss:$12 sps:$4 sm:$0xff]   ;;  %v2602_v18 = vld [vmem:[%s3018_s0 + $0x48] ss:$12 sps:$4 sm:$0xff]  }
  0x1c   :  { %1850 = vmatpush3.bf16.msra.mxu0 %v2193_v20  ;;  %2090 = vmatpush3.bf16.msra.mxu1 %v2192_v19  ;;  %v2272_v13 = vld [vmem:[%s3017_s1 + $0x238] sm:$0xff]   ;;  %v2275_v16 = vld [vmem:[%s3017_s1 + $0x230] sm:$0xff]   ;;  %v2283_v20 = vld [vmem:[%s3017_s1 + $0x228] sm:$0xff]  }
  0x1d   :  { %1851 = vmatprep.subr.bf16.mxu0 %v2194_v21  ;;  %2091 = vmatprep.subr.bf16.mxu1 %v2195_v22  ;;  %v2607_v19 = vld [vmem:[%s3018_s0 + $0x64] ss:$12 sps:$4 sm:$0xff]   ;;  %v2267_v21 = vld [vmem:[%s3018_s0 + $0x8] ss:$12 sps:$4 sm:$0xff]   ;;  %v2623_v23 = vld [vmem:[%s3018_s0 + $0x60] ss:$12 sps:$4 sm:$0xff]  }
  0x1e   :  { %v2628_v24 = vld [vmem:[%s3018_s0 + $0x20] ss:$12 sps:$4 sm:$0xff]  }
  0x20   :  { %1852 = vmatpush3.bf16.msra.mxu0 %v2196_v25  ;;  %2092 = vmatpush3.bf16.msra.mxu1 %v2195_v22  ;;  %v2286_v22 = vld [vmem:[%s3017_s1 + $0x220] sm:$0xff]   ;;  %v2271_v25 = vld [vmem:[%s3017_s1 + $0x1b8] sm:$0xff]  }
  0x21   :  { %1917 = vmatprep.subr.bf16.mxu1 %v2202_v26  ;;  %2109 = vmatprep.subr.bf16.mxu0 %v2203_v28  ;;  %v2273_v26 = vld [vmem:[%s3017_s1 + $0x1f0] sm:$0xff]  }
  0x23   :  { %488 = vmatmul.mubr.bf16.vlgmr.msra.gmra.mxu0 %v2197_v27  ;;  %2094 = vmatmul.mubr.bf16.vlgmr.msra.gmra.mxu1 %v2201_v29  ;;  %v2639_v27 = vld [vmem:[%s3018_s0 + $0x7c] ss:$12 sps:$4 sm:$0xff]   ;;  %v2647_v29 = vld [vmem:[%s3018_s0 + $0x38] ss:$12 sps:$4 sm:$0xff]  }
  0x24   :  { %1918 = vmatpush3.bf16.msra.mxu1 %v2204_v30  ;;  %2110 = vmatpush3.bf16.msra.mxu0 %v2203_v28  ;;  %v2294_v28 = vld [vmem:[%s3017_s1 + $0x218] sm:$0xff]   ;;  %v2297_v30 = vld [vmem:[%s3017_s1 + $0x210] sm:$0xff]  }
  0x25   :  { %1919 = vmatprep.subr.bf16.mxu1 %v2205_v31  ;;  %495 = vmatprep.mubr.bf16.mxu0 %v2207_v32  ;;  %v2274_v31 = vld [vmem:[%s3017_s1 + $0x1b0] sm:$0xff]   ;;  %v2662_v32 = vld [vmem:[%s3018_s0 + $0x78] ss:$12 sps:$4 sm:$0xff]  }
  0x26   :  { %2097 = vmatprep.mubr.bf16.mxu1 %v2209_v33  ;;  %2111 = vmatprep.subr.bf16.mxu0 %v2213_v37  ;;  %v2280_v33 = vld [vmem:[%s3018_s0 + $0x50] ss:$12 sps:$4 sm:$0xff]  }
  0x28   :  { %1920 = vmatpush3.bf16.msra.mxu1 %v2206_v34  ;;  %2112 = vmatpush3.bf16.msra.mxu0 %v2213_v37  ;;  %v2281_v34 = vld [vmem:[%s3017_s1 + $0x1e8] sm:$0xff]   ;;  %v2679_v37 = vld [vmem:[%s3018_s0 + $0x94] ss:$12 sps:$4 sm:$0xff]  }
  0x29   :  { %1921 = vmatprep.subr.bf16.mxu1 %v2212_v35  ;;  %2113 = vmatprep.subr.bf16.mxu0 %v2223_v46  ;;  %v2282_v35 = vld [vmem:[%s3017_s1 + $0x1a8] sm:$0xff]  }
  0x2b   :  { %496 = vmatmul.mubr.bf16.gmra.mxu0 %v2210_v36  ;;  %2098 = vmatmul.mubr.bf16.gmra.mxu1 %v2211_v38  ;;  %v2284_v36 = vld [vmem:[%s3017_s1 + $0x1e0] sm:$0xff]   ;;  %v2289_v38 = vld [vmem:[%s3018_s0 + $0x68] ss:$12 sps:$4 sm:$0xff]  }
  0x2c   :  { %1922 = vmatpush3.bf16.msra.mxu1 %v2214_v39  ;;  %503 = vmatprep.mubr.bf16.mxu0 %v2217_v41  ;;  %v2305_v39 = vld [vmem:[%s3017_s1 + $0x208] sm:$0xff]   ;;  %v2292_v41 = vld [vmem:[%s3017_s1 + $0x1d8] sm:$0xff]  }
  0x2d   :  { %1923 = vmatprep.subr.bf16.mxu1 %v2215_v40  ;;  %2101 = vmatprep.mubr.bf16.mxu1 %v2219_v42  ;;  %v2285_v40 = vld [vmem:[%s3017_s1 + $0x1a0] sm:$0xff]  }
  0x2e   :  { %2114 = vmatpush3.bf16.msra.mxu0 %v2223_v46  ;;  %v2308_v42 = vld [vmem:[%s3017_s1 + $0x200] sm:$0xff]   ;;  %v2298_v46 = vld [vmem:[%s3018_s0 + $0xac] ss:$12 sps:$4 sm:$0xff]  }
  0x2f   :  { %2115 = vmatprep.subr.bf16.mxu0 %v2233_v55 }
  0x30   :  { %1924 = vmatpush3.bf16.msra.mxu1 %v2216_v43  ;;  %v2290_v43 = vld [vmem:[%s3018_s0 + $0x90] ss:$12 sps:$4 sm:$0xff]  }
  0x31   :  { %1925 = vmatprep.subr.bf16.mxu1 %v2222_v44  ;;  %v2291_v44 = vld [vmem:[%s3018_s0 + $0x80] ss:$12 sps:$4 sm:$0xff]  }
  0x32   :  { %2116 = vmatpush3.bf16.msra.mxu0 %v2233_v55  ;;  %v2307_v55 = vld [vmem:[%s3017_s1 + $0x180] sm:$0xff]  }
  0x33   :  { %504 = vmatmul.mubr.bf16.gmra.mxu0 %v2220_v45  ;;  %2102 = vmatmul.mubr.bf16.gmra.mxu1 %v2221_v47  ;;  %v2293_v45 = vld [vmem:[%s3017_s1 + $0x198] sm:$0xff]   ;;  %v2295_v47 = vld [vmem:[%s3017_s1 + $0x1d0] sm:$0xff]  }
  0x34   :  { %1926 = vmatpush3.bf16.msra.mxu1 %v2224_v48  ;;  %511 = vmatprep.mubr.bf16.mxu0 %v2227_v50  ;;  %v2300_v48 = vld [vmem:[%s3018_s0 + $0x98] ss:$12 sps:$4 sm:$0xff]   ;;  %v2303_v50 = vld [vmem:[%s3017_s1 + $0x1c8] sm:$0xff]  }
  0x35   :  { %1927 = vmatprep.subr.bf16.mxu1 %v2225_v49  ;;  %2105 = vmatprep.mubr.bf16.mxu1 %v2229_v51  ;;  %v2296_v49 = vld [vmem:[%s3017_s1 + $0x190] sm:$0xff]  }
  0x36   :  { %2117 = vmatprep.subr.bf16.mxu0 %v2243_v62  ;;  %v2301_v51 = vld [vmem:[%s3018_s0 + $0xa8] ss:$12 sps:$4 sm:$0xff]  }
  0x37   :  { %2118 = vmatpush3.bf16.msra.mxu0 %v2243_v62 }
  0x38   :  { %1928 = vmatpush3.bf16.msra.mxu1 %v2226_v52  ;;  %2119 = vmatprep.subr.bf16.mxu0 %v2250_v3  ;;  %v2302_v52 = vld [vmem:[%s3018_s0 + $0xb0] ss:$12 sps:$4 sm:$0xff]  }
  0x39   :  { %1929 = vmatprep.subr.bf16.mxu1 %v2232_v54  ;;  %v2306_v54 = vld [vmem:[%s3017_s1 + $0x1c0] sm:$0xff]  }
  0x3b   :  { %512 = vmatmul.mubr.bf16.gmra.mxu0 %v2230_v53  ;;  %2106 = vmatmul.mubr.bf16.gmra.mxu1 %v2231_v56  ;;  %v2304_v53 = vld [vmem:[%s3017_s1 + $0x188] sm:$0xff]  }
  0x3c   :  { %1930 = vmatpush3.bf16.msra.mxu1 %v2234_v57  ;;  %519 = vmatprep.mubr.bf16.mxu0 %v2237_v59  ;;  %v2309_v56 = vld [vmem:[%s3018_s0 + $0xc8] ss:$12 sps:$4 sm:$0xff]   ;;  %v2310_v57 = vld [vmem:[%s3018_s0 + $0xc4] ss:$12 sps:$4 sm:$0xff]  }
  0x3d   :  { %1931 = vmatprep.subr.bf16.mxu1 %v2235_v58  ;;  %953 = vmatprep.mubr.bf16.mxu1 %v2241_v61  ;;  %v2312_v58 = vld [vmem:[%s3018_s0 + $0xc0] ss:$12 sps:$4 sm:$0xff]  }
  0x3e   :  { %2120 = vmatpush3.bf16.msra.mxu0 %v2250_v3 }
  0x3f   :  { %2121 = vmatprep.subr.bf16.mxu0 %v2257_v4 }
  0x40   :  { %1932 = vmatpush3.bf16.msra.mxu1 %v2236_v60 }
  0x41   :  { %2141 = vmatprep.subr.bf16.mxu1 %v2272_v13 }
  0x42   :  { %2122 = vmatpush3.bf16.msra.mxu0 %v2257_v4 }
  0x43   :  { %520 = vmatmul.mubr.bf16.gmra.mxu0 %v2242_v0  ;;  %954 = vmatmul.mubr.bf16.vlgmr.msra.gmra.mxu1 %v2239_v63 }
  0x44   :  { %527 = vmatprep.mubr.bf16.mxu0 %v2244_v1  ;;  %961 = vmatprep.mubr.bf16.mxu1 %v2539_v2 }
  0x45   :  { %2123 = vmatprep.subr.bf16.mxu0 %v2264_v8  ;;  %2142 = vmatpush3.bf16.msra.mxu1 %v2272_v13 }
  0x46   :  { %2124 = vmatpush3.bf16.msra.mxu0 %v2264_v8  ;;  %2143 = vmatprep.subr.bf16.mxu1 %v2275_v16 }
  0x47   :  { %1997 = vmatprep.subr.bf16.mxu0 %v2270_v10 }
  0x49   :  { %2144 = vmatpush3.bf16.msra.mxu1 %v2275_v16 }
  0x4a   :  { %2145 = vmatprep.subr.bf16.mxu1 %v2283_v20 }
  0x4b   :  { %528 = vmatmul.mubr.bf16.gmra.mxu0 %v2248_v5  ;;  %962 = vmatmul.mubr.bf16.gmra.mxu1 %v2554_v6 }
  0x4c   :  { %535 = vmatprep.mubr.bf16.mxu0 %v2251_v7  ;;  %969 = vmatprep.mubr.bf16.mxu1 %v2565_v9 }
  0x4d   :  { %2146 = vmatpush3.bf16.msra.mxu1 %v2283_v20 }
  0x4e   :  { %2147 = vmatprep.subr.bf16.mxu1 %v2286_v22 }
  0x51   :  { %2148 = vmatpush3.bf16.msra.mxu1 %v2286_v22 }
  0x52   :  { %2149 = vmatprep.subr.bf16.mxu1 %v2294_v28 }
  0x53   :  { %536 = vmatmul.mubr.bf16.gmra.mxu0 %v2255_v11  ;;  %970 = vmatmul.mubr.bf16.gmra.mxu1 %v2578_v12 }
  0x54   :  { %543 = vmatprep.mubr.bf16.mxu0 %v2258_v14  ;;  %977 = vmatprep.mubr.bf16.mxu1 %v2589_v15 }
  0x55   :  { %2150 = vmatpush3.bf16.msra.mxu1 %v2294_v28 }
  0x56   :  { %2151 = vmatprep.subr.bf16.mxu1 %v2297_v30 }
  0x59   :  { %2152 = vmatpush3.bf16.msra.mxu1 %v2297_v30 }
  0x5a   :  { %2153 = vmatprep.subr.bf16.mxu1 %v2305_v39 }
  0x5b   :  { %544 = vmatmul.mubr.bf16.gmra.mxu0 %v2262_v17  ;;  %978 = vmatmul.mubr.bf16.gmra.mxu1 %v2602_v18 }
  0x5c   :  { %985 = vmatprep.mubr.bf16.mxu1 %v2607_v19  ;;  %2125 = vmatprep.mubr.bf16.mxu0 %v2267_v21 }
  0x5d   :  { %2154 = vmatpush3.bf16.msra.mxu1 %v2305_v39 }
  0x5e   :  { %2155 = vmatprep.subr.bf16.mxu1 %v2308_v42 }
  0x61   :  { %2156 = vmatpush3.bf16.msra.mxu1 %v2308_v42 }
  0x63   :  { %986 = vmatmul.mubr.bf16.gmra.mxu1 %v2623_v23  ;;  %2126 = vmatmul.mubr.bf16.vlgmr.msra.gmra.mxu0 %v2628_v24 }
  0x64   :  { %1998 = vmatpush3.bf16.msra.mxu0 %v2271_v25  ;;  %993 = vmatprep.mubr.bf16.mxu1 %v2639_v27 }
  0x65   :  { %1999 = vmatprep.subr.bf16.mxu0 %v2273_v26  ;;  %2129 = vmatprep.mubr.bf16.mxu0 %v2647_v29 }
  0x68   :  { %2000 = vmatpush3.bf16.msra.mxu0 %v2274_v31 }
  0x69   :  { %2001 = vmatprep.subr.bf16.mxu0 %v2281_v34 }
  0x6b   :  { %994 = vmatmul.mubr.bf16.gmra.mxu1 %v2662_v32  ;;  %2130 = vmatmul.mubr.bf16.gmra.mxu0 %v2280_v33 }
  0x6c   :  { %2002 = vmatpush3.bf16.msra.mxu0 %v2282_v35  ;;  %1001 = vmatprep.mubr.bf16.mxu1 %v2679_v37 }
  0x6d   :  { %2003 = vmatprep.subr.bf16.mxu0 %v2284_v36  ;;  %2133 = vmatprep.mubr.bf16.mxu0 %v2289_v38 }
  0x70   :  { %2004 = vmatpush3.bf16.msra.mxu0 %v2285_v40 }
  0x71   :  { %2005 = vmatprep.subr.bf16.mxu0 %v2292_v41 }
  0x73   :  { %1002 = vmatmul.mubr.bf16.gmra.mxu1 %v2290_v43  ;;  %2134 = vmatmul.mubr.bf16.gmra.mxu0 %v2291_v44 }
  0x74   :  { %2006 = vmatpush3.bf16.msra.mxu0 %v2293_v45  ;;  %1009 = vmatprep.mubr.bf16.mxu1 %v2298_v46 }
  0x75   :  { %2007 = vmatprep.subr.bf16.mxu0 %v2295_v47  ;;  %2137 = vmatprep.mubr.bf16.mxu0 %v2300_v48 }
  0x78   :  { %2008 = vmatpush3.bf16.msra.mxu0 %v2296_v49 }
  0x79   :  { %2009 = vmatprep.subr.bf16.mxu0 %v2303_v50 }
  0x7b   :  { %1010 = vmatmul.mubr.bf16.gmra.mxu1 %v2301_v51  ;;  %2138 = vmatmul.mubr.bf16.gmra.mxu0 %v2302_v52 }
  0x7c   :  { %2010 = vmatpush3.bf16.msra.mxu0 %v2304_v53  ;;  %1356 = vmatprep.mubr.bf16.mxu0 %v2539_v2 }
  0x7d   :  { %2011 = vmatprep.subr.bf16.mxu0 %v2306_v54  ;;  %2157 = vmatprep.mubr.bf16.mxu1 %v2628_v24 }
  0x80   :  { %2012 = vmatpush3.bf16.msra.mxu0 %v2307_v55 }
  0x83   :  { %1357 = vmatmul.mubr.bf16.vlgmr.msra.gmra.mxu0 %v2554_v6  ;;  %2158 = vmatmul.mubr.bf16.vlgmr.msra.gmra.mxu1 %v2647_v29 }
  0x84   :  { %1364 = vmatprep.mubr.bf16.mxu0 %v2565_v9  ;;  %2161 = vmatprep.mubr.bf16.mxu1 %v2280_v33 }
  0x8b   :  { %1365 = vmatmul.mubr.bf16.gmra.mxu0 %v2578_v12  ;;  %2162 = vmatmul.mubr.bf16.gmra.mxu1 %v2289_v38 }
  0x8c   :  { %1372 = vmatprep.mubr.bf16.mxu0 %v2589_v15  ;;  %2165 = vmatprep.mubr.bf16.mxu1 %v2291_v44 }
  0x93   :  { %1373 = vmatmul.mubr.bf16.gmra.mxu0 %v2602_v18  ;;  %2166 = vmatmul.mubr.bf16.gmra.mxu1 %v2300_v48 }
  0x94   :  { %1380 = vmatprep.mubr.bf16.mxu0 %v2607_v19  ;;  %2169 = vmatprep.mubr.bf16.mxu1 %v2302_v52 }
  0x9b   :  { %1381 = vmatmul.mubr.bf16.gmra.mxu0 %v2623_v23  ;;  %2170 = vmatmul.mubr.bf16.gmra.mxu1 %v2309_v56 }
  0x9c   :  { %1388 = vmatprep.mubr.bf16.mxu0 %v2639_v27 }
  0xa3   :  { %1389 = vmatmul.mubr.bf16.gmra.mxu0 %v2662_v32 }
  0xa4   :  { %1396 = vmatprep.mubr.bf16.mxu0 %v2679_v37 }
  0xab   :  { %1397 = vmatmul.mubr.bf16.gmra.mxu0 %v2290_v43 }
  0xac   :  { %1404 = vmatprep.mubr.bf16.mxu0 %v2298_v46 }
  0xb3   :  { %1405 = vmatmul.mubr.bf16.gmra.mxu0 %v2301_v51 }
  0xb4   :  { %1412 = vmatprep.mubr.bf16.mxu0 %v2310_v57 }
  0xbb   :  { %1413 = vmatmul.mubr.bf16.gmra.mxu0 %v2312_v58 }
  0xe3   :  { %v1853_v59 = vpop.f32.mrf.mxu0  ;;  %v2095_v60 = vpop.f32.mrf.mxu1 }
  0xe5   :  { %v1854_v61 = vpop.f32.mrf.mxu0  ;;  %v586_v62 = vpop.f32.mrf.mxu1 }
  0xe6   :  { %v1855_v63 = vadd.f32 %v1854_v61, %v1853_v59 }
  0xe7   :  { %v1856_v0 = vpop.f32.mrf.mxu0  ;;  %v2096_v1 = vpop.f32.mrf.mxu1 }
  0xe8   :  { %v2759_v2 = vadd.f32 %v1855_v63, %v586_v62 }
  0xe9   :  { %v1857_v3 = vpop.f32.mrf.mxu0  ;;  %v589_v4 = vpop.f32.mrf.mxu1 }
  0xea   :  { %v1858_v5 = vadd.f32 %v1857_v3, %v1856_v0 }
  0xeb   :  { %v1859_v6 = vpop.f32.mrf.mxu0  ;;  %v2099_v7 = vpop.f32.mrf.mxu1 }
  0xec   :  { %v2761_v8 = vadd.f32 %v1858_v5, %v589_v4 }
  0xed   :  { %v1860_v9 = vpop.f32.mrf.mxu0  ;;  %v602_v10 = vpop.f32.mrf.mxu1 }
  0xee   :  { %v1861_v11 = vadd.f32 %v1860_v9, %v1859_v6 }
  0xef   :  { %v1862_v12 = vpop.f32.mrf.mxu0  ;;  %v2100_v13 = vpop.f32.mrf.mxu1 }
  0xf0   :  { %v2763_v14 = vadd.f32 %v2095_v60, %v1861_v11 }
  0xf1   :  { %v1863_v15 = vpop.f32.mrf.mxu0  ;;  %v605_v16 = vpop.f32.mrf.mxu1 }
  0xf2   :  { %v1864_v17 = vadd.f32 %v1863_v15, %v1862_v12 }
  0xf3   :  { %v1865_v18 = vpop.f32.mrf.mxu0  ;;  %v2103_v19 = vpop.f32.mrf.mxu1 }
  0xf4   :  { %v2765_v20 = vadd.f32 %v2096_v1, %v1864_v17 }
  0xf5   :  { %v1866_v21 = vpop.f32.mrf.mxu0  ;;  %v618_v22 = vpop.f32.mrf.mxu1 }
  0xf6   :  { %v1867_v23 = vadd.f32 %v1866_v21, %v1865_v18 }
  0xf7   :  { %v1868_v24 = vpop.f32.mrf.mxu0  ;;  %v2104_v25 = vpop.f32.mrf.mxu1 }
  0xf8   :  { %v2767_v26 = vadd.f32 %v1867_v23, %v602_v10 }
  0xf9   :  { %v1869_v27 = vpop.f32.mrf.mxu0  ;;  %v621_v28 = vpop.f32.mrf.mxu1 }
  0xfa   :  { %v1870_v29 = vadd.f32 %v1869_v27, %v1868_v24 }
  0xfb   :  { %v1871_v30 = vpop.f32.mrf.mxu0  ;;  %v2107_v31 = vpop.f32.mrf.mxu1 }
  0xfc   :  { %v2769_v32 = vadd.f32 %v1870_v29, %v605_v16 }
  0xfd   :  { %v1872_v33 = vpop.f32.mrf.mxu0  ;;  %v634_v34 = vpop.f32.mrf.mxu1 }
  0xfe   :  { %v1873_v35 = vadd.f32 %v1872_v33, %v1871_v30 }
  0xff   :  { %v1874_v36 = vpop.f32.mrf.mxu0  ;;  %v2108_v37 = vpop.f32.mrf.mxu1 }
 0x100   :  { %v2771_v38 = vadd.f32 %v2099_v7, %v1873_v35 }
 0x101   :  { %v1875_v39 = vpop.f32.mrf.mxu0  ;;  %v637_v40 = vpop.f32.mrf.mxu1 }
 0x102   :  { %v1876_v41 = vadd.f32 %v1875_v39, %v1874_v36 }
 0x103   :  { %v1877_v42 = vpop.f32.mrf.mxu0  ;;  %v2773_v43 = vpop.f32.mrf.mxu1 }
 0x104   :  { %v2775_v44 = vadd.f32 %v2100_v13, %v1876_v41 }
 0x105   :  { %v1878_v45 = vpop.f32.mrf.mxu0  ;;  %v2777_v46 = vpop.f32.mrf.mxu1 }
 0x106   :  { %v1879_v47 = vadd.f32 %v1878_v45, %v1877_v42 }
 0x107   :  { %v1880_v48 = vpop.f32.mrf.mxu0  ;;  %v2779_v49 = vpop.f32.mrf.mxu1 }
 0x108   :  { %v2781_v50 = vadd.f32 %v1879_v47, %v618_v22 }
 0x109   :  { %v1881_v51 = vpop.f32.mrf.mxu0  ;;  %v2783_v52 = vpop.f32.mrf.mxu1 }
 0x10a   :  { %v1882_v53 = vadd.f32 %v1881_v51, %v1880_v48 }
 0x10b   :  { %v1883_v54 = vpop.f32.mrf.mxu0  ;;  %v2785_v55 = vpop.f32.mrf.mxu1 }
 0x10c   :  { %v2787_v56 = vadd.f32 %v1882_v53, %v621_v28 }
 0x10d   :  { %v1884_v57 = vpop.f32.mrf.mxu0  ;;  %v2789_v58 = vpop.f32.mrf.mxu1 }
 0x10e   :  { %v1885_v59 = vadd.f32 %v1884_v57, %v1883_v54 }
 0x10f   :  { %v1886_v60 = vpop.f32.mrf.mxu0  ;;  %v2791_v61 = vpop.f32.mrf.mxu1 }
 0x110   :  { %v2793_v62 = vadd.f32 %v2103_v19, %v1885_v59 }
 0x111   :  { %v1887_v63 = vpop.f32.mrf.mxu0  ;;  %v2795_v0 = vpop.f32.mrf.mxu1 }
 0x112   :  { %v1888_v1 = vadd.f32 %v1887_v63, %v1886_v60 }
 0x113   :  { %v1889_v3 = vpop.f32.mrf.mxu0  ;;  %v2797_v4 = vpop.f32.mrf.mxu1 }
 0x114   :  { %v2799_v5 = vadd.f32 %v2104_v25, %v1888_v1 }
 0x115   :  { %v1890_v6 = vpop.f32.mrf.mxu0  ;;  %v2801_v7 = vpop.f32.mrf.mxu1 }
 0x116   :  { %3022 = vst [vmem:[#allocation2_spill] sm:$0xff] %v2799_v5  ;;  %v1891_v9 = vadd.f32 %v1890_v6, %v1889_v3 }
 0x117   :  { %v1892_v10 = vpop.f32.mrf.mxu0  ;;  %v2803_v11 = vpop.f32.mrf.mxu1 }
 0x118   :  { %v2805_v12 = vadd.f32 %v1891_v9, %v634_v34 }
 0x119   :  { %v1893_v13 = vpop.f32.mrf.mxu0  ;;  %v2807_v15 = vpop.f32.mrf.mxu1 }
 0x11a   :  { %3023 = vst [vmem:[#allocation3_spill] sm:$0xff] %v2805_v12  ;;  %v1894_v16 = vadd.f32 %v1893_v13, %v1892_v10 }
 0x11b   :  { %v1895_v17 = vpop.f32.mrf.mxu0  ;;  %v2809_v18 = vpop.f32.mrf.mxu1 }
 0x11c   :  { %v2811_v19 = vadd.f32 %v1894_v16, %v637_v40 }
 0x11d   :  { %v1896_v21 = vpop.f32.mrf.mxu0  ;;  %v2813_v22 = vpop.f32.mrf.mxu1 }
 0x11e   :  { %3024 = vst [vmem:[#allocation4_spill] sm:$0xff] %v2811_v19  ;;  %v1897_v23 = vadd.f32 %v1896_v21, %v1895_v17 }
 0x11f   :  { %v1898_v24 = vpop.f32.mrf.mxu0  ;;  %v2815_v25 = vpop.f32.mrf.mxu1 }
 0x120   :  { %v643_v27 = vadd.f32 %v2107_v31, %v1897_v23 }
 0x121   :  { %v1899_v28 = vpop.f32.mrf.mxu0  ;;  %v2817_v29 = vpop.f32.mrf.mxu1 }
 0x122   :  { %v1900_v30 = vadd.f32 %v1899_v28, %v1898_v24 }
 0x123   :  { %v2819_v33 = vpop.f32.mrf.mxu1  ;;  %v2821_v34 = vpop.f32.mrf.mxu0 }
 0x124   :  { %v646_v35 = vadd.f32 %v2108_v37, %v1900_v30 }
 0x125   :  { %v2823_v36 = vpop.f32.mrf.mxu1  ;;  %v1052_v39 = vpop.f32.mrf.mxu0 }
 0x127   :  { %v2825_v40 = vpop.f32.mrf.mxu1  ;;  %v2827_v41 = vpop.f32.mrf.mxu0 }
 0x129   :  { %v2829_v42 = vpop.f32.mrf.mxu1  ;;  %v1055_v45 = vpop.f32.mrf.mxu0 }
 0x12b   :  { %v2831_v31 = vpop.f32.mrf.mxu1  ;;  %v2833_v47 = vpop.f32.mrf.mxu0 }
 0x12d   :  { %v2835_v48 = vpop.f32.mrf.mxu1  ;;  %v2837_v51 = vpop.f32.mrf.mxu0 }
 0x12f   :  { %v2839_v53 = vpop.f32.mrf.mxu1  ;;  %v2841_v37 = vpop.f32.mrf.mxu0 }
 0x130   :  { %3025 = vst [vmem:[#allocation5_spill] sm:$0xff] %v2839_v53 }
 0x131   :  { %v2843_v54 = vpop.f32.mrf.mxu1  ;;  %v2845_v57 = vpop.f32.mrf.mxu0 }
 0x132   :  { %3026 = vst [vmem:[#allocation6_spill] sm:$0xff] %v2843_v54 }
 0x133   :  { %v2847_v59 = vpop.f32.mrf.mxu1  ;;  %v2849_v60 = vpop.f32.mrf.mxu0 }
 0x134   :  { %3027 = vst [vmem:[#allocation7_spill] sm:$0xff] %v2847_v59  ;;  %3028 = vst [vmem:[#allocation8_spill] sm:$0xff] %v2849_v60 }
 0x135   :  { %v2851_v63 = vpop.f32.mrf.mxu1  ;;  %v2853_v1 = vpop.f32.mrf.mxu0 }
 0x136   :  { %3029 = vst [vmem:[#allocation9_spill] sm:$0xff] %v2851_v63 }
 0x137   :  { %v2855_v3 = vpop.f32.mrf.mxu1  ;;  %v2857_v6 = vpop.f32.mrf.mxu0 }
 0x138   :  { %3030 = vst [vmem:[#allocation10_spill] sm:$0xff] %v2855_v3  ;;  %3031 = vst [vmem:[#allocation11_spill] sm:$0xff] %v2857_v6  ;;  %v1935_v3 = vadd.f32 %v2777_v46, %v2773_v43  ;;  %v1941_v46 = vadd.f32 %v2789_v58, %v2785_v55 }
 0x139   :  { %v2859_v9 = vpop.f32.mrf.mxu1  ;;  %v2861_v10 = vpop.f32.mrf.mxu0 }
 0x13a   :  { %3032 = vst [vmem:[#allocation12_spill] sm:$0xff] %v2859_v9 }
 0x13b   :  { %v1975_v13 = vpop.f32.mrf.mxu1  ;;  %v2139_v16 = vpop.f32.mrf.mxu0 }
 0x13d   :  { %v1976_v17 = vpop.f32.mrf.mxu1  ;;  %v2863_v21 = vpop.f32.mrf.mxu0 }
 0x13e   :  { %3033 = vst [vmem:[#allocation13_spill] sm:$0xff] %v2863_v21  ;;  %v1977_v23 = vadd.f32 %v1976_v17, %v1975_v13  ;;  %v1938_v13 = vadd.f32 %v2783_v52, %v2779_v49  ;;  %v956_v17 = vadd.f32 %v1935_v3, %v2759_v2 }
 0x13f   :  { %v1978_v24 = vpop.f32.mrf.mxu1  ;;  %v2140_v28 = vpop.f32.mrf.mxu0 }
 0x140   :  { %v1012_v30 = vadd.f32 %v1977_v23, %v643_v27  ;;  %v1053_v53 = vadd.f32 %v1052_v39, %v956_v17  ;;  %v959_v49 = vadd.f32 %v1938_v13, %v2761_v8  ;;  %v1947_v17 = vadd.f32 %v2801_v7, %v2797_v4 }
 0x141   :  { %v1979_v19 = vpop.f32.mrf.mxu1  ;;  %v2865_v12 = vpop.f32.mrf.mxu0 }
 0x142   :  { %3034 = vst [vmem:[#allocation14_spill] sm:$0xff] %v2865_v12  ;;  %v2869_v6 = vadd.f32 %v2139_v16, %v1012_v30  ;;  %v1980_v9 = vadd.f32 %v1979_v19, %v1978_v24  ;;  %v2881_v19 = vld [vmem:[%s3019_s2] ss:$0 sm:$0xff]  ;;  %v1944_v16 = vadd.f32 %v2795_v0, %v2791_v61  ;;  %v972_v4 = vadd.f32 %v1947_v17, %v2767_v26 }
 0x143   :  { %v2013_v5 = vpop.f32.mrf.mxu0  ;;  %v2159_v63 = vpop.f32.mrf.mxu1 }
 0x144   :  { %v1015_v59 = vadd.f32 %v1980_v9, %v646_v35 }
 0x145   :  { %v2014_v60 = vpop.f32.mrf.mxu0  ;;  %v1455_v54 = vpop.f32.mrf.mxu1 }
 0x146   :  { %v2874_v27 = vadd.f32 %v2140_v28, %v1015_v59  ;;  %v2015_v23 = vadd.f32 %v2014_v60, %v2013_v5  ;;  %v2887_v5 = vld [vmem:[%s3020_s3] ss:$0 sm:$0xff]  ;;  %v964_v59 = vadd.f32 %v1941_v46, %v2763_v14 }
 0x147   :  { %v2016_v12 = vpop.f32.mrf.mxu0  ;;  %v2160_v21 = vpop.f32.mrf.mxu1 }
 0x148   :  { %v1456_v43 = vadd.f32 %v2015_v23, %v1455_v54  ;;  %v1056_v54 = vadd.f32 %v1055_v45, %v959_v49  ;;  %v1061_v28 = vadd.f32 %v2821_v34, %v964_v59  ;;  %v1953_v59 = vadd.f32 %v2813_v22, %v2809_v18 }
 0x149   :  { %v2017_v35 = vpop.f32.mrf.mxu0  ;;  %v1458_v9 = vpop.f32.mrf.mxu1 }
 0x14a   :  { %v1518_v2 = vadd.f32 %v1456_v43, %v1053_v53  ;;  %v2018_v52 = vadd.f32 %v2017_v35, %v2016_v12  ;;  %v967_v43 = vadd.f32 %v1944_v16, %v2765_v20  ;;  %v1950_v20 = vadd.f32 %v2807_v15, %v2803_v11 }
 0x14b   :  { %v2019_v39 = vpop.f32.mrf.mxu0  ;;  %v2163_v3 = vpop.f32.mrf.mxu1  ;;  %v980_v18 = vadd.f32 %v1953_v59, %v2771_v38 }
 0x14c   :  { %v1541_v55 = vmul.f32 %v2881_v19, %v1518_v2  ;;  %v1459_v58 = vadd.f32 %v2018_v52, %v1458_v9  ;;  %v1064_v35 = vadd.f32 %v2827_v41, %v967_v43  ;;  %v975_v15 = vadd.f32 %v1950_v20, %v2769_v32 }
 0x14d   :  { %v2020_v60 = vpop.f32.mrf.mxu0  ;;  %v1471_v23 = vpop.f32.mrf.mxu1  ;;  %v1956_v32 = vadd.f32 %v2817_v29, %v2815_v25 }
 0x14e   :  { %v1564_v8 = vadd.f32 %v2887_v5, %v1541_v55  ;;  %v1519_v12 = vadd.f32 %v1459_v58, %v1056_v54  ;;  %v2021_v53 = vadd.f32 %v2020_v60, %v2019_v39  ;;  %v1069_v55 = vadd.f32 %v2837_v51, %v972_v4 }
 0x14f   :  { %v2022_v24 = vpop.f32.mrf.mxu0  ;;  %v2164_v2 = vpop.f32.mrf.mxu1  ;;  %v983_v29 = vadd.f32 %v1956_v32, %v2775_v44  ;;  %v1962_v44 = vadd.f32 %v2829_v42, %v2825_v40 }
 0x150   :  { %v1580_v30 = vmax.f32 %v1564_v8, 0.0  ;;  %v1542_v45 = vmul.f32 %v2881_v19, %v1519_v12  ;;  %v1464_v13 = vadd.f32 %v2159_v63, %v2021_v53  ;;  %v1072_v53 = vadd.f32 %v2845_v57, %v975_v15 }
 0x151   :  { %v2023_v14 = vpop.f32.mrf.mxu0  ;;  %v1474_v11 = vpop.f32.mrf.mxu1  ;;  %v991_v42 = vadd.f32 %v1962_v44, %v2787_v56  ;;  %v3035_v56 = vld [vmem:[#allocation5_spill] sm:$0xff] }
 0x152   :  { %1596 = vst [vmem:[%s3021_s4] sm:$0xff] %v1580_v30  ;;  %v1565_v61 = vadd.f32 %v2887_v5, %v1542_v45  ;;  %v1520_v0 = vadd.f32 %v1464_v13, %v1061_v28  ;;  %v2024_v46 = vadd.f32 %v2023_v14, %v2022_v24 }
 0x153   :  { %v2025_v34 = vpop.f32.mrf.mxu0  ;;  %v2167_v45 = vpop.f32.mrf.mxu1 }
 0x154   :  { %v1581_v9 = vmax.f32 %v1565_v61, 0.0  ;;  %v1543_v63 = vmul.f32 %v2881_v19, %v1520_v0  ;;  %v1467_v49 = vadd.f32 %v2160_v21, %v2024_v46  ;;  %v1959_v0 = vadd.f32 %v2823_v36, %v2819_v33 }
 0x155   :  { %v2026_v7 = vpop.f32.mrf.mxu0  ;;  %v1487_v25 = vpop.f32.mrf.mxu1 }
 0x156   :  { %1597 = vst [vmem:[%s3021_s4 + $0x8] sm:$0xff] %v1581_v9  ;;  %v1566_v52 = vadd.f32 %v2887_v5, %v1543_v63  ;;  %v1521_v39 = vadd.f32 %v1467_v49, %v1064_v35  ;;  %v2027_v54 = vadd.f32 %v2026_v7, %v2025_v34  ;;  %v1080_v63 = vadd.f32 %v2841_v37, %v983_v29  ;;  %v3041_v29 = vld [vmem:[#allocation11_spill] sm:$0xff] }
 0x157   :  { %v2028_v41 = vpop.f32.mrf.mxu0  ;;  %v988_v33 = vadd.f32 %v1959_v0, %v2781_v50  ;;  %v2168_v7 = vpop.f32.mrf.mxu1 }
 0x158   :  { %v1582_v58 = vmax.f32 %v1566_v52, 0.0  ;;  %v1544_v21 = vmul.f32 %v2881_v19, %v1521_v39  ;;  %v1472_v26 = vadd.f32 %v2027_v54, %v1471_v23  ;;  %v1077_v23 = vadd.f32 %v2833_v47, %v980_v18 }
 0x159   :  { %v2029_v60 = vpop.f32.mrf.mxu0  ;;  %v1085_v54 = vadd.f32 %v2853_v1, %v988_v33  ;;  %v1490_v40 = vpop.f32.mrf.mxu1  ;;  %v3044_v33 = vld [vmem:[#allocation12_spill] sm:$0xff] }
 0x15a   :  { %1598 = vst [vmem:[%s3021_s4 + $0x10] sm:$0xff] %v1582_v58  ;;  %v1567_v16 = vadd.f32 %v2887_v5, %v1544_v21  ;;  %v1522_v8 = vadd.f32 %v1472_v26, %v1069_v55  ;;  %v2030_v12 = vadd.f32 %v2029_v60, %v2028_v41  ;;  %v1965_v55 = vadd.f32 %v2835_v48, %v2831_v31 }
 0x15b   :  { %v2031_v51 = vpop.f32.mrf.mxu0  ;;  %v1088_v60 = vadd.f32 %v2861_v10, %v991_v42 }
 0x15c   :  { %v1583_v24 = vmax.f32 %v1567_v16, 0.0  ;;  %v1545_v28 = vmul.f32 %v2881_v19, %v1522_v8  ;;  %v1475_v30 = vadd.f32 %v2030_v12, %v1474_v11  ;;  %v996_v31 = vadd.f32 %v1965_v55, %v2793_v62  ;;  %v2171_v8 = vpop.f32.mrf.mxu1  ;;  %v3036_v12 = vld [vmem:[#allocation6_spill] sm:$0xff] }
 0x15d   :  { %v2032_v22 = vpop.f32.mrf.mxu0 }
 0x15e   :  { %1599 = vst [vmem:[%s3021_s4 + $0x18] sm:$0xff] %v1583_v24  ;;  %v1568_v13 = vadd.f32 %v2887_v5, %v1545_v28  ;;  %v1523_v17 = vadd.f32 %v1475_v30, %v1072_v53  ;;  %v2033_v14 = vadd.f32 %v2032_v22, %v2031_v51  ;;  %v1968_v51 = vadd.f32 %v3036_v12, %v3035_v56  ;;  %v3037_v30 = vld [vmem:[#allocation8_spill] sm:$0xff] }
 0x15f   :  { %v2034_v57 = vpop.f32.mrf.mxu0  ;;  %v1093_v18 = vadd.f32 %v3037_v30, %v996_v31 }
 0x160   :  { %v1584_v43 = vmax.f32 %v1568_v13, 0.0  ;;  %v1546_v61 = vmul.f32 %v2881_v19, %v1523_v17  ;;  %v1480_v38 = vadd.f32 %v2163_v3, %v2033_v14  ;;  %v3038_v13 = vld [vmem:[#allocation7_spill] sm:$0xff]  ;;  %v3039_v17 = vld [vmem:[#allocation9_spill] sm:$0xff] }
 0x161   :  { %v2035_v46 = vpop.f32.mrf.mxu0  ;;  %v1971_v14 = vadd.f32 %v3039_v17, %v3038_v13 }
 0x162   :  { %1600 = vst [vmem:[%s3021_s4 + $0x20] sm:$0xff] %v1584_v43  ;;  %v1569_v34 = vadd.f32 %v2887_v5, %v1546_v61  ;;  %v1524_v35 = vadd.f32 %v1480_v38, %v1077_v23  ;;  %v2036_v9 = vadd.f32 %v2035_v46, %v2034_v57  ;;  %v1503_v23 = vpop.f32.mrf.mxu1  ;;  %v3040_v43 = vld [vmem:[#allocation2_spill] sm:$0xff] }
 0x163   :  { %v2037_v47 = vpop.f32.mrf.mxu0  ;;  %v999_v61 = vadd.f32 %v1968_v51, %v3040_v43 }
 0x164   :  { %v1585_v49 = vmax.f32 %v1569_v34, 0.0  ;;  %v1547_v3 = vmul.f32 %v2881_v19, %v1524_v35  ;;  %v1483_v4 = vadd.f32 %v2164_v2, %v2036_v9 }
 0x165   :  { %v2038_v36 = vpop.f32.mrf.mxu0  ;;  %v1096_v34 = vadd.f32 %v3041_v29, %v999_v61 }
 0x166   :  { %1601 = vst [vmem:[%s3021_s4 + $0x28] sm:$0xff] %v1585_v49  ;;  %v1570_v20 = vadd.f32 %v2887_v5, %v1547_v3  ;;  %v1525_v52 = vadd.f32 %v1483_v4, %v1080_v63  ;;  %v2039_v39 = vadd.f32 %v2038_v36, %v2037_v47  ;;  %v3042_v47 = vld [vmem:[#allocation3_spill] sm:$0xff]  ;;  %v2172_v3 = vpop.f32.mrf.mxu1  ;;  %v3043_v4 = vld [vmem:[#allocation10_spill] sm:$0xff] }
 0x167   :  { %v2040_v37 = vpop.f32.mrf.mxu0  ;;  %v1004_v63 = vadd.f32 %v1971_v14, %v3042_v47  ;;  %v1974_v36 = vadd.f32 %v3044_v33, %v3043_v4 }
 0x168   :  { %v1586_v41 = vmax.f32 %v1570_v20, 0.0  ;;  %v1548_v2 = vmul.f32 %v2881_v19, %v1525_v52  ;;  %v1488_v50 = vadd.f32 %v2039_v39, %v1487_v25  ;;  %v1506_v55 = vpop.f32.mrf.mxu1 }
 0x169   :  { %v2041_v58 = vpop.f32.mrf.mxu0 }
 0x16a   :  { %1602 = vst [vmem:[%s3021_s4 + $0x30] sm:$0xff] %v1586_v41  ;;  %v1571_v21 = vadd.f32 %v2887_v5, %v1548_v2  ;;  %v1526_v26 = vadd.f32 %v1488_v50, %v1085_v54  ;;  %v2042_v59 = vadd.f32 %v2041_v58, %v2040_v37  ;;  %v3045_v37 = vld [vmem:[#allocation13_spill] sm:$0xff]  ;;  %v3046_v58 = vld [vmem:[#allocation4_spill] sm:$0xff] }
 0x16b   :  { %v2043_v1 = vpop.f32.mrf.mxu0  ;;  %v1101_v54 = vadd.f32 %v3045_v37, %v1004_v63 }
 0x16c   :  { %v1587_v11 = vmax.f32 %v1571_v21, 0.0  ;;  %v1549_v15 = vmul.f32 %v2881_v19, %v1526_v26  ;;  %v1491_v16 = vadd.f32 %v2042_v59, %v1490_v40  ;;  %v1007_v40 = vadd.f32 %v1974_v36, %v3046_v58 }
 0x16d   :  { %v2044_v48 = vpop.f32.mrf.mxu0 }
 0x16e   :  { %1603 = vst [vmem:[%s3021_s4 + $0x38] sm:$0xff] %v1587_v11  ;;  %v1572_v53 = vadd.f32 %v2887_v5, %v1549_v15  ;;  %v1527_v24 = vadd.f32 %v1491_v16, %v1088_v60  ;;  %v2045_v28 = vadd.f32 %v2044_v48, %v2043_v1  ;;  %v3047_v1 = vld [vmem:[#allocation14_spill] sm:$0xff] }
 0x16f   :  { %v2046_v10 = vpop.f32.mrf.mxu0  ;;  %v1104_v60 = vadd.f32 %v3047_v1, %v1007_v40 }
 0x170   :  { %v1588_v22 = vmax.f32 %v1572_v53, 0.0  ;;  %v1550_v32 = vmul.f32 %v2881_v19, %v1527_v24  ;;  %v1496_v62 = vadd.f32 %v2167_v45, %v2045_v28 }
 0x171   :  { %v2047_v57 = vpop.f32.mrf.mxu0 }
 0x172   :  { %1604 = vst [vmem:[%s3021_s4 + $0x40] sm:$0xff] %v1588_v22  ;;  %v1573_v38 = vadd.f32 %v2887_v5, %v1550_v32  ;;  %v1528_v0 = vadd.f32 %v1496_v62, %v1093_v18  ;;  %v2048_v46 = vadd.f32 %v2047_v57, %v2046_v10 }
 0x173   :  { %v2049_v25 = vpop.f32.mrf.mxu0 }
 0x174   :  { %v1589_v35 = vmax.f32 %v1573_v38, 0.0  ;;  %v1551_v45 = vmul.f32 %v2881_v19, %v1528_v0  ;;  %v1499_v9 = vadd.f32 %v2168_v7, %v2048_v46 }
 0x175   :  { %v2050_v49 = vpop.f32.mrf.mxu0 }
 0x176   :  { %1605 = vst [vmem:[%s3021_s4 + $0x48] sm:$0xff] %v1589_v35  ;;  %v1574_v44 = vadd.f32 %v2887_v5, %v1551_v45  ;;  %v1529_v20 = vadd.f32 %v1499_v9, %v1096_v34  ;;  %v2051_v52 = vadd.f32 %v2050_v49, %v2049_v25 }
 0x177   :  { %v2052_v39 = vpop.f32.mrf.mxu0 }
 0x178   :  { %v1590_v41 = vmax.f32 %v1574_v44, 0.0  ;;  %v1552_v7 = vmul.f32 %v2881_v19, %v1529_v20  ;;  %v1504_v2 = vadd.f32 %v2051_v52, %v1503_v23 }
 0x179   :  { %v2053_v50 = vpop.f32.mrf.mxu0 }
 0x17a   :  { %1606 = vst [vmem:[%s3021_s4 + $0x50] sm:$0xff] %v1590_v41  ;;  %v1575_v42 = vadd.f32 %v2887_v5, %v1552_v7  ;;  %v1530_v21 = vadd.f32 %v1504_v2, %v1101_v54  ;;  %v2054_v26 = vadd.f32 %v2053_v50, %v2052_v39 }
 0x17b   :  { %v2055_v59 = vpop.f32.mrf.mxu0 }
 0x17c   :  { %v1591_v11 = vmax.f32 %v1575_v42, 0.0  ;;  %v1553_v15 = vmul.f32 %v2881_v19, %v1530_v21  ;;  %v1507_v16 = vadd.f32 %v2054_v26, %v1506_v55 }
 0x17d   :  { %v2056_v31 = vpop.f32.mrf.mxu0 }
 0x17e   :  { %1607 = vst [vmem:[%s3021_s4 + $0x58] sm:$0xff] %v1591_v11  ;;  %v1576_v48 = vadd.f32 %v2887_v5, %v1553_v15  ;;  %v1531_v56 = vadd.f32 %v1507_v16, %v1104_v60  ;;  %v2057_v12 = vadd.f32 %v2056_v31, %v2055_v59 }
 0x17f   :  { %v2058_v51 = vpop.f32.mrf.mxu0 }
 0x180   :  { %v1592_v53 = vmax.f32 %v1576_v48, 0.0  ;;  %v1554_v24 = vmul.f32 %v2881_v19, %v1531_v56  ;;  %v1512_v28 = vadd.f32 %v2171_v8, %v2057_v12 }
 0x181   :  { %v2059_v10 = vpop.f32.mrf.mxu0 }
 0x182   :  { %1608 = vst [vmem:[%s3021_s4 + $0x60] sm:$0xff] %v1592_v53  ;;  %v1577_v30 = vadd.f32 %v2887_v5, %v1554_v24  ;;  %v1532_v18 = vadd.f32 %v1512_v28, %v2869_v6  ;;  %v2060_v22 = vadd.f32 %v2059_v10, %v2058_v51 }
 0x184   :  { %v1593_v32 = vmax.f32 %v1577_v30, 0.0  ;;  %v1555_v62 = vmul.f32 %v2881_v19, %v1532_v18  ;;  %v1515_v13 = vadd.f32 %v2172_v3, %v2060_v22 }
 0x186   :  { %1609 = vst [vmem:[%s3021_s4 + $0x68] sm:$0xff] %v1593_v32  ;;  %v1578_v8 = vadd.f32 %v2887_v5, %v1555_v62  ;;  %v1533_v17 = vadd.f32 %v1515_v13, %v2874_v27 }
 0x188   :  { %v1594_v14 = vmax.f32 %v1578_v8, 0.0  ;;  %v1556_v57 = vmul.f32 %v2881_v19, %v1533_v17 }
 0x18a   :  { %1610 = vst [vmem:[%s3021_s4 + $0x70] sm:$0xff] %v1594_v14  ;;  %v1579_v6 = vadd.f32 %v2887_v5, %v1556_v57 }
 0x18c   :  { %v1595_v23 = vmax.f32 %v1579_v6, 0.0 }
 0x18e   :  { %1611 = vst [vmem:[%s3021_s4 + $0x78] sm:$0xff] %v1595_v23 }

</bundles_post_ra>
